<compile_context>
chip_gen: v7x
topology: tpu7x:2x2x1
jax: 0.10.0
libtpu: 0.0.40
codegen_flags: <defaults>
</compile_context>

<pallas_src>
import jax
import jax.numpy as jnp
from jax.experimental import pallas as pl
from jax.experimental.pallas import tpu as pltpu


def _scale_mul_kernel(s_ref, x_ref, o_ref):
    # s_ref: (tr, 1), x_ref: (tr, HW), o_ref: (tr, HW)
    # Per-channel scale broadcasts across the lane (spatial) axis.
    o_ref[...] = x_ref[...] * s_ref[...]


def channel_scale_mul(x852, x847, *, alias_input=False, vmem_block_budget=8 << 20):
    """Computes x852 * x847 with PyTorch broadcasting semantics.

    x852: (N, C, 1, 1), x847: (N, C, H, W) -> (N, C, H, W)

    alias_input: pass input_output_aliases={1: 0} so the result can reuse the
        activation's buffer when it is dead after this op (minor allocator win).
    vmem_block_budget: soft per-block byte budget; the whole array is processed
        in one block unless it would exceed this, in which case we tile rows.
    """
    n, c, h, w = x847.shape
    assert x852.shape == (n, c, 1, 1)

    rows = n * c
    hw = h * w
    # Free reshapes (contiguous views): channels -> sublanes, spatial -> lanes.
    x2d = x847.reshape(rows, hw)
    s2d = x852.reshape(rows, 1)

    itemsize = jnp.dtype(x847.dtype).itemsize
    block_bytes = rows * hw * itemsize

    # Default: one big block (per-grid-step overhead dominates at this size).
    nb = 1
    if block_bytes > vmem_block_budget:
        nb = int(pl.cdiv(block_bytes, vmem_block_budget))
        # Shrink nb until rows split into equal, sublane-aligned tiles.
        while nb > 1 and (rows % nb != 0 or (rows // nb) % 8 != 0):
            nb -= 1
    tr = rows // nb

    cost = pl.CostEstimate(
        flops=rows * hw,
        transcendentals=0,
        bytes_accessed=2 * rows * hw * itemsize + rows * itemsize,
    )

    extra_kwargs = {}
    if alias_input:
        extra_kwargs["input_output_aliases"] = {1: 0}

    out2d = pl.pallas_call(
        _scale_mul_kernel,
        out_shape=jax.ShapeDtypeStruct((rows, hw), x847.dtype),
        grid=(nb,),
        in_specs=[
            pl.BlockSpec((tr, 1), lambda i: (i, 0)),    # per-channel scale
            pl.BlockSpec((tr, hw), lambda i: (i, 0)),   # activation rows (full width)
        ],
        out_specs=pl.BlockSpec((tr, hw), lambda i: (i, 0)),
        compiler_params=pltpu.CompilerParams(
            # With a grid of 1 this is a no-op; for the rare tiled fallback the
            # row axis is just a sequential loop ("parallel" would not change
            # codegen, only core_parallel does, and that is not worth it here).
            dimension_semantics=("arbitrary",),
        ),
        cost_estimate=cost,
        **extra_kwargs,
    )(s2d, x2d)

    return out2d.reshape(n, c, h, w)


if __name__ == "__main__":
    key = jax.random.PRNGKey(0)
    k1, k2 = jax.random.split(key)

    # Shapes of the original module: (1, 3840, 7, 7) * (1, 3840, 1, 1).
    N, C, H, W = 1, 3840, 7, 7
    x847 = jax.random.normal(k1, (N, C, H, W), dtype=jnp.float32)
    x852 = jax.random.normal(k2, (N, C, 1, 1), dtype=jnp.float32)

    out = channel_scale_mul(x852, x847)
    out = jax.block_until_ready(out)

    # Correctness check against plain JAX broadcasting.
    ref = x852 * x847
    assert out.shape == (N, C, H, W)
    assert jnp.allclose(out, ref, atol=1e-6, rtol=1e-6)

    print("KERNEL_OK")
</pallas_src>

<mosaic_0001>
module attributes {stable_mosaic.version = 11 : i64} {
  func.func @_scale_mul_kernel(%arg0: i32, %arg1: memref<3840x1xf32, #tpu.memory_space<vmem>>, %arg2: memref<3840x49xf32, #tpu.memory_space<vmem>>, %arg3: memref<3840x49xf32, #tpu.memory_space<vmem>>) attributes {dimension_semantics = [#tpu.dimension_semantics<arbitrary>], iteration_bounds = array<i64: 1>, scalar_prefetch = 0 : i64, scratch_operands = 0 : i64, tpu.core_type = #tpu.core_type<tc>, window_params = [{transform_indices = @transform_0, window_bounds = array<i64: 3840, 1>}, {transform_indices = @transform_1, window_bounds = array<i64: 3840, 49>}, {transform_indices = @transform_2, window_bounds = array<i64: 3840, 49>}]} {
    %c0 = arith.constant 0 : index
    %c0_0 = arith.constant 0 : index
    %0 = vector.load %arg2[%c0, %c0_0] : memref<3840x49xf32, #tpu.memory_space<vmem>>, vector<3840x49xf32>
    %c0_1 = arith.constant 0 : index
    %c0_2 = arith.constant 0 : index
    %1 = vector.load %arg1[%c0_1, %c0_2] : memref<3840x1xf32, #tpu.memory_space<vmem>>, vector<3840x1xf32>
    %2 = vector.broadcast %1 : vector<3840x1xf32> to vector<3840x49xf32>
    %3 = arith.mulf %0, %2 : vector<3840x49xf32>
    %c0_3 = arith.constant 0 : index
    %c0_4 = arith.constant 0 : index
    %4 = vector.load %arg3[%c0_3, %c0_4] : memref<3840x49xf32, #tpu.memory_space<vmem>>, vector<3840x49xf32>
    tpu.vector_store %arg3[%c0_3, %c0_4], %3 {strides = array<i32>} : memref<3840x49xf32, #tpu.memory_space<vmem>>, vector<3840x49xf32>,
    return
  }
  func.func @transform_0(%arg0: i32) -> (i32, i32) {
    %c0_i32 = arith.constant 0 : i32
    %c0_i32_0 = arith.constant 0 : i32
    return %arg0, %c0_i32 : i32, i32
  }
  func.func @transform_1(%arg0: i32) -> (i32, i32) {
    %c0_i32 = arith.constant 0 : i32
    %c0_i32_0 = arith.constant 0 : i32
    return %arg0, %c0_i32 : i32, i32
  }
  func.func @transform_2(%arg0: i32) -> (i32, i32) {
    %c0_i32 = arith.constant 0 : i32
    %c0_i32_0 = arith.constant 0 : i32
    return %arg0, %c0_i32 : i32, i32
  }
}

</mosaic_0001>

<bundles_post_ra>
// kernel: tpu_custom_call.1
= control target key start
LH: loop header
LB: loop body
LE: loop exit
PB: predicated region body
PF: predicated region fallthrough
CT: control target
= control target key end

     0   :  { %v4339_v0 = vmov 0   ;;  %vm3851_vm0 = vcmask 400384   ;;  %s9155_s0 = inlined_call_operand.vmem [shape: f32[3840,1], index: 0, kind: input, shape index: {}]   ;;  %s9156_s1 = inlined_call_operand.vmem [shape: f32[3840,49], index: 1, kind: input, shape index: {}]   ;;  %s9157_s2 = inlined_call_operand.vmem [shape: f32[3840,49], index: 2, kind: output, shape index: {}]  }
   0x1   :  { %4338 = vset.pattern.permute.xlu1 %v4339_v0  ;;  %4337 = vset.pattern.permute.xlu0 %v4339_v0  ;;  %v493_v1 = vld [vmem:[%s9155_s0 + $0x10] sm:$0xff]  ;;  %v491_v2 = vld [vmem:[%s9155_s0] sm:$0xff]  ;;  %v494_v3 = vld [vmem:[%s9155_s0 + $0x18] sm:$0xff] }
   0x2   :  { %983 = vperm.xlu1 %4338, %v493_v1   ;;  %973 = vperm.xlu0 %4337, %v491_v2   ;;  %v492_v4 = vld [vmem:[%s9155_s0 + $0x8] sm:$0xff]  ;;  %v495_v6 = vld [vmem:[%s9155_s0 + $0x20] sm:$0xff]  ;;  %v498_v7 = vld [vmem:[%s9155_s0 + $0x38] sm:$0xff] }
   0x3   :  { %v496_v5 = vld [vmem:[%s9155_s0 + $0x28] sm:$0xff]  ;;  %v497_v8 = vld [vmem:[%s9155_s0 + $0x30] sm:$0xff]  ;;  %v499_v10 = vld [vmem:[%s9155_s0 + $0x40] sm:$0xff] }
   0x4   :  { %v500_v9 = vld [vmem:[%s9155_s0 + $0x48] sm:$0xff]  ;;  %v502_v11 = vld [vmem:[%s9155_s0 + $0x58] sm:$0xff]  ;;  %v501_v12 = vld [vmem:[%s9155_s0 + $0x50] sm:$0xff] }
   0x5   :  { %v504_v13 = vld [vmem:[%s9155_s0 + $0x68] sm:$0xff]  ;;  %v503_v14 = vld [vmem:[%s9155_s0 + $0x60] sm:$0xff]  ;;  %v506_v15 = vld [vmem:[%s9155_s0 + $0x78] sm:$0xff] }
   0x6   :  { %988 = vperm.xlu1 %4338, %v494_v3   ;;  %978 = vperm.xlu0 %4337, %v492_v4   ;;  %v505_v16 = vld [vmem:[%s9155_s0 + $0x70] sm:$0xff]  ;;  %v508_v17 = vld [vmem:[%s9155_s0 + $0x88] sm:$0xff]  ;;  %v507_v18 = vld [vmem:[%s9155_s0 + $0x80] sm:$0xff] }
   0x7   :  { %v510_v19 = vld [vmem:[%s9155_s0 + $0x98] sm:$0xff]  ;;  %v509_v20 = vld [vmem:[%s9155_s0 + $0x90] sm:$0xff]  ;;  %v512_v21 = vld [vmem:[%s9155_s0 + $0xa8] sm:$0xff] }
   0x8   :  { %v511_v22 = vld [vmem:[%s9155_s0 + $0xa0] sm:$0xff]  ;;  %v514_v23 = vld [vmem:[%s9155_s0 + $0xb8] sm:$0xff]  ;;  %v513_v24 = vld [vmem:[%s9155_s0 + $0xb0] sm:$0xff] }
   0x9   :  { %v516_v25 = vld [vmem:[%s9155_s0 + $0xc8] sm:$0xff]  ;;  %v515_v26 = vld [vmem:[%s9155_s0 + $0xc0] sm:$0xff]  ;;  %v518_v27 = vld [vmem:[%s9155_s0 + $0xd8] sm:$0xff] }
   0xa   :  { %998 = vperm.xlu1 %4338, %v496_v5   ;;  %993 = vperm.xlu0 %4337, %v495_v6   ;;  %v517_v28 = vld [vmem:[%s9155_s0 + $0xd0] sm:$0xff]  ;;  %v520_v29 = vld [vmem:[%s9155_s0 + $0xe8] sm:$0xff]  ;;  %v519_v30 = vld [vmem:[%s9155_s0 + $0xe0] sm:$0xff] }
   0xb   :  { %v522_v31 = vld [vmem:[%s9155_s0 + $0xf8] sm:$0xff]  ;;  %v521_v32 = vld [vmem:[%s9155_s0 + $0xf0] sm:$0xff]  ;;  %v524_v33 = vld [vmem:[%s9155_s0 + $0x108] sm:$0xff] }
   0xc   :  { %v523_v34 = vld [vmem:[%s9155_s0 + $0x100] sm:$0xff]  ;;  %v526_v35 = vld [vmem:[%s9155_s0 + $0x118] sm:$0xff]  ;;  %v525_v36 = vld [vmem:[%s9155_s0 + $0x110] sm:$0xff] }
   0xd   :  { %v528_v37 = vld [vmem:[%s9155_s0 + $0x128] sm:$0xff]  ;;  %v527_v38 = vld [vmem:[%s9155_s0 + $0x120] sm:$0xff]  ;;  %v530_v39 = vld [vmem:[%s9155_s0 + $0x138] sm:$0xff] }
   0xe   :  { %1008 = vperm.xlu1 %4338, %v498_v7   ;;  %1003 = vperm.xlu0 %4337, %v497_v8   ;;  %v529_v40 = vld [vmem:[%s9155_s0 + $0x130] sm:$0xff]  ;;  %v532_v41 = vld [vmem:[%s9155_s0 + $0x148] sm:$0xff]  ;;  %v531_v42 = vld [vmem:[%s9155_s0 + $0x140] sm:$0xff] }
   0xf   :  { %v534_v43 = vld [vmem:[%s9155_s0 + $0x158] sm:$0xff]  ;;  %v533_v44 = vld [vmem:[%s9155_s0 + $0x150] sm:$0xff]  ;;  %v536_v45 = vld [vmem:[%s9155_s0 + $0x168] sm:$0xff] }
  0x10   :  { %v535_v46 = vld [vmem:[%s9155_s0 + $0x160] sm:$0xff]  ;;  %v538_v47 = vld [vmem:[%s9155_s0 + $0x178] sm:$0xff]  ;;  %v537_v48 = vld [vmem:[%s9155_s0 + $0x170] sm:$0xff] }
  0x11   :  { %v540_v49 = vld [vmem:[%s9155_s0 + $0x188] sm:$0xff]  ;;  %v539_v50 = vld [vmem:[%s9155_s0 + $0x180] sm:$0xff]  ;;  %v542_v51 = vld [vmem:[%s9155_s0 + $0x198] sm:$0xff] }
  0x12   :  { %1018 = vperm.xlu1 %4338, %v500_v9   ;;  %1013 = vperm.xlu0 %4337, %v499_v10   ;;  %v541_v52 = vld [vmem:[%s9155_s0 + $0x190] sm:$0xff]  ;;  %v544_v53 = vld [vmem:[%s9155_s0 + $0x1a8] sm:$0xff]  ;;  %v543_v54 = vld [vmem:[%s9155_s0 + $0x1a0] sm:$0xff] }
  0x13   :  { %v546_v55 = vld [vmem:[%s9155_s0 + $0x1b8] sm:$0xff]  ;;  %v545_v56 = vld [vmem:[%s9155_s0 + $0x1b0] sm:$0xff]  ;;  %v548_v57 = vld [vmem:[%s9155_s0 + $0x1c8] sm:$0xff] }
  0x14   :  { %v547_v58 = vld [vmem:[%s9155_s0 + $0x1c0] sm:$0xff]  ;;  %v550_v59 = vld [vmem:[%s9155_s0 + $0x1d8] sm:$0xff]  ;;  %v549_v60 = vld [vmem:[%s9155_s0 + $0x1d0] sm:$0xff] }
  0x15   :  { %v552_v61 = vld [vmem:[%s9155_s0 + $0x1e8] sm:$0xff]  ;;  %v551_v62 = vld [vmem:[%s9155_s0 + $0x1e0] sm:$0xff]  ;;  %v554_v63 = vld [vmem:[%s9155_s0 + $0x1f8] sm:$0xff] }
  0x16   :  { %1028 = vperm.xlu1 %4338, %v502_v11   ;;  %1023 = vperm.xlu0 %4337, %v501_v12   ;;  %v553_v0 = vld [vmem:[%s9155_s0 + $0x1f0] sm:$0xff]  ;;  %v11_v2 = vld [vmem:[%s9156_s1] sm:$0xff]  ;;  %v556_v3 = vld [vmem:[%s9155_s0 + $0x208] sm:$0xff] }
  0x17   :  { %v13_v1 = vld [vmem:[%s9156_s1 + $0x10] sm:$0xff]  ;;  %v555_v4 = vld [vmem:[%s9155_s0 + $0x200] sm:$0xff]  ;;  %v14_v9 = vld [vmem:[%s9156_s1 + $0x18] sm:$0xff] }
  0x18   :  { %v12_v10 = vld [vmem:[%s9156_s1 + $0x8] sm:$0xff]  ;;  %v558_v11 = vld [vmem:[%s9155_s0 + $0x218] sm:$0xff]  ;;  %v557_v12 = vld [vmem:[%s9155_s0 + $0x210] sm:$0xff] }
  0x1a   :  { %1038 = vperm.xlu1 %4338, %v504_v13   ;;  %1033 = vperm.xlu0 %4337, %v503_v14  }
  0x1e   :  { %1048 = vperm.xlu1 %4338, %v506_v15   ;;  %1043 = vperm.xlu0 %4337, %v505_v16  }
  0x22   :  { %1058 = vperm.xlu1 %4338, %v508_v17   ;;  %1053 = vperm.xlu0 %4337, %v507_v18   ;;  %v16_v17 = vld [vmem:[%s9156_s1 + $0x28] sm:$0xff]  ;;  %v15_v18 = vld [vmem:[%s9156_s1 + $0x20] sm:$0xff] }
  0x26   :  { %1068 = vperm.xlu1 %4338, %v510_v19   ;;  %1063 = vperm.xlu0 %4337, %v509_v20   ;;  %v560_v19 = vld [vmem:[%s9155_s0 + $0x228] sm:$0xff]  ;;  %v559_v20 = vld [vmem:[%s9155_s0 + $0x220] sm:$0xff] }
  0x2a   :  { %1078 = vperm.xlu1 %4338, %v512_v21   ;;  %1073 = vperm.xlu0 %4337, %v511_v22  }
  0x2e   :  { %1088 = vperm.xlu1 %4338, %v514_v23   ;;  %1083 = vperm.xlu0 %4337, %v513_v24  }
  0x32   :  { %1098 = vperm.xlu1 %4338, %v516_v25   ;;  %1093 = vperm.xlu0 %4337, %v515_v26   ;;  %v18_v25 = vld [vmem:[%s9156_s1 + $0x38] sm:$0xff]  ;;  %v17_v26 = vld [vmem:[%s9156_s1 + $0x30] sm:$0xff] }
  0x36   :  { %1108 = vperm.xlu1 %4338, %v518_v27   ;;  %1103 = vperm.xlu0 %4337, %v517_v28   ;;  %v562_v27 = vld [vmem:[%s9155_s0 + $0x238] sm:$0xff]  ;;  %v561_v28 = vld [vmem:[%s9155_s0 + $0x230] sm:$0xff] }
  0x3a   :  { %1118 = vperm.xlu1 %4338, %v520_v29   ;;  %1113 = vperm.xlu0 %4337, %v519_v30  }
  0x3e   :  { %1128 = vperm.xlu1 %4338, %v522_v31   ;;  %1123 = vperm.xlu0 %4337, %v521_v32  }
  0x42   :  { %1138 = vperm.xlu1 %4338, %v524_v33   ;;  %1133 = vperm.xlu0 %4337, %v523_v34   ;;  %v20_v33 = vld [vmem:[%s9156_s1 + $0x48] sm:$0xff]  ;;  %v19_v34 = vld [vmem:[%s9156_s1 + $0x40] sm:$0xff] }
  0x46   :  { %1148 = vperm.xlu1 %4338, %v526_v35   ;;  %1143 = vperm.xlu0 %4337, %v525_v36   ;;  %v564_v35 = vld [vmem:[%s9155_s0 + $0x248] sm:$0xff]  ;;  %v563_v36 = vld [vmem:[%s9155_s0 + $0x240] sm:$0xff] }
  0x4a   :  { %1158 = vperm.xlu1 %4338, %v528_v37   ;;  %1153 = vperm.xlu0 %4337, %v527_v38  }
  0x4e   :  { %1168 = vperm.xlu1 %4338, %v530_v39   ;;  %1163 = vperm.xlu0 %4337, %v529_v40  }
  0x52   :  { %1178 = vperm.xlu1 %4338, %v532_v41   ;;  %1173 = vperm.xlu0 %4337, %v531_v42   ;;  %v22_v41 = vld [vmem:[%s9156_s1 + $0x58] sm:$0xff]  ;;  %v21_v42 = vld [vmem:[%s9156_s1 + $0x50] sm:$0xff] }
  0x56   :  { %1188 = vperm.xlu1 %4338, %v534_v43   ;;  %1183 = vperm.xlu0 %4337, %v533_v44   ;;  %v566_v43 = vld [vmem:[%s9155_s0 + $0x258] sm:$0xff]  ;;  %v565_v44 = vld [vmem:[%s9155_s0 + $0x250] sm:$0xff] }
  0x5a   :  { %1198 = vperm.xlu1 %4338, %v536_v45   ;;  %1193 = vperm.xlu0 %4337, %v535_v46  }
  0x5e   :  { %1208 = vperm.xlu1 %4338, %v538_v47   ;;  %1203 = vperm.xlu0 %4337, %v537_v48  }
  0x62   :  { %1218 = vperm.xlu1 %4338, %v540_v49   ;;  %1213 = vperm.xlu0 %4337, %v539_v50   ;;  %v24_v49 = vld [vmem:[%s9156_s1 + $0x68] sm:$0xff]  ;;  %v23_v50 = vld [vmem:[%s9156_s1 + $0x60] sm:$0xff] }
  0x66   :  { %1228 = vperm.xlu1 %4338, %v542_v51   ;;  %1223 = vperm.xlu0 %4337, %v541_v52   ;;  %v568_v51 = vld [vmem:[%s9155_s0 + $0x268] sm:$0xff]  ;;  %v567_v52 = vld [vmem:[%s9155_s0 + $0x260] sm:$0xff] }
  0x6a   :  { %1238 = vperm.xlu1 %4338, %v544_v53   ;;  %1233 = vperm.xlu0 %4337, %v543_v54  }
  0x6e   :  { %1248 = vperm.xlu1 %4338, %v546_v55   ;;  %1243 = vperm.xlu0 %4337, %v545_v56  }
  0x72   :  { %1258 = vperm.xlu1 %4338, %v548_v57   ;;  %1253 = vperm.xlu0 %4337, %v547_v58   ;;  %v26_v57 = vld [vmem:[%s9156_s1 + $0x78] sm:$0xff]  ;;  %v25_v58 = vld [vmem:[%s9156_s1 + $0x70] sm:$0xff] }
  0x76   :  { %1268 = vperm.xlu1 %4338, %v550_v59   ;;  %1263 = vperm.xlu0 %4337, %v549_v60   ;;  %v570_v59 = vld [vmem:[%s9155_s0 + $0x278] sm:$0xff]  ;;  %v569_v60 = vld [vmem:[%s9155_s0 + $0x270] sm:$0xff] }
  0x7a   :  { %1278 = vperm.xlu1 %4338, %v552_v61   ;;  %1273 = vperm.xlu0 %4337, %v551_v62  }
  0x7e   :  { %1288 = vperm.xlu1 %4338, %v554_v63   ;;  %1283 = vperm.xlu0 %4337, %v553_v0  }
  0x81   :  { %v984_v5 = vpop.permute.xlu1 %983  ;;  %v974_v6 = vpop.permute.xlu0 %973 }
  0x82   :  { %v3373_v7 = vmul.f32 %v984_v5, %v13_v1  ;;  %v3371_v8 = vmul.f32 %v974_v6, %v11_v2  ;;  %1298 = vperm.xlu1 %4338, %v556_v3   ;;  %1293 = vperm.xlu0 %4337, %v555_v4   ;;  %v28_v1 = vld [vmem:[%s9156_s1 + $0x88] sm:$0xff]  ;;  %v27_v2 = vld [vmem:[%s9156_s1 + $0x80] sm:$0xff] }
  0x83   :  { %v572_v3 = vld [vmem:[%s9155_s0 + $0x288] sm:$0xff]  ;;  %v571_v4 = vld [vmem:[%s9155_s0 + $0x280] sm:$0xff] }
  0x84   :  { %3854 = vst.msk [vmem:[%s9157_s2 + $0x10] sm:$0xff] %vm3851_vm0, %v3373_v7  ;;  %3852 = vst.msk [vmem:[%s9157_s2] sm:$0xff] %vm3851_vm0, %v3371_v8 }
  0x85   :  { %v989_v13 = vpop.permute.xlu1 %988  ;;  %v979_v14 = vpop.permute.xlu0 %978 }
  0x86   :  { %v3374_v15 = vmul.f32 %v989_v13, %v14_v9  ;;  %v3372_v16 = vmul.f32 %v979_v14, %v12_v10  ;;  %1308 = vperm.xlu1 %4338, %v558_v11   ;;  %1303 = vperm.xlu0 %4337, %v557_v12   ;;  %v30_v9 = vld [vmem:[%s9156_s1 + $0x98] sm:$0xff]  ;;  %v29_v10 = vld [vmem:[%s9156_s1 + $0x90] sm:$0xff] }
  0x87   :  { %v574_v11 = vld [vmem:[%s9155_s0 + $0x298] sm:$0xff]  ;;  %v573_v12 = vld [vmem:[%s9155_s0 + $0x290] sm:$0xff] }
  0x88   :  { %3855 = vst.msk [vmem:[%s9157_s2 + $0x18] sm:$0xff] %vm3851_vm0, %v3374_v15  ;;  %3853 = vst.msk [vmem:[%s9157_s2 + $0x8] sm:$0xff] %vm3851_vm0, %v3372_v16 }
  0x89   :  { %v999_v21 = vpop.permute.xlu1 %998  ;;  %v994_v22 = vpop.permute.xlu0 %993 }
  0x8a   :  { %v3376_v23 = vmul.f32 %v999_v21, %v16_v17  ;;  %v3375_v24 = vmul.f32 %v994_v22, %v15_v18  ;;  %1318 = vperm.xlu1 %4338, %v560_v19   ;;  %1313 = vperm.xlu0 %4337, %v559_v20   ;;  %v32_v17 = vld [vmem:[%s9156_s1 + $0xa8] sm:$0xff]  ;;  %v31_v18 = vld [vmem:[%s9156_s1 + $0xa0] sm:$0xff] }
  0x8b   :  { %v576_v19 = vld [vmem:[%s9155_s0 + $0x2a8] sm:$0xff]  ;;  %v575_v20 = vld [vmem:[%s9155_s0 + $0x2a0] sm:$0xff] }
  0x8c   :  { %3857 = vst.msk [vmem:[%s9157_s2 + $0x28] sm:$0xff] %vm3851_vm0, %v3376_v23  ;;  %3856 = vst.msk [vmem:[%s9157_s2 + $0x20] sm:$0xff] %vm3851_vm0, %v3375_v24 }
  0x8d   :  { %v1009_v29 = vpop.permute.xlu1 %1008  ;;  %v1004_v30 = vpop.permute.xlu0 %1003 }
  0x8e   :  { %v3378_v31 = vmul.f32 %v1009_v29, %v18_v25  ;;  %v3377_v32 = vmul.f32 %v1004_v30, %v17_v26  ;;  %1328 = vperm.xlu1 %4338, %v562_v27   ;;  %1323 = vperm.xlu0 %4337, %v561_v28   ;;  %v34_v25 = vld [vmem:[%s9156_s1 + $0xb8] sm:$0xff]  ;;  %v33_v26 = vld [vmem:[%s9156_s1 + $0xb0] sm:$0xff] }
  0x8f   :  { %v578_v27 = vld [vmem:[%s9155_s0 + $0x2b8] sm:$0xff]  ;;  %v577_v28 = vld [vmem:[%s9155_s0 + $0x2b0] sm:$0xff] }
  0x90   :  { %3859 = vst.msk [vmem:[%s9157_s2 + $0x38] sm:$0xff] %vm3851_vm0, %v3378_v31  ;;  %3858 = vst.msk [vmem:[%s9157_s2 + $0x30] sm:$0xff] %vm3851_vm0, %v3377_v32 }
  0x91   :  { %v1019_v37 = vpop.permute.xlu1 %1018  ;;  %v1014_v38 = vpop.permute.xlu0 %1013 }
  0x92   :  { %v3380_v39 = vmul.f32 %v1019_v37, %v20_v33  ;;  %v3379_v40 = vmul.f32 %v1014_v38, %v19_v34  ;;  %1338 = vperm.xlu1 %4338, %v564_v35   ;;  %1333 = vperm.xlu0 %4337, %v563_v36   ;;  %v36_v33 = vld [vmem:[%s9156_s1 + $0xc8] sm:$0xff]  ;;  %v35_v34 = vld [vmem:[%s9156_s1 + $0xc0] sm:$0xff] }
  0x93   :  { %v580_v35 = vld [vmem:[%s9155_s0 + $0x2c8] sm:$0xff]  ;;  %v579_v36 = vld [vmem:[%s9155_s0 + $0x2c0] sm:$0xff] }
  0x94   :  { %3861 = vst.msk [vmem:[%s9157_s2 + $0x48] sm:$0xff] %vm3851_vm0, %v3380_v39  ;;  %3860 = vst.msk [vmem:[%s9157_s2 + $0x40] sm:$0xff] %vm3851_vm0, %v3379_v40 }
  0x95   :  { %v1029_v45 = vpop.permute.xlu1 %1028  ;;  %v1024_v46 = vpop.permute.xlu0 %1023 }
  0x96   :  { %v3382_v47 = vmul.f32 %v1029_v45, %v22_v41  ;;  %v3381_v48 = vmul.f32 %v1024_v46, %v21_v42  ;;  %1348 = vperm.xlu1 %4338, %v566_v43   ;;  %1343 = vperm.xlu0 %4337, %v565_v44   ;;  %v38_v41 = vld [vmem:[%s9156_s1 + $0xd8] sm:$0xff]  ;;  %v37_v42 = vld [vmem:[%s9156_s1 + $0xd0] sm:$0xff] }
  0x97   :  { %v582_v43 = vld [vmem:[%s9155_s0 + $0x2d8] sm:$0xff]  ;;  %v581_v44 = vld [vmem:[%s9155_s0 + $0x2d0] sm:$0xff] }
  0x98   :  { %3863 = vst.msk [vmem:[%s9157_s2 + $0x58] sm:$0xff] %vm3851_vm0, %v3382_v47  ;;  %3862 = vst.msk [vmem:[%s9157_s2 + $0x50] sm:$0xff] %vm3851_vm0, %v3381_v48 }
  0x99   :  { %v1039_v53 = vpop.permute.xlu1 %1038  ;;  %v1034_v54 = vpop.permute.xlu0 %1033 }
  0x9a   :  { %v3384_v55 = vmul.f32 %v1039_v53, %v24_v49  ;;  %v3383_v56 = vmul.f32 %v1034_v54, %v23_v50  ;;  %1358 = vperm.xlu1 %4338, %v568_v51   ;;  %1353 = vperm.xlu0 %4337, %v567_v52   ;;  %v40_v49 = vld [vmem:[%s9156_s1 + $0xe8] sm:$0xff]  ;;  %v39_v50 = vld [vmem:[%s9156_s1 + $0xe0] sm:$0xff] }
  0x9b   :  { %v584_v51 = vld [vmem:[%s9155_s0 + $0x2e8] sm:$0xff]  ;;  %v583_v52 = vld [vmem:[%s9155_s0 + $0x2e0] sm:$0xff] }
  0x9c   :  { %3865 = vst.msk [vmem:[%s9157_s2 + $0x68] sm:$0xff] %vm3851_vm0, %v3384_v55  ;;  %3864 = vst.msk [vmem:[%s9157_s2 + $0x60] sm:$0xff] %vm3851_vm0, %v3383_v56 }
  0x9d   :  { %v1049_v61 = vpop.permute.xlu1 %1048  ;;  %v1044_v62 = vpop.permute.xlu0 %1043 }
  0x9e   :  { %v3386_v63 = vmul.f32 %v1049_v61, %v26_v57  ;;  %v3385_v0 = vmul.f32 %v1044_v62, %v25_v58  ;;  %1368 = vperm.xlu1 %4338, %v570_v59   ;;  %1363 = vperm.xlu0 %4337, %v569_v60   ;;  %v42_v57 = vld [vmem:[%s9156_s1 + $0xf8] sm:$0xff]  ;;  %v41_v58 = vld [vmem:[%s9156_s1 + $0xf0] sm:$0xff] }
  0x9f   :  { %v586_v59 = vld [vmem:[%s9155_s0 + $0x2f8] sm:$0xff]  ;;  %v585_v60 = vld [vmem:[%s9155_s0 + $0x2f0] sm:$0xff] }
  0xa0   :  { %3867 = vst.msk [vmem:[%s9157_s2 + $0x78] sm:$0xff] %vm3851_vm0, %v3386_v63  ;;  %3866 = vst.msk [vmem:[%s9157_s2 + $0x70] sm:$0xff] %vm3851_vm0, %v3385_v0 }
  0xa1   :  { %v1059_v5 = vpop.permute.xlu1 %1058  ;;  %v1054_v6 = vpop.permute.xlu0 %1053 }
  0xa2   :  { %v3388_v7 = vmul.f32 %v1059_v5, %v28_v1  ;;  %v3387_v8 = vmul.f32 %v1054_v6, %v27_v2  ;;  %1378 = vperm.xlu1 %4338, %v572_v3   ;;  %1373 = vperm.xlu0 %4337, %v571_v4   ;;  %v44_v1 = vld [vmem:[%s9156_s1 + $0x108] sm:$0xff]  ;;  %v43_v2 = vld [vmem:[%s9156_s1 + $0x100] sm:$0xff] }
  0xa3   :  { %v588_v3 = vld [vmem:[%s9155_s0 + $0x308] sm:$0xff]  ;;  %v587_v4 = vld [vmem:[%s9155_s0 + $0x300] sm:$0xff] }
  0xa4   :  { %3869 = vst.msk [vmem:[%s9157_s2 + $0x88] sm:$0xff] %vm3851_vm0, %v3388_v7  ;;  %3868 = vst.msk [vmem:[%s9157_s2 + $0x80] sm:$0xff] %vm3851_vm0, %v3387_v8 }
  0xa5   :  { %v1069_v13 = vpop.permute.xlu1 %1068  ;;  %v1064_v14 = vpop.permute.xlu0 %1063 }
  0xa6   :  { %v3390_v15 = vmul.f32 %v1069_v13, %v30_v9  ;;  %v3389_v16 = vmul.f32 %v1064_v14, %v29_v10  ;;  %1388 = vperm.xlu1 %4338, %v574_v11   ;;  %1383 = vperm.xlu0 %4337, %v573_v12   ;;  %v46_v9 = vld [vmem:[%s9156_s1 + $0x118] sm:$0xff]  ;;  %v45_v10 = vld [vmem:[%s9156_s1 + $0x110] sm:$0xff] }
  0xa7   :  { %v590_v11 = vld [vmem:[%s9155_s0 + $0x318] sm:$0xff]  ;;  %v589_v12 = vld [vmem:[%s9155_s0 + $0x310] sm:$0xff] }
  0xa8   :  { %3871 = vst.msk [vmem:[%s9157_s2 + $0x98] sm:$0xff] %vm3851_vm0, %v3390_v15  ;;  %3870 = vst.msk [vmem:[%s9157_s2 + $0x90] sm:$0xff] %vm3851_vm0, %v3389_v16 }
  0xa9   :  { %v1079_v21 = vpop.permute.xlu1 %1078  ;;  %v1074_v22 = vpop.permute.xlu0 %1073 }
  0xaa   :  { %v3392_v23 = vmul.f32 %v1079_v21, %v32_v17  ;;  %v3391_v24 = vmul.f32 %v1074_v22, %v31_v18  ;;  %1398 = vperm.xlu1 %4338, %v576_v19   ;;  %1393 = vperm.xlu0 %4337, %v575_v20   ;;  %v48_v17 = vld [vmem:[%s9156_s1 + $0x128] sm:$0xff]  ;;  %v47_v18 = vld [vmem:[%s9156_s1 + $0x120] sm:$0xff] }
  0xab   :  { %v592_v19 = vld [vmem:[%s9155_s0 + $0x328] sm:$0xff]  ;;  %v591_v20 = vld [vmem:[%s9155_s0 + $0x320] sm:$0xff] }
  0xac   :  { %3873 = vst.msk [vmem:[%s9157_s2 + $0xa8] sm:$0xff] %vm3851_vm0, %v3392_v23  ;;  %3872 = vst.msk [vmem:[%s9157_s2 + $0xa0] sm:$0xff] %vm3851_vm0, %v3391_v24 }
  0xad   :  { %v1089_v29 = vpop.permute.xlu1 %1088  ;;  %v1084_v30 = vpop.permute.xlu0 %1083 }
  0xae   :  { %v3394_v31 = vmul.f32 %v1089_v29, %v34_v25  ;;  %v3393_v32 = vmul.f32 %v1084_v30, %v33_v26  ;;  %1408 = vperm.xlu1 %4338, %v578_v27   ;;  %1403 = vperm.xlu0 %4337, %v577_v28   ;;  %v50_v25 = vld [vmem:[%s9156_s1 + $0x138] sm:$0xff]  ;;  %v49_v26 = vld [vmem:[%s9156_s1 + $0x130] sm:$0xff] }
  0xaf   :  { %v594_v27 = vld [vmem:[%s9155_s0 + $0x338] sm:$0xff]  ;;  %v593_v28 = vld [vmem:[%s9155_s0 + $0x330] sm:$0xff] }
  0xb0   :  { %3875 = vst.msk [vmem:[%s9157_s2 + $0xb8] sm:$0xff] %vm3851_vm0, %v3394_v31  ;;  %3874 = vst.msk [vmem:[%s9157_s2 + $0xb0] sm:$0xff] %vm3851_vm0, %v3393_v32 }
  0xb1   :  { %v1099_v37 = vpop.permute.xlu1 %1098  ;;  %v1094_v38 = vpop.permute.xlu0 %1093 }
  0xb2   :  { %v3396_v39 = vmul.f32 %v1099_v37, %v36_v33  ;;  %v3395_v40 = vmul.f32 %v1094_v38, %v35_v34  ;;  %1418 = vperm.xlu1 %4338, %v580_v35   ;;  %1413 = vperm.xlu0 %4337, %v579_v36   ;;  %v52_v33 = vld [vmem:[%s9156_s1 + $0x148] sm:$0xff]  ;;  %v51_v34 = vld [vmem:[%s9156_s1 + $0x140] sm:$0xff] }
  0xb3   :  { %v596_v35 = vld [vmem:[%s9155_s0 + $0x348] sm:$0xff]  ;;  %v595_v36 = vld [vmem:[%s9155_s0 + $0x340] sm:$0xff] }
  0xb4   :  { %3877 = vst.msk [vmem:[%s9157_s2 + $0xc8] sm:$0xff] %vm3851_vm0, %v3396_v39  ;;  %3876 = vst.msk [vmem:[%s9157_s2 + $0xc0] sm:$0xff] %vm3851_vm0, %v3395_v40 }
  0xb5   :  { %v1109_v45 = vpop.permute.xlu1 %1108  ;;  %v1104_v46 = vpop.permute.xlu0 %1103 }
  0xb6   :  { %v3398_v47 = vmul.f32 %v1109_v45, %v38_v41  ;;  %v3397_v48 = vmul.f32 %v1104_v46, %v37_v42  ;;  %1428 = vperm.xlu1 %4338, %v582_v43   ;;  %1423 = vperm.xlu0 %4337, %v581_v44   ;;  %v54_v41 = vld [vmem:[%s9156_s1 + $0x158] sm:$0xff]  ;;  %v53_v42 = vld [vmem:[%s9156_s1 + $0x150] sm:$0xff] }
  0xb7   :  { %v598_v43 = vld [vmem:[%s9155_s0 + $0x358] sm:$0xff]  ;;  %v597_v44 = vld [vmem:[%s9155_s0 + $0x350] sm:$0xff] }
  0xb8   :  { %3879 = vst.msk [vmem:[%s9157_s2 + $0xd8] sm:$0xff] %vm3851_vm0, %v3398_v47  ;;  %3878 = vst.msk [vmem:[%s9157_s2 + $0xd0] sm:$0xff] %vm3851_vm0, %v3397_v48 }
  0xb9   :  { %v1119_v53 = vpop.permute.xlu1 %1118  ;;  %v1114_v54 = vpop.permute.xlu0 %1113 }
  0xba   :  { %v3400_v55 = vmul.f32 %v1119_v53, %v40_v49  ;;  %v3399_v56 = vmul.f32 %v1114_v54, %v39_v50  ;;  %1438 = vperm.xlu1 %4338, %v584_v51   ;;  %1433 = vperm.xlu0 %4337, %v583_v52   ;;  %v56_v49 = vld [vmem:[%s9156_s1 + $0x168] sm:$0xff]  ;;  %v55_v50 = vld [vmem:[%s9156_s1 + $0x160] sm:$0xff] }
  0xbb   :  { %v600_v51 = vld [vmem:[%s9155_s0 + $0x368] sm:$0xff]  ;;  %v599_v52 = vld [vmem:[%s9155_s0 + $0x360] sm:$0xff] }
  0xbc   :  { %3881 = vst.msk [vmem:[%s9157_s2 + $0xe8] sm:$0xff] %vm3851_vm0, %v3400_v55  ;;  %3880 = vst.msk [vmem:[%s9157_s2 + $0xe0] sm:$0xff] %vm3851_vm0, %v3399_v56 }
  0xbd   :  { %v1129_v61 = vpop.permute.xlu1 %1128  ;;  %v1124_v62 = vpop.permute.xlu0 %1123 }
  0xbe   :  { %v3402_v63 = vmul.f32 %v1129_v61, %v42_v57  ;;  %v3401_v0 = vmul.f32 %v1124_v62, %v41_v58  ;;  %1448 = vperm.xlu1 %4338, %v586_v59   ;;  %1443 = vperm.xlu0 %4337, %v585_v60   ;;  %v58_v57 = vld [vmem:[%s9156_s1 + $0x178] sm:$0xff]  ;;  %v57_v58 = vld [vmem:[%s9156_s1 + $0x170] sm:$0xff] }
  0xbf   :  { %v602_v59 = vld [vmem:[%s9155_s0 + $0x378] sm:$0xff]  ;;  %v601_v60 = vld [vmem:[%s9155_s0 + $0x370] sm:$0xff] }
  0xc0   :  { %3883 = vst.msk [vmem:[%s9157_s2 + $0xf8] sm:$0xff] %vm3851_vm0, %v3402_v63  ;;  %3882 = vst.msk [vmem:[%s9157_s2 + $0xf0] sm:$0xff] %vm3851_vm0, %v3401_v0 }
  0xc1   :  { %v1139_v5 = vpop.permute.xlu1 %1138  ;;  %v1134_v6 = vpop.permute.xlu0 %1133 }
  0xc2   :  { %v3404_v7 = vmul.f32 %v1139_v5, %v44_v1  ;;  %v3403_v8 = vmul.f32 %v1134_v6, %v43_v2  ;;  %1458 = vperm.xlu1 %4338, %v588_v3   ;;  %1453 = vperm.xlu0 %4337, %v587_v4   ;;  %v60_v1 = vld [vmem:[%s9156_s1 + $0x188] sm:$0xff]  ;;  %v59_v2 = vld [vmem:[%s9156_s1 + $0x180] sm:$0xff] }
  0xc3   :  { %v604_v3 = vld [vmem:[%s9155_s0 + $0x388] sm:$0xff]  ;;  %v603_v4 = vld [vmem:[%s9155_s0 + $0x380] sm:$0xff] }
  0xc4   :  { %3885 = vst.msk [vmem:[%s9157_s2 + $0x108] sm:$0xff] %vm3851_vm0, %v3404_v7  ;;  %3884 = vst.msk [vmem:[%s9157_s2 + $0x100] sm:$0xff] %vm3851_vm0, %v3403_v8 }
  0xc5   :  { %v1149_v13 = vpop.permute.xlu1 %1148  ;;  %v1144_v14 = vpop.permute.xlu0 %1143 }
  0xc6   :  { %v3406_v15 = vmul.f32 %v1149_v13, %v46_v9  ;;  %v3405_v16 = vmul.f32 %v1144_v14, %v45_v10  ;;  %1468 = vperm.xlu1 %4338, %v590_v11   ;;  %1463 = vperm.xlu0 %4337, %v589_v12   ;;  %v62_v9 = vld [vmem:[%s9156_s1 + $0x198] sm:$0xff]  ;;  %v61_v10 = vld [vmem:[%s9156_s1 + $0x190] sm:$0xff] }
  0xc7   :  { %v606_v11 = vld [vmem:[%s9155_s0 + $0x398] sm:$0xff]  ;;  %v605_v12 = vld [vmem:[%s9155_s0 + $0x390] sm:$0xff] }
  0xc8   :  { %3887 = vst.msk [vmem:[%s9157_s2 + $0x118] sm:$0xff] %vm3851_vm0, %v3406_v15  ;;  %3886 = vst.msk [vmem:[%s9157_s2 + $0x110] sm:$0xff] %vm3851_vm0, %v3405_v16 }
  0xc9   :  { %v1159_v21 = vpop.permute.xlu1 %1158  ;;  %v1154_v22 = vpop.permute.xlu0 %1153 }
  0xca   :  { %v3408_v23 = vmul.f32 %v1159_v21, %v48_v17  ;;  %v3407_v24 = vmul.f32 %v1154_v22, %v47_v18  ;;  %1478 = vperm.xlu1 %4338, %v592_v19   ;;  %1473 = vperm.xlu0 %4337, %v591_v20   ;;  %v64_v17 = vld [vmem:[%s9156_s1 + $0x1a8] sm:$0xff]  ;;  %v63_v18 = vld [vmem:[%s9156_s1 + $0x1a0] sm:$0xff] }
  0xcb   :  { %v608_v19 = vld [vmem:[%s9155_s0 + $0x3a8] sm:$0xff]  ;;  %v607_v20 = vld [vmem:[%s9155_s0 + $0x3a0] sm:$0xff] }
  0xcc   :  { %3889 = vst.msk [vmem:[%s9157_s2 + $0x128] sm:$0xff] %vm3851_vm0, %v3408_v23  ;;  %3888 = vst.msk [vmem:[%s9157_s2 + $0x120] sm:$0xff] %vm3851_vm0, %v3407_v24 }
  0xcd   :  { %v1169_v29 = vpop.permute.xlu1 %1168  ;;  %v1164_v30 = vpop.permute.xlu0 %1163 }
  0xce   :  { %v3410_v31 = vmul.f32 %v1169_v29, %v50_v25  ;;  %v3409_v32 = vmul.f32 %v1164_v30, %v49_v26  ;;  %1488 = vperm.xlu1 %4338, %v594_v27   ;;  %1483 = vperm.xlu0 %4337, %v593_v28   ;;  %v66_v25 = vld [vmem:[%s9156_s1 + $0x1b8] sm:$0xff]  ;;  %v65_v26 = vld [vmem:[%s9156_s1 + $0x1b0] sm:$0xff] }
  0xcf   :  { %v610_v27 = vld [vmem:[%s9155_s0 + $0x3b8] sm:$0xff]  ;;  %v609_v28 = vld [vmem:[%s9155_s0 + $0x3b0] sm:$0xff] }
  0xd0   :  { %3891 = vst.msk [vmem:[%s9157_s2 + $0x138] sm:$0xff] %vm3851_vm0, %v3410_v31  ;;  %3890 = vst.msk [vmem:[%s9157_s2 + $0x130] sm:$0xff] %vm3851_vm0, %v3409_v32 }
  0xd1   :  { %v1179_v37 = vpop.permute.xlu1 %1178  ;;  %v1174_v38 = vpop.permute.xlu0 %1173 }
  0xd2   :  { %v3412_v39 = vmul.f32 %v1179_v37, %v52_v33  ;;  %v3411_v40 = vmul.f32 %v1174_v38, %v51_v34  ;;  %1498 = vperm.xlu1 %4338, %v596_v35   ;;  %1493 = vperm.xlu0 %4337, %v595_v36   ;;  %v68_v33 = vld [vmem:[%s9156_s1 + $0x1c8] sm:$0xff]  ;;  %v67_v34 = vld [vmem:[%s9156_s1 + $0x1c0] sm:$0xff] }
  0xd3   :  { %v612_v35 = vld [vmem:[%s9155_s0 + $0x3c8] sm:$0xff]  ;;  %v611_v36 = vld [vmem:[%s9155_s0 + $0x3c0] sm:$0xff] }
  0xd4   :  { %3893 = vst.msk [vmem:[%s9157_s2 + $0x148] sm:$0xff] %vm3851_vm0, %v3412_v39  ;;  %3892 = vst.msk [vmem:[%s9157_s2 + $0x140] sm:$0xff] %vm3851_vm0, %v3411_v40 }
  0xd5   :  { %v1189_v45 = vpop.permute.xlu1 %1188  ;;  %v1184_v46 = vpop.permute.xlu0 %1183 }
  0xd6   :  { %v3414_v47 = vmul.f32 %v1189_v45, %v54_v41  ;;  %v3413_v48 = vmul.f32 %v1184_v46, %v53_v42  ;;  %1508 = vperm.xlu1 %4338, %v598_v43   ;;  %1503 = vperm.xlu0 %4337, %v597_v44   ;;  %v70_v41 = vld [vmem:[%s9156_s1 + $0x1d8] sm:$0xff]  ;;  %v69_v42 = vld [vmem:[%s9156_s1 + $0x1d0] sm:$0xff] }
  0xd7   :  { %v614_v43 = vld [vmem:[%s9155_s0 + $0x3d8] sm:$0xff]  ;;  %v613_v44 = vld [vmem:[%s9155_s0 + $0x3d0] sm:$0xff] }
  0xd8   :  { %3895 = vst.msk [vmem:[%s9157_s2 + $0x158] sm:$0xff] %vm3851_vm0, %v3414_v47  ;;  %3894 = vst.msk [vmem:[%s9157_s2 + $0x150] sm:$0xff] %vm3851_vm0, %v3413_v48 }
  0xd9   :  { %v1199_v53 = vpop.permute.xlu1 %1198  ;;  %v1194_v54 = vpop.permute.xlu0 %1193 }
  0xda   :  { %v3416_v55 = vmul.f32 %v1199_v53, %v56_v49  ;;  %v3415_v56 = vmul.f32 %v1194_v54, %v55_v50  ;;  %1518 = vperm.xlu1 %4338, %v600_v51   ;;  %1513 = vperm.xlu0 %4337, %v599_v52   ;;  %v72_v49 = vld [vmem:[%s9156_s1 + $0x1e8] sm:$0xff]  ;;  %v71_v50 = vld [vmem:[%s9156_s1 + $0x1e0] sm:$0xff] }
  0xdb   :  { %v616_v51 = vld [vmem:[%s9155_s0 + $0x3e8] sm:$0xff]  ;;  %v615_v52 = vld [vmem:[%s9155_s0 + $0x3e0] sm:$0xff] }
  0xdc   :  { %3897 = vst.msk [vmem:[%s9157_s2 + $0x168] sm:$0xff] %vm3851_vm0, %v3416_v55  ;;  %3896 = vst.msk [vmem:[%s9157_s2 + $0x160] sm:$0xff] %vm3851_vm0, %v3415_v56 }
  0xdd   :  { %v1209_v61 = vpop.permute.xlu1 %1208  ;;  %v1204_v62 = vpop.permute.xlu0 %1203 }
  0xde   :  { %v3418_v63 = vmul.f32 %v1209_v61, %v58_v57  ;;  %v3417_v0 = vmul.f32 %v1204_v62, %v57_v58  ;;  %1528 = vperm.xlu1 %4338, %v602_v59   ;;  %1523 = vperm.xlu0 %4337, %v601_v60   ;;  %v74_v57 = vld [vmem:[%s9156_s1 + $0x1f8] sm:$0xff]  ;;  %v73_v58 = vld [vmem:[%s9156_s1 + $0x1f0] sm:$0xff] }
  0xdf   :  { %v618_v59 = vld [vmem:[%s9155_s0 + $0x3f8] sm:$0xff]  ;;  %v617_v60 = vld [vmem:[%s9155_s0 + $0x3f0] sm:$0xff] }
  0xe0   :  { %3899 = vst.msk [vmem:[%s9157_s2 + $0x178] sm:$0xff] %vm3851_vm0, %v3418_v63  ;;  %3898 = vst.msk [vmem:[%s9157_s2 + $0x170] sm:$0xff] %vm3851_vm0, %v3417_v0 }
  0xe1   :  { %v1219_v5 = vpop.permute.xlu1 %1218  ;;  %v1214_v6 = vpop.permute.xlu0 %1213 }
  0xe2   :  { %v3420_v7 = vmul.f32 %v1219_v5, %v60_v1  ;;  %v3419_v8 = vmul.f32 %v1214_v6, %v59_v2  ;;  %1538 = vperm.xlu1 %4338, %v604_v3   ;;  %1533 = vperm.xlu0 %4337, %v603_v4   ;;  %v76_v1 = vld [vmem:[%s9156_s1 + $0x208] sm:$0xff]  ;;  %v75_v2 = vld [vmem:[%s9156_s1 + $0x200] sm:$0xff] }
  0xe3   :  { %v620_v3 = vld [vmem:[%s9155_s0 + $0x408] sm:$0xff]  ;;  %v619_v4 = vld [vmem:[%s9155_s0 + $0x400] sm:$0xff] }
  0xe4   :  { %3901 = vst.msk [vmem:[%s9157_s2 + $0x188] sm:$0xff] %vm3851_vm0, %v3420_v7  ;;  %3900 = vst.msk [vmem:[%s9157_s2 + $0x180] sm:$0xff] %vm3851_vm0, %v3419_v8 }
  0xe5   :  { %v1229_v13 = vpop.permute.xlu1 %1228  ;;  %v1224_v14 = vpop.permute.xlu0 %1223 }
  0xe6   :  { %v3422_v15 = vmul.f32 %v1229_v13, %v62_v9  ;;  %v3421_v16 = vmul.f32 %v1224_v14, %v61_v10  ;;  %1548 = vperm.xlu1 %4338, %v606_v11   ;;  %1543 = vperm.xlu0 %4337, %v605_v12   ;;  %v78_v9 = vld [vmem:[%s9156_s1 + $0x218] sm:$0xff]  ;;  %v77_v10 = vld [vmem:[%s9156_s1 + $0x210] sm:$0xff] }
  0xe7   :  { %v622_v11 = vld [vmem:[%s9155_s0 + $0x418] sm:$0xff]  ;;  %v621_v12 = vld [vmem:[%s9155_s0 + $0x410] sm:$0xff] }
  0xe8   :  { %3903 = vst.msk [vmem:[%s9157_s2 + $0x198] sm:$0xff] %vm3851_vm0, %v3422_v15  ;;  %3902 = vst.msk [vmem:[%s9157_s2 + $0x190] sm:$0xff] %vm3851_vm0, %v3421_v16 }
  0xe9   :  { %v1239_v21 = vpop.permute.xlu1 %1238  ;;  %v1234_v22 = vpop.permute.xlu0 %1233 }
  0xea   :  { %v3424_v23 = vmul.f32 %v1239_v21, %v64_v17  ;;  %v3423_v24 = vmul.f32 %v1234_v22, %v63_v18  ;;  %1558 = vperm.xlu1 %4338, %v608_v19   ;;  %1553 = vperm.xlu0 %4337, %v607_v20   ;;  %v80_v17 = vld [vmem:[%s9156_s1 + $0x228] sm:$0xff]  ;;  %v79_v18 = vld [vmem:[%s9156_s1 + $0x220] sm:$0xff] }
  0xeb   :  { %v624_v19 = vld [vmem:[%s9155_s0 + $0x428] sm:$0xff]  ;;  %v623_v20 = vld [vmem:[%s9155_s0 + $0x420] sm:$0xff] }
  0xec   :  { %3905 = vst.msk [vmem:[%s9157_s2 + $0x1a8] sm:$0xff] %vm3851_vm0, %v3424_v23  ;;  %3904 = vst.msk [vmem:[%s9157_s2 + $0x1a0] sm:$0xff] %vm3851_vm0, %v3423_v24 }
  0xed   :  { %v1249_v29 = vpop.permute.xlu1 %1248  ;;  %v1244_v30 = vpop.permute.xlu0 %1243 }
  0xee   :  { %v3426_v31 = vmul.f32 %v1249_v29, %v66_v25  ;;  %v3425_v32 = vmul.f32 %v1244_v30, %v65_v26  ;;  %1568 = vperm.xlu1 %4338, %v610_v27   ;;  %1563 = vperm.xlu0 %4337, %v609_v28   ;;  %v82_v25 = vld [vmem:[%s9156_s1 + $0x238] sm:$0xff]  ;;  %v81_v26 = vld [vmem:[%s9156_s1 + $0x230] sm:$0xff] }
  0xef   :  { %v626_v27 = vld [vmem:[%s9155_s0 + $0x438] sm:$0xff]  ;;  %v625_v28 = vld [vmem:[%s9155_s0 + $0x430] sm:$0xff] }
  0xf0   :  { %3907 = vst.msk [vmem:[%s9157_s2 + $0x1b8] sm:$0xff] %vm3851_vm0, %v3426_v31  ;;  %3906 = vst.msk [vmem:[%s9157_s2 + $0x1b0] sm:$0xff] %vm3851_vm0, %v3425_v32 }
  0xf1   :  { %v1259_v37 = vpop.permute.xlu1 %1258  ;;  %v1254_v38 = vpop.permute.xlu0 %1253 }
  0xf2   :  { %v3428_v39 = vmul.f32 %v1259_v37, %v68_v33  ;;  %v3427_v40 = vmul.f32 %v1254_v38, %v67_v34  ;;  %1578 = vperm.xlu1 %4338, %v612_v35   ;;  %1573 = vperm.xlu0 %4337, %v611_v36   ;;  %v84_v33 = vld [vmem:[%s9156_s1 + $0x248] sm:$0xff]  ;;  %v83_v34 = vld [vmem:[%s9156_s1 + $0x240] sm:$0xff] }
  0xf3   :  { %v628_v35 = vld [vmem:[%s9155_s0 + $0x448] sm:$0xff]  ;;  %v627_v36 = vld [vmem:[%s9155_s0 + $0x440] sm:$0xff] }
  0xf4   :  { %3909 = vst.msk [vmem:[%s9157_s2 + $0x1c8] sm:$0xff] %vm3851_vm0, %v3428_v39  ;;  %3908 = vst.msk [vmem:[%s9157_s2 + $0x1c0] sm:$0xff] %vm3851_vm0, %v3427_v40 }
  0xf5   :  { %v1269_v45 = vpop.permute.xlu1 %1268  ;;  %v1264_v46 = vpop.permute.xlu0 %1263 }
  0xf6   :  { %v3430_v47 = vmul.f32 %v1269_v45, %v70_v41  ;;  %v3429_v48 = vmul.f32 %v1264_v46, %v69_v42  ;;  %1588 = vperm.xlu1 %4338, %v614_v43   ;;  %1583 = vperm.xlu0 %4337, %v613_v44   ;;  %v86_v41 = vld [vmem:[%s9156_s1 + $0x258] sm:$0xff]  ;;  %v85_v42 = vld [vmem:[%s9156_s1 + $0x250] sm:$0xff] }
  0xf7   :  { %v630_v43 = vld [vmem:[%s9155_s0 + $0x458] sm:$0xff]  ;;  %v629_v44 = vld [vmem:[%s9155_s0 + $0x450] sm:$0xff] }
  0xf8   :  { %3911 = vst.msk [vmem:[%s9157_s2 + $0x1d8] sm:$0xff] %vm3851_vm0, %v3430_v47  ;;  %3910 = vst.msk [vmem:[%s9157_s2 + $0x1d0] sm:$0xff] %vm3851_vm0, %v3429_v48 }
  0xf9   :  { %v1279_v53 = vpop.permute.xlu1 %1278  ;;  %v1274_v54 = vpop.permute.xlu0 %1273 }
  0xfa   :  { %v3432_v55 = vmul.f32 %v1279_v53, %v72_v49  ;;  %v3431_v56 = vmul.f32 %v1274_v54, %v71_v50  ;;  %1598 = vperm.xlu1 %4338, %v616_v51   ;;  %1593 = vperm.xlu0 %4337, %v615_v52   ;;  %v88_v49 = vld [vmem:[%s9156_s1 + $0x268] sm:$0xff]  ;;  %v87_v50 = vld [vmem:[%s9156_s1 + $0x260] sm:$0xff] }
  0xfb   :  { %v632_v51 = vld [vmem:[%s9155_s0 + $0x468] sm:$0xff]  ;;  %v631_v52 = vld [vmem:[%s9155_s0 + $0x460] sm:$0xff] }
  0xfc   :  { %3913 = vst.msk [vmem:[%s9157_s2 + $0x1e8] sm:$0xff] %vm3851_vm0, %v3432_v55  ;;  %3912 = vst.msk [vmem:[%s9157_s2 + $0x1e0] sm:$0xff] %vm3851_vm0, %v3431_v56 }
  0xfd   :  { %v1289_v61 = vpop.permute.xlu1 %1288  ;;  %v1284_v62 = vpop.permute.xlu0 %1283 }
  0xfe   :  { %v3434_v63 = vmul.f32 %v1289_v61, %v74_v57  ;;  %v3433_v0 = vmul.f32 %v1284_v62, %v73_v58  ;;  %1608 = vperm.xlu1 %4338, %v618_v59   ;;  %1603 = vperm.xlu0 %4337, %v617_v60   ;;  %v90_v57 = vld [vmem:[%s9156_s1 + $0x278] sm:$0xff]  ;;  %v89_v58 = vld [vmem:[%s9156_s1 + $0x270] sm:$0xff] }
  0xff   :  { %v634_v59 = vld [vmem:[%s9155_s0 + $0x478] sm:$0xff]  ;;  %v633_v60 = vld [vmem:[%s9155_s0 + $0x470] sm:$0xff] }
 0x100   :  { %3915 = vst.msk [vmem:[%s9157_s2 + $0x1f8] sm:$0xff] %vm3851_vm0, %v3434_v63  ;;  %3914 = vst.msk [vmem:[%s9157_s2 + $0x1f0] sm:$0xff] %vm3851_vm0, %v3433_v0 }
 0x101   :  { %v1299_v5 = vpop.permute.xlu1 %1298  ;;  %v1294_v6 = vpop.permute.xlu0 %1293 }
 0x102   :  { %v3436_v7 = vmul.f32 %v1299_v5, %v76_v1  ;;  %v3435_v8 = vmul.f32 %v1294_v6, %v75_v2  ;;  %1618 = vperm.xlu1 %4338, %v620_v3   ;;  %1613 = vperm.xlu0 %4337, %v619_v4   ;;  %v92_v1 = vld [vmem:[%s9156_s1 + $0x288] sm:$0xff]  ;;  %v91_v2 = vld [vmem:[%s9156_s1 + $0x280] sm:$0xff] }
 0x103   :  { %v636_v3 = vld [vmem:[%s9155_s0 + $0x488] sm:$0xff]  ;;  %v635_v4 = vld [vmem:[%s9155_s0 + $0x480] sm:$0xff] }
 0x104   :  { %3917 = vst.msk [vmem:[%s9157_s2 + $0x208] sm:$0xff] %vm3851_vm0, %v3436_v7  ;;  %3916 = vst.msk [vmem:[%s9157_s2 + $0x200] sm:$0xff] %vm3851_vm0, %v3435_v8 }
 0x105   :  { %v1309_v13 = vpop.permute.xlu1 %1308  ;;  %v1304_v14 = vpop.permute.xlu0 %1303 }
 0x106   :  { %v3438_v15 = vmul.f32 %v1309_v13, %v78_v9  ;;  %v3437_v16 = vmul.f32 %v1304_v14, %v77_v10  ;;  %1628 = vperm.xlu1 %4338, %v622_v11   ;;  %1623 = vperm.xlu0 %4337, %v621_v12   ;;  %v94_v9 = vld [vmem:[%s9156_s1 + $0x298] sm:$0xff]  ;;  %v93_v10 = vld [vmem:[%s9156_s1 + $0x290] sm:$0xff] }
 0x107   :  { %v638_v11 = vld [vmem:[%s9155_s0 + $0x498] sm:$0xff]  ;;  %v637_v12 = vld [vmem:[%s9155_s0 + $0x490] sm:$0xff] }
 0x108   :  { %3919 = vst.msk [vmem:[%s9157_s2 + $0x218] sm:$0xff] %vm3851_vm0, %v3438_v15  ;;  %3918 = vst.msk [vmem:[%s9157_s2 + $0x210] sm:$0xff] %vm3851_vm0, %v3437_v16 }
 0x109   :  { %v1319_v21 = vpop.permute.xlu1 %1318  ;;  %v1314_v22 = vpop.permute.xlu0 %1313 }
 0x10a   :  { %v3440_v23 = vmul.f32 %v1319_v21, %v80_v17  ;;  %v3439_v24 = vmul.f32 %v1314_v22, %v79_v18  ;;  %1638 = vperm.xlu1 %4338, %v624_v19   ;;  %1633 = vperm.xlu0 %4337, %v623_v20   ;;  %v96_v17 = vld [vmem:[%s9156_s1 + $0x2a8] sm:$0xff]  ;;  %v95_v18 = vld [vmem:[%s9156_s1 + $0x2a0] sm:$0xff] }
 0x10b   :  { %v640_v19 = vld [vmem:[%s9155_s0 + $0x4a8] sm:$0xff]  ;;  %v639_v20 = vld [vmem:[%s9155_s0 + $0x4a0] sm:$0xff] }
 0x10c   :  { %3921 = vst.msk [vmem:[%s9157_s2 + $0x228] sm:$0xff] %vm3851_vm0, %v3440_v23  ;;  %3920 = vst.msk [vmem:[%s9157_s2 + $0x220] sm:$0xff] %vm3851_vm0, %v3439_v24 }
 0x10d   :  { %v1329_v29 = vpop.permute.xlu1 %1328  ;;  %v1324_v30 = vpop.permute.xlu0 %1323 }
 0x10e   :  { %v3442_v31 = vmul.f32 %v1329_v29, %v82_v25  ;;  %v3441_v32 = vmul.f32 %v1324_v30, %v81_v26  ;;  %1648 = vperm.xlu1 %4338, %v626_v27   ;;  %1643 = vperm.xlu0 %4337, %v625_v28   ;;  %v98_v25 = vld [vmem:[%s9156_s1 + $0x2b8] sm:$0xff]  ;;  %v97_v26 = vld [vmem:[%s9156_s1 + $0x2b0] sm:$0xff] }
 0x10f   :  { %v642_v27 = vld [vmem:[%s9155_s0 + $0x4b8] sm:$0xff]  ;;  %v641_v28 = vld [vmem:[%s9155_s0 + $0x4b0] sm:$0xff] }
 0x110   :  { %3923 = vst.msk [vmem:[%s9157_s2 + $0x238] sm:$0xff] %vm3851_vm0, %v3442_v31  ;;  %3922 = vst.msk [vmem:[%s9157_s2 + $0x230] sm:$0xff] %vm3851_vm0, %v3441_v32 }
 0x111   :  { %v1339_v37 = vpop.permute.xlu1 %1338  ;;  %v1334_v38 = vpop.permute.xlu0 %1333 }
 0x112   :  { %v3444_v39 = vmul.f32 %v1339_v37, %v84_v33  ;;  %v3443_v40 = vmul.f32 %v1334_v38, %v83_v34  ;;  %1658 = vperm.xlu1 %4338, %v628_v35   ;;  %1653 = vperm.xlu0 %4337, %v627_v36   ;;  %v100_v33 = vld [vmem:[%s9156_s1 + $0x2c8] sm:$0xff]  ;;  %v99_v34 = vld [vmem:[%s9156_s1 + $0x2c0] sm:$0xff] }
 0x113   :  { %v644_v35 = vld [vmem:[%s9155_s0 + $0x4c8] sm:$0xff]  ;;  %v643_v36 = vld [vmem:[%s9155_s0 + $0x4c0] sm:$0xff] }
 0x114   :  { %3925 = vst.msk [vmem:[%s9157_s2 + $0x248] sm:$0xff] %vm3851_vm0, %v3444_v39  ;;  %3924 = vst.msk [vmem:[%s9157_s2 + $0x240] sm:$0xff] %vm3851_vm0, %v3443_v40 }
 0x115   :  { %v1349_v45 = vpop.permute.xlu1 %1348  ;;  %v1344_v46 = vpop.permute.xlu0 %1343 }
 0x116   :  { %v3446_v47 = vmul.f32 %v1349_v45, %v86_v41  ;;  %v3445_v48 = vmul.f32 %v1344_v46, %v85_v42  ;;  %1668 = vperm.xlu1 %4338, %v630_v43   ;;  %1663 = vperm.xlu0 %4337, %v629_v44   ;;  %v102_v41 = vld [vmem:[%s9156_s1 + $0x2d8] sm:$0xff]  ;;  %v101_v42 = vld [vmem:[%s9156_s1 + $0x2d0] sm:$0xff] }
 0x117   :  { %v646_v43 = vld [vmem:[%s9155_s0 + $0x4d8] sm:$0xff]  ;;  %v645_v44 = vld [vmem:[%s9155_s0 + $0x4d0] sm:$0xff] }
 0x118   :  { %3927 = vst.msk [vmem:[%s9157_s2 + $0x258] sm:$0xff] %vm3851_vm0, %v3446_v47  ;;  %3926 = vst.msk [vmem:[%s9157_s2 + $0x250] sm:$0xff] %vm3851_vm0, %v3445_v48 }
 0x119   :  { %v1359_v53 = vpop.permute.xlu1 %1358  ;;  %v1354_v54 = vpop.permute.xlu0 %1353 }
 0x11a   :  { %v3448_v55 = vmul.f32 %v1359_v53, %v88_v49  ;;  %v3447_v56 = vmul.f32 %v1354_v54, %v87_v50  ;;  %1678 = vperm.xlu1 %4338, %v632_v51   ;;  %1673 = vperm.xlu0 %4337, %v631_v52   ;;  %v104_v49 = vld [vmem:[%s9156_s1 + $0x2e8] sm:$0xff]  ;;  %v103_v50 = vld [vmem:[%s9156_s1 + $0x2e0] sm:$0xff] }
 0x11b   :  { %v648_v51 = vld [vmem:[%s9155_s0 + $0x4e8] sm:$0xff]  ;;  %v647_v52 = vld [vmem:[%s9155_s0 + $0x4e0] sm:$0xff] }
 0x11c   :  { %3929 = vst.msk [vmem:[%s9157_s2 + $0x268] sm:$0xff] %vm3851_vm0, %v3448_v55  ;;  %3928 = vst.msk [vmem:[%s9157_s2 + $0x260] sm:$0xff] %vm3851_vm0, %v3447_v56 }
 0x11d   :  { %v1369_v61 = vpop.permute.xlu1 %1368  ;;  %v1364_v62 = vpop.permute.xlu0 %1363 }
 0x11e   :  { %v3450_v63 = vmul.f32 %v1369_v61, %v90_v57  ;;  %v3449_v0 = vmul.f32 %v1364_v62, %v89_v58  ;;  %1688 = vperm.xlu1 %4338, %v634_v59   ;;  %1683 = vperm.xlu0 %4337, %v633_v60   ;;  %v106_v57 = vld [vmem:[%s9156_s1 + $0x2f8] sm:$0xff]  ;;  %v105_v58 = vld [vmem:[%s9156_s1 + $0x2f0] sm:$0xff] }
 0x11f   :  { %v650_v59 = vld [vmem:[%s9155_s0 + $0x4f8] sm:$0xff]  ;;  %v649_v60 = vld [vmem:[%s9155_s0 + $0x4f0] sm:$0xff] }
 0x120   :  { %3931 = vst.msk [vmem:[%s9157_s2 + $0x278] sm:$0xff] %vm3851_vm0, %v3450_v63  ;;  %3930 = vst.msk [vmem:[%s9157_s2 + $0x270] sm:$0xff] %vm3851_vm0, %v3449_v0 }
 0x121   :  { %v1379_v5 = vpop.permute.xlu1 %1378  ;;  %v1374_v6 = vpop.permute.xlu0 %1373 }
 0x122   :  { %v3452_v7 = vmul.f32 %v1379_v5, %v92_v1  ;;  %v3451_v8 = vmul.f32 %v1374_v6, %v91_v2  ;;  %1698 = vperm.xlu1 %4338, %v636_v3   ;;  %1693 = vperm.xlu0 %4337, %v635_v4   ;;  %v108_v1 = vld [vmem:[%s9156_s1 + $0x308] sm:$0xff]  ;;  %v107_v2 = vld [vmem:[%s9156_s1 + $0x300] sm:$0xff] }
 0x123   :  { %v652_v3 = vld [vmem:[%s9155_s0 + $0x508] sm:$0xff]  ;;  %v651_v4 = vld [vmem:[%s9155_s0 + $0x500] sm:$0xff] }
 0x124   :  { %3933 = vst.msk [vmem:[%s9157_s2 + $0x288] sm:$0xff] %vm3851_vm0, %v3452_v7  ;;  %3932 = vst.msk [vmem:[%s9157_s2 + $0x280] sm:$0xff] %vm3851_vm0, %v3451_v8 }
 0x125   :  { %v1389_v13 = vpop.permute.xlu1 %1388  ;;  %v1384_v14 = vpop.permute.xlu0 %1383 }
 0x126   :  { %v3454_v15 = vmul.f32 %v1389_v13, %v94_v9  ;;  %v3453_v16 = vmul.f32 %v1384_v14, %v93_v10  ;;  %1708 = vperm.xlu1 %4338, %v638_v11   ;;  %1703 = vperm.xlu0 %4337, %v637_v12   ;;  %v110_v9 = vld [vmem:[%s9156_s1 + $0x318] sm:$0xff]  ;;  %v109_v10 = vld [vmem:[%s9156_s1 + $0x310] sm:$0xff] }
 0x127   :  { %v654_v11 = vld [vmem:[%s9155_s0 + $0x518] sm:$0xff]  ;;  %v653_v12 = vld [vmem:[%s9155_s0 + $0x510] sm:$0xff] }
 0x128   :  { %3935 = vst.msk [vmem:[%s9157_s2 + $0x298] sm:$0xff] %vm3851_vm0, %v3454_v15  ;;  %3934 = vst.msk [vmem:[%s9157_s2 + $0x290] sm:$0xff] %vm3851_vm0, %v3453_v16 }
 0x129   :  { %v1399_v21 = vpop.permute.xlu1 %1398  ;;  %v1394_v22 = vpop.permute.xlu0 %1393 }
 0x12a   :  { %v3456_v23 = vmul.f32 %v1399_v21, %v96_v17  ;;  %v3455_v24 = vmul.f32 %v1394_v22, %v95_v18  ;;  %1718 = vperm.xlu1 %4338, %v640_v19   ;;  %1713 = vperm.xlu0 %4337, %v639_v20   ;;  %v112_v17 = vld [vmem:[%s9156_s1 + $0x328] sm:$0xff]  ;;  %v111_v18 = vld [vmem:[%s9156_s1 + $0x320] sm:$0xff] }
 0x12b   :  { %v656_v19 = vld [vmem:[%s9155_s0 + $0x528] sm:$0xff]  ;;  %v655_v20 = vld [vmem:[%s9155_s0 + $0x520] sm:$0xff] }
 0x12c   :  { %3937 = vst.msk [vmem:[%s9157_s2 + $0x2a8] sm:$0xff] %vm3851_vm0, %v3456_v23  ;;  %3936 = vst.msk [vmem:[%s9157_s2 + $0x2a0] sm:$0xff] %vm3851_vm0, %v3455_v24 }
 0x12d   :  { %v1409_v29 = vpop.permute.xlu1 %1408  ;;  %v1404_v30 = vpop.permute.xlu0 %1403 }
 0x12e   :  { %v3458_v31 = vmul.f32 %v1409_v29, %v98_v25  ;;  %v3457_v32 = vmul.f32 %v1404_v30, %v97_v26  ;;  %1728 = vperm.xlu1 %4338, %v642_v27   ;;  %1723 = vperm.xlu0 %4337, %v641_v28   ;;  %v114_v25 = vld [vmem:[%s9156_s1 + $0x338] sm:$0xff]  ;;  %v113_v26 = vld [vmem:[%s9156_s1 + $0x330] sm:$0xff] }
 0x12f   :  { %v658_v27 = vld [vmem:[%s9155_s0 + $0x538] sm:$0xff]  ;;  %v657_v28 = vld [vmem:[%s9155_s0 + $0x530] sm:$0xff] }
 0x130   :  { %3939 = vst.msk [vmem:[%s9157_s2 + $0x2b8] sm:$0xff] %vm3851_vm0, %v3458_v31  ;;  %3938 = vst.msk [vmem:[%s9157_s2 + $0x2b0] sm:$0xff] %vm3851_vm0, %v3457_v32 }
 0x131   :  { %v1419_v37 = vpop.permute.xlu1 %1418  ;;  %v1414_v38 = vpop.permute.xlu0 %1413 }
 0x132   :  { %v3460_v39 = vmul.f32 %v1419_v37, %v100_v33  ;;  %v3459_v40 = vmul.f32 %v1414_v38, %v99_v34  ;;  %1738 = vperm.xlu1 %4338, %v644_v35   ;;  %1733 = vperm.xlu0 %4337, %v643_v36   ;;  %v116_v33 = vld [vmem:[%s9156_s1 + $0x348] sm:$0xff]  ;;  %v115_v34 = vld [vmem:[%s9156_s1 + $0x340] sm:$0xff] }
 0x133   :  { %v660_v35 = vld [vmem:[%s9155_s0 + $0x548] sm:$0xff]  ;;  %v659_v36 = vld [vmem:[%s9155_s0 + $0x540] sm:$0xff] }
 0x134   :  { %3941 = vst.msk [vmem:[%s9157_s2 + $0x2c8] sm:$0xff] %vm3851_vm0, %v3460_v39  ;;  %3940 = vst.msk [vmem:[%s9157_s2 + $0x2c0] sm:$0xff] %vm3851_vm0, %v3459_v40 }
 0x135   :  { %v1429_v45 = vpop.permute.xlu1 %1428  ;;  %v1424_v46 = vpop.permute.xlu0 %1423 }
 0x136   :  { %v3462_v47 = vmul.f32 %v1429_v45, %v102_v41  ;;  %v3461_v48 = vmul.f32 %v1424_v46, %v101_v42  ;;  %1748 = vperm.xlu1 %4338, %v646_v43   ;;  %1743 = vperm.xlu0 %4337, %v645_v44   ;;  %v118_v41 = vld [vmem:[%s9156_s1 + $0x358] sm:$0xff]  ;;  %v117_v42 = vld [vmem:[%s9156_s1 + $0x350] sm:$0xff] }
 0x137   :  { %v662_v43 = vld [vmem:[%s9155_s0 + $0x558] sm:$0xff]  ;;  %v661_v44 = vld [vmem:[%s9155_s0 + $0x550] sm:$0xff] }
 0x138   :  { %3943 = vst.msk [vmem:[%s9157_s2 + $0x2d8] sm:$0xff] %vm3851_vm0, %v3462_v47  ;;  %3942 = vst.msk [vmem:[%s9157_s2 + $0x2d0] sm:$0xff] %vm3851_vm0, %v3461_v48 }
 0x139   :  { %v1439_v53 = vpop.permute.xlu1 %1438  ;;  %v1434_v54 = vpop.permute.xlu0 %1433 }
 0x13a   :  { %v3464_v55 = vmul.f32 %v1439_v53, %v104_v49  ;;  %v3463_v56 = vmul.f32 %v1434_v54, %v103_v50  ;;  %1758 = vperm.xlu1 %4338, %v648_v51   ;;  %1753 = vperm.xlu0 %4337, %v647_v52   ;;  %v120_v49 = vld [vmem:[%s9156_s1 + $0x368] sm:$0xff]  ;;  %v119_v50 = vld [vmem:[%s9156_s1 + $0x360] sm:$0xff] }
 0x13b   :  { %v664_v51 = vld [vmem:[%s9155_s0 + $0x568] sm:$0xff]  ;;  %v663_v52 = vld [vmem:[%s9155_s0 + $0x560] sm:$0xff] }
 0x13c   :  { %3945 = vst.msk [vmem:[%s9157_s2 + $0x2e8] sm:$0xff] %vm3851_vm0, %v3464_v55  ;;  %3944 = vst.msk [vmem:[%s9157_s2 + $0x2e0] sm:$0xff] %vm3851_vm0, %v3463_v56 }
 0x13d   :  { %v1449_v61 = vpop.permute.xlu1 %1448  ;;  %v1444_v62 = vpop.permute.xlu0 %1443 }
 0x13e   :  { %v3466_v63 = vmul.f32 %v1449_v61, %v106_v57  ;;  %v3465_v0 = vmul.f32 %v1444_v62, %v105_v58  ;;  %1768 = vperm.xlu1 %4338, %v650_v59   ;;  %1763 = vperm.xlu0 %4337, %v649_v60   ;;  %v122_v57 = vld [vmem:[%s9156_s1 + $0x378] sm:$0xff]  ;;  %v121_v58 = vld [vmem:[%s9156_s1 + $0x370] sm:$0xff] }
 0x13f   :  { %v666_v59 = vld [vmem:[%s9155_s0 + $0x578] sm:$0xff]  ;;  %v665_v60 = vld [vmem:[%s9155_s0 + $0x570] sm:$0xff] }
 0x140   :  { %3947 = vst.msk [vmem:[%s9157_s2 + $0x2f8] sm:$0xff] %vm3851_vm0, %v3466_v63  ;;  %3946 = vst.msk [vmem:[%s9157_s2 + $0x2f0] sm:$0xff] %vm3851_vm0, %v3465_v0 }
 0x141   :  { %v1459_v5 = vpop.permute.xlu1 %1458  ;;  %v1454_v6 = vpop.permute.xlu0 %1453 }
 0x142   :  { %v3468_v7 = vmul.f32 %v1459_v5, %v108_v1  ;;  %v3467_v8 = vmul.f32 %v1454_v6, %v107_v2  ;;  %1778 = vperm.xlu1 %4338, %v652_v3   ;;  %1773 = vperm.xlu0 %4337, %v651_v4   ;;  %v124_v1 = vld [vmem:[%s9156_s1 + $0x388] sm:$0xff]  ;;  %v123_v2 = vld [vmem:[%s9156_s1 + $0x380] sm:$0xff] }
 0x143   :  { %v668_v3 = vld [vmem:[%s9155_s0 + $0x588] sm:$0xff]  ;;  %v667_v4 = vld [vmem:[%s9155_s0 + $0x580] sm:$0xff] }
 0x144   :  { %3949 = vst.msk [vmem:[%s9157_s2 + $0x308] sm:$0xff] %vm3851_vm0, %v3468_v7  ;;  %3948 = vst.msk [vmem:[%s9157_s2 + $0x300] sm:$0xff] %vm3851_vm0, %v3467_v8 }
 0x145   :  { %v1469_v13 = vpop.permute.xlu1 %1468  ;;  %v1464_v14 = vpop.permute.xlu0 %1463 }
 0x146   :  { %v3470_v15 = vmul.f32 %v1469_v13, %v110_v9  ;;  %v3469_v16 = vmul.f32 %v1464_v14, %v109_v10  ;;  %1788 = vperm.xlu1 %4338, %v654_v11   ;;  %1783 = vperm.xlu0 %4337, %v653_v12   ;;  %v126_v9 = vld [vmem:[%s9156_s1 + $0x398] sm:$0xff]  ;;  %v125_v10 = vld [vmem:[%s9156_s1 + $0x390] sm:$0xff] }
 0x147   :  { %v670_v11 = vld [vmem:[%s9155_s0 + $0x598] sm:$0xff]  ;;  %v669_v12 = vld [vmem:[%s9155_s0 + $0x590] sm:$0xff] }
 0x148   :  { %3951 = vst.msk [vmem:[%s9157_s2 + $0x318] sm:$0xff] %vm3851_vm0, %v3470_v15  ;;  %3950 = vst.msk [vmem:[%s9157_s2 + $0x310] sm:$0xff] %vm3851_vm0, %v3469_v16 }
 0x149   :  { %v1479_v21 = vpop.permute.xlu1 %1478  ;;  %v1474_v22 = vpop.permute.xlu0 %1473 }
 0x14a   :  { %v3472_v23 = vmul.f32 %v1479_v21, %v112_v17  ;;  %v3471_v24 = vmul.f32 %v1474_v22, %v111_v18  ;;  %1798 = vperm.xlu1 %4338, %v656_v19   ;;  %1793 = vperm.xlu0 %4337, %v655_v20   ;;  %v128_v17 = vld [vmem:[%s9156_s1 + $0x3a8] sm:$0xff]  ;;  %v127_v18 = vld [vmem:[%s9156_s1 + $0x3a0] sm:$0xff] }
 0x14b   :  { %v672_v19 = vld [vmem:[%s9155_s0 + $0x5a8] sm:$0xff]  ;;  %v671_v20 = vld [vmem:[%s9155_s0 + $0x5a0] sm:$0xff] }
 0x14c   :  { %3953 = vst.msk [vmem:[%s9157_s2 + $0x328] sm:$0xff] %vm3851_vm0, %v3472_v23  ;;  %3952 = vst.msk [vmem:[%s9157_s2 + $0x320] sm:$0xff] %vm3851_vm0, %v3471_v24 }
 0x14d   :  { %v1489_v29 = vpop.permute.xlu1 %1488  ;;  %v1484_v30 = vpop.permute.xlu0 %1483 }
 0x14e   :  { %v3474_v31 = vmul.f32 %v1489_v29, %v114_v25  ;;  %v3473_v32 = vmul.f32 %v1484_v30, %v113_v26  ;;  %1808 = vperm.xlu1 %4338, %v658_v27   ;;  %1803 = vperm.xlu0 %4337, %v657_v28   ;;  %v130_v25 = vld [vmem:[%s9156_s1 + $0x3b8] sm:$0xff]  ;;  %v129_v26 = vld [vmem:[%s9156_s1 + $0x3b0] sm:$0xff] }
 0x14f   :  { %v674_v27 = vld [vmem:[%s9155_s0 + $0x5b8] sm:$0xff]  ;;  %v673_v28 = vld [vmem:[%s9155_s0 + $0x5b0] sm:$0xff] }
 0x150   :  { %3955 = vst.msk [vmem:[%s9157_s2 + $0x338] sm:$0xff] %vm3851_vm0, %v3474_v31  ;;  %3954 = vst.msk [vmem:[%s9157_s2 + $0x330] sm:$0xff] %vm3851_vm0, %v3473_v32 }
 0x151   :  { %v1499_v37 = vpop.permute.xlu1 %1498  ;;  %v1494_v38 = vpop.permute.xlu0 %1493 }
 0x152   :  { %v3476_v39 = vmul.f32 %v1499_v37, %v116_v33  ;;  %v3475_v40 = vmul.f32 %v1494_v38, %v115_v34  ;;  %1818 = vperm.xlu1 %4338, %v660_v35   ;;  %1813 = vperm.xlu0 %4337, %v659_v36   ;;  %v132_v33 = vld [vmem:[%s9156_s1 + $0x3c8] sm:$0xff]  ;;  %v131_v34 = vld [vmem:[%s9156_s1 + $0x3c0] sm:$0xff] }
 0x153   :  { %v676_v35 = vld [vmem:[%s9155_s0 + $0x5c8] sm:$0xff]  ;;  %v675_v36 = vld [vmem:[%s9155_s0 + $0x5c0] sm:$0xff] }
 0x154   :  { %3957 = vst.msk [vmem:[%s9157_s2 + $0x348] sm:$0xff] %vm3851_vm0, %v3476_v39  ;;  %3956 = vst.msk [vmem:[%s9157_s2 + $0x340] sm:$0xff] %vm3851_vm0, %v3475_v40 }
 0x155   :  { %v1509_v45 = vpop.permute.xlu1 %1508  ;;  %v1504_v46 = vpop.permute.xlu0 %1503 }
 0x156   :  { %v3478_v47 = vmul.f32 %v1509_v45, %v118_v41  ;;  %v3477_v48 = vmul.f32 %v1504_v46, %v117_v42  ;;  %1828 = vperm.xlu1 %4338, %v662_v43   ;;  %1823 = vperm.xlu0 %4337, %v661_v44   ;;  %v134_v41 = vld [vmem:[%s9156_s1 + $0x3d8] sm:$0xff]  ;;  %v133_v42 = vld [vmem:[%s9156_s1 + $0x3d0] sm:$0xff] }
 0x157   :  { %v678_v43 = vld [vmem:[%s9155_s0 + $0x5d8] sm:$0xff]  ;;  %v677_v44 = vld [vmem:[%s9155_s0 + $0x5d0] sm:$0xff] }
 0x158   :  { %3959 = vst.msk [vmem:[%s9157_s2 + $0x358] sm:$0xff] %vm3851_vm0, %v3478_v47  ;;  %3958 = vst.msk [vmem:[%s9157_s2 + $0x350] sm:$0xff] %vm3851_vm0, %v3477_v48 }
 0x159   :  { %v1519_v53 = vpop.permute.xlu1 %1518  ;;  %v1514_v54 = vpop.permute.xlu0 %1513 }
 0x15a   :  { %v3480_v55 = vmul.f32 %v1519_v53, %v120_v49  ;;  %v3479_v56 = vmul.f32 %v1514_v54, %v119_v50  ;;  %1838 = vperm.xlu1 %4338, %v664_v51   ;;  %1833 = vperm.xlu0 %4337, %v663_v52   ;;  %v136_v49 = vld [vmem:[%s9156_s1 + $0x3e8] sm:$0xff]  ;;  %v135_v50 = vld [vmem:[%s9156_s1 + $0x3e0] sm:$0xff] }
 0x15b   :  { %v680_v51 = vld [vmem:[%s9155_s0 + $0x5e8] sm:$0xff]  ;;  %v679_v52 = vld [vmem:[%s9155_s0 + $0x5e0] sm:$0xff] }
 0x15c   :  { %3961 = vst.msk [vmem:[%s9157_s2 + $0x368] sm:$0xff] %vm3851_vm0, %v3480_v55  ;;  %3960 = vst.msk [vmem:[%s9157_s2 + $0x360] sm:$0xff] %vm3851_vm0, %v3479_v56 }
 0x15d   :  { %v1529_v61 = vpop.permute.xlu1 %1528  ;;  %v1524_v62 = vpop.permute.xlu0 %1523 }
 0x15e   :  { %v3482_v63 = vmul.f32 %v1529_v61, %v122_v57  ;;  %v3481_v0 = vmul.f32 %v1524_v62, %v121_v58  ;;  %1848 = vperm.xlu1 %4338, %v666_v59   ;;  %1843 = vperm.xlu0 %4337, %v665_v60   ;;  %v138_v57 = vld [vmem:[%s9156_s1 + $0x3f8] sm:$0xff]  ;;  %v137_v58 = vld [vmem:[%s9156_s1 + $0x3f0] sm:$0xff] }
 0x15f   :  { %v682_v59 = vld [vmem:[%s9155_s0 + $0x5f8] sm:$0xff]  ;;  %v681_v60 = vld [vmem:[%s9155_s0 + $0x5f0] sm:$0xff] }
 0x160   :  { %3963 = vst.msk [vmem:[%s9157_s2 + $0x378] sm:$0xff] %vm3851_vm0, %v3482_v63  ;;  %3962 = vst.msk [vmem:[%s9157_s2 + $0x370] sm:$0xff] %vm3851_vm0, %v3481_v0 }
 0x161   :  { %v1539_v5 = vpop.permute.xlu1 %1538  ;;  %v1534_v6 = vpop.permute.xlu0 %1533 }
 0x162   :  { %v3484_v7 = vmul.f32 %v1539_v5, %v124_v1  ;;  %v3483_v8 = vmul.f32 %v1534_v6, %v123_v2  ;;  %1858 = vperm.xlu1 %4338, %v668_v3   ;;  %1853 = vperm.xlu0 %4337, %v667_v4   ;;  %v140_v1 = vld [vmem:[%s9156_s1 + $0x408] sm:$0xff]  ;;  %v139_v2 = vld [vmem:[%s9156_s1 + $0x400] sm:$0xff] }
 0x163   :  { %v684_v3 = vld [vmem:[%s9155_s0 + $0x608] sm:$0xff]  ;;  %v683_v4 = vld [vmem:[%s9155_s0 + $0x600] sm:$0xff] }
 0x164   :  { %3965 = vst.msk [vmem:[%s9157_s2 + $0x388] sm:$0xff] %vm3851_vm0, %v3484_v7  ;;  %3964 = vst.msk [vmem:[%s9157_s2 + $0x380] sm:$0xff] %vm3851_vm0, %v3483_v8 }
 0x165   :  { %v1549_v13 = vpop.permute.xlu1 %1548  ;;  %v1544_v14 = vpop.permute.xlu0 %1543 }
 0x166   :  { %v3486_v15 = vmul.f32 %v1549_v13, %v126_v9  ;;  %v3485_v16 = vmul.f32 %v1544_v14, %v125_v10  ;;  %1868 = vperm.xlu1 %4338, %v670_v11   ;;  %1863 = vperm.xlu0 %4337, %v669_v12   ;;  %v142_v9 = vld [vmem:[%s9156_s1 + $0x418] sm:$0xff]  ;;  %v141_v10 = vld [vmem:[%s9156_s1 + $0x410] sm:$0xff] }
 0x167   :  { %v686_v11 = vld [vmem:[%s9155_s0 + $0x618] sm:$0xff]  ;;  %v685_v12 = vld [vmem:[%s9155_s0 + $0x610] sm:$0xff] }
 0x168   :  { %3967 = vst.msk [vmem:[%s9157_s2 + $0x398] sm:$0xff] %vm3851_vm0, %v3486_v15  ;;  %3966 = vst.msk [vmem:[%s9157_s2 + $0x390] sm:$0xff] %vm3851_vm0, %v3485_v16 }
 0x169   :  { %v1559_v21 = vpop.permute.xlu1 %1558  ;;  %v1554_v22 = vpop.permute.xlu0 %1553 }
 0x16a   :  { %v3488_v23 = vmul.f32 %v1559_v21, %v128_v17  ;;  %v3487_v24 = vmul.f32 %v1554_v22, %v127_v18  ;;  %1878 = vperm.xlu1 %4338, %v672_v19   ;;  %1873 = vperm.xlu0 %4337, %v671_v20   ;;  %v144_v17 = vld [vmem:[%s9156_s1 + $0x428] sm:$0xff]  ;;  %v143_v18 = vld [vmem:[%s9156_s1 + $0x420] sm:$0xff] }
 0x16b   :  { %v688_v19 = vld [vmem:[%s9155_s0 + $0x628] sm:$0xff]  ;;  %v687_v20 = vld [vmem:[%s9155_s0 + $0x620] sm:$0xff] }
 0x16c   :  { %3969 = vst.msk [vmem:[%s9157_s2 + $0x3a8] sm:$0xff] %vm3851_vm0, %v3488_v23  ;;  %3968 = vst.msk [vmem:[%s9157_s2 + $0x3a0] sm:$0xff] %vm3851_vm0, %v3487_v24 }
 0x16d   :  { %v1569_v29 = vpop.permute.xlu1 %1568  ;;  %v1564_v30 = vpop.permute.xlu0 %1563 }
 0x16e   :  { %v3490_v31 = vmul.f32 %v1569_v29, %v130_v25  ;;  %v3489_v32 = vmul.f32 %v1564_v30, %v129_v26  ;;  %1888 = vperm.xlu1 %4338, %v674_v27   ;;  %1883 = vperm.xlu0 %4337, %v673_v28   ;;  %v146_v25 = vld [vmem:[%s9156_s1 + $0x438] sm:$0xff]  ;;  %v145_v26 = vld [vmem:[%s9156_s1 + $0x430] sm:$0xff] }
 0x16f   :  { %v690_v27 = vld [vmem:[%s9155_s0 + $0x638] sm:$0xff]  ;;  %v689_v28 = vld [vmem:[%s9155_s0 + $0x630] sm:$0xff] }
 0x170   :  { %3971 = vst.msk [vmem:[%s9157_s2 + $0x3b8] sm:$0xff] %vm3851_vm0, %v3490_v31  ;;  %3970 = vst.msk [vmem:[%s9157_s2 + $0x3b0] sm:$0xff] %vm3851_vm0, %v3489_v32 }
 0x171   :  { %v1579_v37 = vpop.permute.xlu1 %1578  ;;  %v1574_v38 = vpop.permute.xlu0 %1573 }
 0x172   :  { %v3492_v39 = vmul.f32 %v1579_v37, %v132_v33  ;;  %v3491_v40 = vmul.f32 %v1574_v38, %v131_v34  ;;  %1898 = vperm.xlu1 %4338, %v676_v35   ;;  %1893 = vperm.xlu0 %4337, %v675_v36   ;;  %v148_v33 = vld [vmem:[%s9156_s1 + $0x448] sm:$0xff]  ;;  %v147_v34 = vld [vmem:[%s9156_s1 + $0x440] sm:$0xff] }
 0x173   :  { %v692_v35 = vld [vmem:[%s9155_s0 + $0x648] sm:$0xff]  ;;  %v691_v36 = vld [vmem:[%s9155_s0 + $0x640] sm:$0xff] }
 0x174   :  { %3973 = vst.msk [vmem:[%s9157_s2 + $0x3c8] sm:$0xff] %vm3851_vm0, %v3492_v39  ;;  %3972 = vst.msk [vmem:[%s9157_s2 + $0x3c0] sm:$0xff] %vm3851_vm0, %v3491_v40 }
 0x175   :  { %v1589_v45 = vpop.permute.xlu1 %1588  ;;  %v1584_v46 = vpop.permute.xlu0 %1583 }
 0x176   :  { %v3494_v47 = vmul.f32 %v1589_v45, %v134_v41  ;;  %v3493_v48 = vmul.f32 %v1584_v46, %v133_v42  ;;  %1908 = vperm.xlu1 %4338, %v678_v43   ;;  %1903 = vperm.xlu0 %4337, %v677_v44   ;;  %v150_v41 = vld [vmem:[%s9156_s1 + $0x458] sm:$0xff]  ;;  %v149_v42 = vld [vmem:[%s9156_s1 + $0x450] sm:$0xff] }
 0x177   :  { %v694_v43 = vld [vmem:[%s9155_s0 + $0x658] sm:$0xff]  ;;  %v693_v44 = vld [vmem:[%s9155_s0 + $0x650] sm:$0xff] }
 0x178   :  { %3975 = vst.msk [vmem:[%s9157_s2 + $0x3d8] sm:$0xff] %vm3851_vm0, %v3494_v47  ;;  %3974 = vst.msk [vmem:[%s9157_s2 + $0x3d0] sm:$0xff] %vm3851_vm0, %v3493_v48 }
 0x179   :  { %v1599_v53 = vpop.permute.xlu1 %1598  ;;  %v1594_v54 = vpop.permute.xlu0 %1593 }
 0x17a   :  { %v3496_v55 = vmul.f32 %v1599_v53, %v136_v49  ;;  %v3495_v56 = vmul.f32 %v1594_v54, %v135_v50  ;;  %1918 = vperm.xlu1 %4338, %v680_v51   ;;  %1913 = vperm.xlu0 %4337, %v679_v52   ;;  %v152_v49 = vld [vmem:[%s9156_s1 + $0x468] sm:$0xff]  ;;  %v151_v50 = vld [vmem:[%s9156_s1 + $0x460] sm:$0xff] }
 0x17b   :  { %v696_v51 = vld [vmem:[%s9155_s0 + $0x668] sm:$0xff]  ;;  %v695_v52 = vld [vmem:[%s9155_s0 + $0x660] sm:$0xff] }
 0x17c   :  { %3977 = vst.msk [vmem:[%s9157_s2 + $0x3e8] sm:$0xff] %vm3851_vm0, %v3496_v55  ;;  %3976 = vst.msk [vmem:[%s9157_s2 + $0x3e0] sm:$0xff] %vm3851_vm0, %v3495_v56 }
 0x17d   :  { %v1609_v61 = vpop.permute.xlu1 %1608  ;;  %v1604_v62 = vpop.permute.xlu0 %1603 }
 0x17e   :  { %v3498_v63 = vmul.f32 %v1609_v61, %v138_v57  ;;  %v3497_v0 = vmul.f32 %v1604_v62, %v137_v58  ;;  %1928 = vperm.xlu1 %4338, %v682_v59   ;;  %1923 = vperm.xlu0 %4337, %v681_v60   ;;  %v154_v57 = vld [vmem:[%s9156_s1 + $0x478] sm:$0xff]  ;;  %v153_v58 = vld [vmem:[%s9156_s1 + $0x470] sm:$0xff] }
 0x17f   :  { %v698_v59 = vld [vmem:[%s9155_s0 + $0x678] sm:$0xff]  ;;  %v697_v60 = vld [vmem:[%s9155_s0 + $0x670] sm:$0xff] }
 0x180   :  { %3979 = vst.msk [vmem:[%s9157_s2 + $0x3f8] sm:$0xff] %vm3851_vm0, %v3498_v63  ;;  %3978 = vst.msk [vmem:[%s9157_s2 + $0x3f0] sm:$0xff] %vm3851_vm0, %v3497_v0 }
 0x181   :  { %v1619_v5 = vpop.permute.xlu1 %1618  ;;  %v1614_v6 = vpop.permute.xlu0 %1613 }
 0x182   :  { %v3500_v7 = vmul.f32 %v1619_v5, %v140_v1  ;;  %v3499_v8 = vmul.f32 %v1614_v6, %v139_v2  ;;  %1938 = vperm.xlu1 %4338, %v684_v3   ;;  %1933 = vperm.xlu0 %4337, %v683_v4   ;;  %v156_v1 = vld [vmem:[%s9156_s1 + $0x488] sm:$0xff]  ;;  %v155_v2 = vld [vmem:[%s9156_s1 + $0x480] sm:$0xff] }
 0x183   :  { %v700_v3 = vld [vmem:[%s9155_s0 + $0x688] sm:$0xff]  ;;  %v699_v4 = vld [vmem:[%s9155_s0 + $0x680] sm:$0xff] }
 0x184   :  { %3981 = vst.msk [vmem:[%s9157_s2 + $0x408] sm:$0xff] %vm3851_vm0, %v3500_v7  ;;  %3980 = vst.msk [vmem:[%s9157_s2 + $0x400] sm:$0xff] %vm3851_vm0, %v3499_v8 }
 0x185   :  { %v1629_v13 = vpop.permute.xlu1 %1628  ;;  %v1624_v14 = vpop.permute.xlu0 %1623 }
 0x186   :  { %v3502_v15 = vmul.f32 %v1629_v13, %v142_v9  ;;  %v3501_v16 = vmul.f32 %v1624_v14, %v141_v10  ;;  %1948 = vperm.xlu1 %4338, %v686_v11   ;;  %1943 = vperm.xlu0 %4337, %v685_v12   ;;  %v158_v9 = vld [vmem:[%s9156_s1 + $0x498] sm:$0xff]  ;;  %v157_v10 = vld [vmem:[%s9156_s1 + $0x490] sm:$0xff] }
 0x187   :  { %v702_v11 = vld [vmem:[%s9155_s0 + $0x698] sm:$0xff]  ;;  %v701_v12 = vld [vmem:[%s9155_s0 + $0x690] sm:$0xff] }
 0x188   :  { %3983 = vst.msk [vmem:[%s9157_s2 + $0x418] sm:$0xff] %vm3851_vm0, %v3502_v15  ;;  %3982 = vst.msk [vmem:[%s9157_s2 + $0x410] sm:$0xff] %vm3851_vm0, %v3501_v16 }
 0x189   :  { %v1639_v21 = vpop.permute.xlu1 %1638  ;;  %v1634_v22 = vpop.permute.xlu0 %1633 }
 0x18a   :  { %v3504_v23 = vmul.f32 %v1639_v21, %v144_v17  ;;  %v3503_v24 = vmul.f32 %v1634_v22, %v143_v18  ;;  %1958 = vperm.xlu1 %4338, %v688_v19   ;;  %1953 = vperm.xlu0 %4337, %v687_v20   ;;  %v160_v17 = vld [vmem:[%s9156_s1 + $0x4a8] sm:$0xff]  ;;  %v159_v18 = vld [vmem:[%s9156_s1 + $0x4a0] sm:$0xff] }
 0x18b   :  { %v704_v19 = vld [vmem:[%s9155_s0 + $0x6a8] sm:$0xff]  ;;  %v703_v20 = vld [vmem:[%s9155_s0 + $0x6a0] sm:$0xff] }
 0x18c   :  { %3985 = vst.msk [vmem:[%s9157_s2 + $0x428] sm:$0xff] %vm3851_vm0, %v3504_v23  ;;  %3984 = vst.msk [vmem:[%s9157_s2 + $0x420] sm:$0xff] %vm3851_vm0, %v3503_v24 }
 0x18d   :  { %v1649_v29 = vpop.permute.xlu1 %1648  ;;  %v1644_v30 = vpop.permute.xlu0 %1643 }
 0x18e   :  { %v3506_v31 = vmul.f32 %v1649_v29, %v146_v25  ;;  %v3505_v32 = vmul.f32 %v1644_v30, %v145_v26  ;;  %1968 = vperm.xlu1 %4338, %v690_v27   ;;  %1963 = vperm.xlu0 %4337, %v689_v28   ;;  %v162_v25 = vld [vmem:[%s9156_s1 + $0x4b8] sm:$0xff]  ;;  %v161_v26 = vld [vmem:[%s9156_s1 + $0x4b0] sm:$0xff] }
 0x18f   :  { %v706_v27 = vld [vmem:[%s9155_s0 + $0x6b8] sm:$0xff]  ;;  %v705_v28 = vld [vmem:[%s9155_s0 + $0x6b0] sm:$0xff] }
 0x190   :  { %3987 = vst.msk [vmem:[%s9157_s2 + $0x438] sm:$0xff] %vm3851_vm0, %v3506_v31  ;;  %3986 = vst.msk [vmem:[%s9157_s2 + $0x430] sm:$0xff] %vm3851_vm0, %v3505_v32 }
 0x191   :  { %v1659_v37 = vpop.permute.xlu1 %1658  ;;  %v1654_v38 = vpop.permute.xlu0 %1653 }
 0x192   :  { %v3508_v39 = vmul.f32 %v1659_v37, %v148_v33  ;;  %v3507_v40 = vmul.f32 %v1654_v38, %v147_v34  ;;  %1978 = vperm.xlu1 %4338, %v692_v35   ;;  %1973 = vperm.xlu0 %4337, %v691_v36   ;;  %v164_v33 = vld [vmem:[%s9156_s1 + $0x4c8] sm:$0xff]  ;;  %v163_v34 = vld [vmem:[%s9156_s1 + $0x4c0] sm:$0xff] }
 0x193   :  { %v708_v35 = vld [vmem:[%s9155_s0 + $0x6c8] sm:$0xff]  ;;  %v707_v36 = vld [vmem:[%s9155_s0 + $0x6c0] sm:$0xff] }
 0x194   :  { %3989 = vst.msk [vmem:[%s9157_s2 + $0x448] sm:$0xff] %vm3851_vm0, %v3508_v39  ;;  %3988 = vst.msk [vmem:[%s9157_s2 + $0x440] sm:$0xff] %vm3851_vm0, %v3507_v40 }
 0x195   :  { %v1669_v45 = vpop.permute.xlu1 %1668  ;;  %v1664_v46 = vpop.permute.xlu0 %1663 }
 0x196   :  { %v3510_v47 = vmul.f32 %v1669_v45, %v150_v41  ;;  %v3509_v48 = vmul.f32 %v1664_v46, %v149_v42  ;;  %1988 = vperm.xlu1 %4338, %v694_v43   ;;  %1983 = vperm.xlu0 %4337, %v693_v44   ;;  %v166_v41 = vld [vmem:[%s9156_s1 + $0x4d8] sm:$0xff]  ;;  %v165_v42 = vld [vmem:[%s9156_s1 + $0x4d0] sm:$0xff] }
 0x197   :  { %v710_v43 = vld [vmem:[%s9155_s0 + $0x6d8] sm:$0xff]  ;;  %v709_v44 = vld [vmem:[%s9155_s0 + $0x6d0] sm:$0xff] }
 0x198   :  { %3991 = vst.msk [vmem:[%s9157_s2 + $0x458] sm:$0xff] %vm3851_vm0, %v3510_v47  ;;  %3990 = vst.msk [vmem:[%s9157_s2 + $0x450] sm:$0xff] %vm3851_vm0, %v3509_v48 }
 0x199   :  { %v1679_v53 = vpop.permute.xlu1 %1678  ;;  %v1674_v54 = vpop.permute.xlu0 %1673 }
 0x19a   :  { %v3512_v55 = vmul.f32 %v1679_v53, %v152_v49  ;;  %v3511_v56 = vmul.f32 %v1674_v54, %v151_v50  ;;  %1998 = vperm.xlu1 %4338, %v696_v51   ;;  %1993 = vperm.xlu0 %4337, %v695_v52   ;;  %v168_v49 = vld [vmem:[%s9156_s1 + $0x4e8] sm:$0xff]  ;;  %v167_v50 = vld [vmem:[%s9156_s1 + $0x4e0] sm:$0xff] }
 0x19b   :  { %v712_v51 = vld [vmem:[%s9155_s0 + $0x6e8] sm:$0xff]  ;;  %v711_v52 = vld [vmem:[%s9155_s0 + $0x6e0] sm:$0xff] }
 0x19c   :  { %3993 = vst.msk [vmem:[%s9157_s2 + $0x468] sm:$0xff] %vm3851_vm0, %v3512_v55  ;;  %3992 = vst.msk [vmem:[%s9157_s2 + $0x460] sm:$0xff] %vm3851_vm0, %v3511_v56 }
 0x19d   :  { %v1689_v61 = vpop.permute.xlu1 %1688  ;;  %v1684_v62 = vpop.permute.xlu0 %1683 }
 0x19e   :  { %v3514_v63 = vmul.f32 %v1689_v61, %v154_v57  ;;  %v3513_v0 = vmul.f32 %v1684_v62, %v153_v58  ;;  %2008 = vperm.xlu1 %4338, %v698_v59   ;;  %2003 = vperm.xlu0 %4337, %v697_v60   ;;  %v170_v57 = vld [vmem:[%s9156_s1 + $0x4f8] sm:$0xff]  ;;  %v169_v58 = vld [vmem:[%s9156_s1 + $0x4f0] sm:$0xff] }
 0x19f   :  { %v714_v59 = vld [vmem:[%s9155_s0 + $0x6f8] sm:$0xff]  ;;  %v713_v60 = vld [vmem:[%s9155_s0 + $0x6f0] sm:$0xff] }
 0x1a0   :  { %3995 = vst.msk [vmem:[%s9157_s2 + $0x478] sm:$0xff] %vm3851_vm0, %v3514_v63  ;;  %3994 = vst.msk [vmem:[%s9157_s2 + $0x470] sm:$0xff] %vm3851_vm0, %v3513_v0 }
 0x1a1   :  { %v1699_v5 = vpop.permute.xlu1 %1698  ;;  %v1694_v6 = vpop.permute.xlu0 %1693 }
 0x1a2   :  { %v3516_v7 = vmul.f32 %v1699_v5, %v156_v1  ;;  %v3515_v8 = vmul.f32 %v1694_v6, %v155_v2  ;;  %2018 = vperm.xlu1 %4338, %v700_v3   ;;  %2013 = vperm.xlu0 %4337, %v699_v4   ;;  %v172_v1 = vld [vmem:[%s9156_s1 + $0x508] sm:$0xff]  ;;  %v171_v2 = vld [vmem:[%s9156_s1 + $0x500] sm:$0xff] }
 0x1a3   :  { %v716_v3 = vld [vmem:[%s9155_s0 + $0x708] sm:$0xff]  ;;  %v715_v4 = vld [vmem:[%s9155_s0 + $0x700] sm:$0xff] }
 0x1a4   :  { %3997 = vst.msk [vmem:[%s9157_s2 + $0x488] sm:$0xff] %vm3851_vm0, %v3516_v7  ;;  %3996 = vst.msk [vmem:[%s9157_s2 + $0x480] sm:$0xff] %vm3851_vm0, %v3515_v8 }
 0x1a5   :  { %v1709_v13 = vpop.permute.xlu1 %1708  ;;  %v1704_v14 = vpop.permute.xlu0 %1703 }
 0x1a6   :  { %v3518_v15 = vmul.f32 %v1709_v13, %v158_v9  ;;  %v3517_v16 = vmul.f32 %v1704_v14, %v157_v10  ;;  %2028 = vperm.xlu1 %4338, %v702_v11   ;;  %2023 = vperm.xlu0 %4337, %v701_v12   ;;  %v174_v9 = vld [vmem:[%s9156_s1 + $0x518] sm:$0xff]  ;;  %v173_v10 = vld [vmem:[%s9156_s1 + $0x510] sm:$0xff] }
 0x1a7   :  { %v718_v11 = vld [vmem:[%s9155_s0 + $0x718] sm:$0xff]  ;;  %v717_v12 = vld [vmem:[%s9155_s0 + $0x710] sm:$0xff] }
 0x1a8   :  { %3999 = vst.msk [vmem:[%s9157_s2 + $0x498] sm:$0xff] %vm3851_vm0, %v3518_v15  ;;  %3998 = vst.msk [vmem:[%s9157_s2 + $0x490] sm:$0xff] %vm3851_vm0, %v3517_v16 }
 0x1a9   :  { %v1719_v21 = vpop.permute.xlu1 %1718  ;;  %v1714_v22 = vpop.permute.xlu0 %1713 }
 0x1aa   :  { %v3520_v23 = vmul.f32 %v1719_v21, %v160_v17  ;;  %v3519_v24 = vmul.f32 %v1714_v22, %v159_v18  ;;  %2038 = vperm.xlu1 %4338, %v704_v19   ;;  %2033 = vperm.xlu0 %4337, %v703_v20   ;;  %v176_v17 = vld [vmem:[%s9156_s1 + $0x528] sm:$0xff]  ;;  %v175_v18 = vld [vmem:[%s9156_s1 + $0x520] sm:$0xff] }
 0x1ab   :  { %v720_v19 = vld [vmem:[%s9155_s0 + $0x728] sm:$0xff]  ;;  %v719_v20 = vld [vmem:[%s9155_s0 + $0x720] sm:$0xff] }
 0x1ac   :  { %4001 = vst.msk [vmem:[%s9157_s2 + $0x4a8] sm:$0xff] %vm3851_vm0, %v3520_v23  ;;  %4000 = vst.msk [vmem:[%s9157_s2 + $0x4a0] sm:$0xff] %vm3851_vm0, %v3519_v24 }
 0x1ad   :  { %v1729_v29 = vpop.permute.xlu1 %1728  ;;  %v1724_v30 = vpop.permute.xlu0 %1723 }
 0x1ae   :  { %v3522_v31 = vmul.f32 %v1729_v29, %v162_v25  ;;  %v3521_v32 = vmul.f32 %v1724_v30, %v161_v26  ;;  %2048 = vperm.xlu1 %4338, %v706_v27   ;;  %2043 = vperm.xlu0 %4337, %v705_v28   ;;  %v178_v25 = vld [vmem:[%s9156_s1 + $0x538] sm:$0xff]  ;;  %v177_v26 = vld [vmem:[%s9156_s1 + $0x530] sm:$0xff] }
 0x1af   :  { %v722_v27 = vld [vmem:[%s9155_s0 + $0x738] sm:$0xff]  ;;  %v721_v28 = vld [vmem:[%s9155_s0 + $0x730] sm:$0xff] }
 0x1b0   :  { %4003 = vst.msk [vmem:[%s9157_s2 + $0x4b8] sm:$0xff] %vm3851_vm0, %v3522_v31  ;;  %4002 = vst.msk [vmem:[%s9157_s2 + $0x4b0] sm:$0xff] %vm3851_vm0, %v3521_v32 }
 0x1b1   :  { %v1739_v37 = vpop.permute.xlu1 %1738  ;;  %v1734_v38 = vpop.permute.xlu0 %1733 }
 0x1b2   :  { %v3524_v39 = vmul.f32 %v1739_v37, %v164_v33  ;;  %v3523_v40 = vmul.f32 %v1734_v38, %v163_v34  ;;  %2058 = vperm.xlu1 %4338, %v708_v35   ;;  %2053 = vperm.xlu0 %4337, %v707_v36   ;;  %v180_v33 = vld [vmem:[%s9156_s1 + $0x548] sm:$0xff]  ;;  %v179_v34 = vld [vmem:[%s9156_s1 + $0x540] sm:$0xff] }
 0x1b3   :  { %v724_v35 = vld [vmem:[%s9155_s0 + $0x748] sm:$0xff]  ;;  %v723_v36 = vld [vmem:[%s9155_s0 + $0x740] sm:$0xff] }
 0x1b4   :  { %4005 = vst.msk [vmem:[%s9157_s2 + $0x4c8] sm:$0xff] %vm3851_vm0, %v3524_v39  ;;  %4004 = vst.msk [vmem:[%s9157_s2 + $0x4c0] sm:$0xff] %vm3851_vm0, %v3523_v40 }
 0x1b5   :  { %v1749_v45 = vpop.permute.xlu1 %1748  ;;  %v1744_v46 = vpop.permute.xlu0 %1743 }
 0x1b6   :  { %v3526_v47 = vmul.f32 %v1749_v45, %v166_v41  ;;  %v3525_v48 = vmul.f32 %v1744_v46, %v165_v42  ;;  %2068 = vperm.xlu1 %4338, %v710_v43   ;;  %2063 = vperm.xlu0 %4337, %v709_v44   ;;  %v182_v41 = vld [vmem:[%s9156_s1 + $0x558] sm:$0xff]  ;;  %v181_v42 = vld [vmem:[%s9156_s1 + $0x550] sm:$0xff] }
 0x1b7   :  { %v726_v43 = vld [vmem:[%s9155_s0 + $0x758] sm:$0xff]  ;;  %v725_v44 = vld [vmem:[%s9155_s0 + $0x750] sm:$0xff] }
 0x1b8   :  { %4007 = vst.msk [vmem:[%s9157_s2 + $0x4d8] sm:$0xff] %vm3851_vm0, %v3526_v47  ;;  %4006 = vst.msk [vmem:[%s9157_s2 + $0x4d0] sm:$0xff] %vm3851_vm0, %v3525_v48 }
 0x1b9   :  { %v1759_v53 = vpop.permute.xlu1 %1758  ;;  %v1754_v54 = vpop.permute.xlu0 %1753 }
 0x1ba   :  { %v3528_v55 = vmul.f32 %v1759_v53, %v168_v49  ;;  %v3527_v56 = vmul.f32 %v1754_v54, %v167_v50  ;;  %2078 = vperm.xlu1 %4338, %v712_v51   ;;  %2073 = vperm.xlu0 %4337, %v711_v52   ;;  %v184_v49 = vld [vmem:[%s9156_s1 + $0x568] sm:$0xff]  ;;  %v183_v50 = vld [vmem:[%s9156_s1 + $0x560] sm:$0xff] }
 0x1bb   :  { %v728_v51 = vld [vmem:[%s9155_s0 + $0x768] sm:$0xff]  ;;  %v727_v52 = vld [vmem:[%s9155_s0 + $0x760] sm:$0xff] }
 0x1bc   :  { %4009 = vst.msk [vmem:[%s9157_s2 + $0x4e8] sm:$0xff] %vm3851_vm0, %v3528_v55  ;;  %4008 = vst.msk [vmem:[%s9157_s2 + $0x4e0] sm:$0xff] %vm3851_vm0, %v3527_v56 }
 0x1bd   :  { %v1769_v61 = vpop.permute.xlu1 %1768  ;;  %v1764_v62 = vpop.permute.xlu0 %1763 }
 0x1be   :  { %v3530_v63 = vmul.f32 %v1769_v61, %v170_v57  ;;  %v3529_v0 = vmul.f32 %v1764_v62, %v169_v58  ;;  %2088 = vperm.xlu1 %4338, %v714_v59   ;;  %2083 = vperm.xlu0 %4337, %v713_v60   ;;  %v186_v57 = vld [vmem:[%s9156_s1 + $0x578] sm:$0xff]  ;;  %v185_v58 = vld [vmem:[%s9156_s1 + $0x570] sm:$0xff] }
 0x1bf   :  { %v730_v59 = vld [vmem:[%s9155_s0 + $0x778] sm:$0xff]  ;;  %v729_v60 = vld [vmem:[%s9155_s0 + $0x770] sm:$0xff] }
 0x1c0   :  { %4011 = vst.msk [vmem:[%s9157_s2 + $0x4f8] sm:$0xff] %vm3851_vm0, %v3530_v63  ;;  %4010 = vst.msk [vmem:[%s9157_s2 + $0x4f0] sm:$0xff] %vm3851_vm0, %v3529_v0 }
 0x1c1   :  { %v1779_v5 = vpop.permute.xlu1 %1778  ;;  %v1774_v6 = vpop.permute.xlu0 %1773 }
 0x1c2   :  { %v3532_v7 = vmul.f32 %v1779_v5, %v172_v1  ;;  %v3531_v8 = vmul.f32 %v1774_v6, %v171_v2  ;;  %2098 = vperm.xlu1 %4338, %v716_v3   ;;  %2093 = vperm.xlu0 %4337, %v715_v4   ;;  %v188_v1 = vld [vmem:[%s9156_s1 + $0x588] sm:$0xff]  ;;  %v187_v2 = vld [vmem:[%s9156_s1 + $0x580] sm:$0xff] }
 0x1c3   :  { %v732_v3 = vld [vmem:[%s9155_s0 + $0x788] sm:$0xff]  ;;  %v731_v4 = vld [vmem:[%s9155_s0 + $0x780] sm:$0xff] }
 0x1c4   :  { %4013 = vst.msk [vmem:[%s9157_s2 + $0x508] sm:$0xff] %vm3851_vm0, %v3532_v7  ;;  %4012 = vst.msk [vmem:[%s9157_s2 + $0x500] sm:$0xff] %vm3851_vm0, %v3531_v8 }
 0x1c5   :  { %v1789_v13 = vpop.permute.xlu1 %1788  ;;  %v1784_v14 = vpop.permute.xlu0 %1783 }
 0x1c6   :  { %v3534_v15 = vmul.f32 %v1789_v13, %v174_v9  ;;  %v3533_v16 = vmul.f32 %v1784_v14, %v173_v10  ;;  %2108 = vperm.xlu1 %4338, %v718_v11   ;;  %2103 = vperm.xlu0 %4337, %v717_v12   ;;  %v190_v9 = vld [vmem:[%s9156_s1 + $0x598] sm:$0xff]  ;;  %v189_v10 = vld [vmem:[%s9156_s1 + $0x590] sm:$0xff] }
 0x1c7   :  { %v734_v11 = vld [vmem:[%s9155_s0 + $0x798] sm:$0xff]  ;;  %v733_v12 = vld [vmem:[%s9155_s0 + $0x790] sm:$0xff] }
 0x1c8   :  { %4015 = vst.msk [vmem:[%s9157_s2 + $0x518] sm:$0xff] %vm3851_vm0, %v3534_v15  ;;  %4014 = vst.msk [vmem:[%s9157_s2 + $0x510] sm:$0xff] %vm3851_vm0, %v3533_v16 }
 0x1c9   :  { %v1799_v21 = vpop.permute.xlu1 %1798  ;;  %v1794_v22 = vpop.permute.xlu0 %1793 }
 0x1ca   :  { %v3536_v23 = vmul.f32 %v1799_v21, %v176_v17  ;;  %v3535_v24 = vmul.f32 %v1794_v22, %v175_v18  ;;  %2118 = vperm.xlu1 %4338, %v720_v19   ;;  %2113 = vperm.xlu0 %4337, %v719_v20   ;;  %v192_v17 = vld [vmem:[%s9156_s1 + $0x5a8] sm:$0xff]  ;;  %v191_v18 = vld [vmem:[%s9156_s1 + $0x5a0] sm:$0xff] }
 0x1cb   :  { %v736_v19 = vld [vmem:[%s9155_s0 + $0x7a8] sm:$0xff]  ;;  %v735_v20 = vld [vmem:[%s9155_s0 + $0x7a0] sm:$0xff] }
 0x1cc   :  { %4017 = vst.msk [vmem:[%s9157_s2 + $0x528] sm:$0xff] %vm3851_vm0, %v3536_v23  ;;  %4016 = vst.msk [vmem:[%s9157_s2 + $0x520] sm:$0xff] %vm3851_vm0, %v3535_v24 }
 0x1cd   :  { %v1809_v29 = vpop.permute.xlu1 %1808  ;;  %v1804_v30 = vpop.permute.xlu0 %1803 }
 0x1ce   :  { %v3538_v31 = vmul.f32 %v1809_v29, %v178_v25  ;;  %v3537_v32 = vmul.f32 %v1804_v30, %v177_v26  ;;  %2128 = vperm.xlu1 %4338, %v722_v27   ;;  %2123 = vperm.xlu0 %4337, %v721_v28   ;;  %v194_v25 = vld [vmem:[%s9156_s1 + $0x5b8] sm:$0xff]  ;;  %v193_v26 = vld [vmem:[%s9156_s1 + $0x5b0] sm:$0xff] }
 0x1cf   :  { %v738_v27 = vld [vmem:[%s9155_s0 + $0x7b8] sm:$0xff]  ;;  %v737_v28 = vld [vmem:[%s9155_s0 + $0x7b0] sm:$0xff] }
 0x1d0   :  { %4019 = vst.msk [vmem:[%s9157_s2 + $0x538] sm:$0xff] %vm3851_vm0, %v3538_v31  ;;  %4018 = vst.msk [vmem:[%s9157_s2 + $0x530] sm:$0xff] %vm3851_vm0, %v3537_v32 }
 0x1d1   :  { %v1819_v37 = vpop.permute.xlu1 %1818  ;;  %v1814_v38 = vpop.permute.xlu0 %1813 }
 0x1d2   :  { %v3540_v39 = vmul.f32 %v1819_v37, %v180_v33  ;;  %v3539_v40 = vmul.f32 %v1814_v38, %v179_v34  ;;  %2138 = vperm.xlu1 %4338, %v724_v35   ;;  %2133 = vperm.xlu0 %4337, %v723_v36   ;;  %v196_v33 = vld [vmem:[%s9156_s1 + $0x5c8] sm:$0xff]  ;;  %v195_v34 = vld [vmem:[%s9156_s1 + $0x5c0] sm:$0xff] }
 0x1d3   :  { %v740_v35 = vld [vmem:[%s9155_s0 + $0x7c8] sm:$0xff]  ;;  %v739_v36 = vld [vmem:[%s9155_s0 + $0x7c0] sm:$0xff] }
 0x1d4   :  { %4021 = vst.msk [vmem:[%s9157_s2 + $0x548] sm:$0xff] %vm3851_vm0, %v3540_v39  ;;  %4020 = vst.msk [vmem:[%s9157_s2 + $0x540] sm:$0xff] %vm3851_vm0, %v3539_v40 }
 0x1d5   :  { %v1829_v45 = vpop.permute.xlu1 %1828  ;;  %v1824_v46 = vpop.permute.xlu0 %1823 }
 0x1d6   :  { %v3542_v47 = vmul.f32 %v1829_v45, %v182_v41  ;;  %v3541_v48 = vmul.f32 %v1824_v46, %v181_v42  ;;  %2148 = vperm.xlu1 %4338, %v726_v43   ;;  %2143 = vperm.xlu0 %4337, %v725_v44   ;;  %v198_v41 = vld [vmem:[%s9156_s1 + $0x5d8] sm:$0xff]  ;;  %v197_v42 = vld [vmem:[%s9156_s1 + $0x5d0] sm:$0xff] }
 0x1d7   :  { %v742_v43 = vld [vmem:[%s9155_s0 + $0x7d8] sm:$0xff]  ;;  %v741_v44 = vld [vmem:[%s9155_s0 + $0x7d0] sm:$0xff] }
 0x1d8   :  { %4023 = vst.msk [vmem:[%s9157_s2 + $0x558] sm:$0xff] %vm3851_vm0, %v3542_v47  ;;  %4022 = vst.msk [vmem:[%s9157_s2 + $0x550] sm:$0xff] %vm3851_vm0, %v3541_v48 }
 0x1d9   :  { %v1839_v53 = vpop.permute.xlu1 %1838  ;;  %v1834_v54 = vpop.permute.xlu0 %1833 }
 0x1da   :  { %v3544_v55 = vmul.f32 %v1839_v53, %v184_v49  ;;  %v3543_v56 = vmul.f32 %v1834_v54, %v183_v50  ;;  %2158 = vperm.xlu1 %4338, %v728_v51   ;;  %2153 = vperm.xlu0 %4337, %v727_v52   ;;  %v200_v49 = vld [vmem:[%s9156_s1 + $0x5e8] sm:$0xff]  ;;  %v199_v50 = vld [vmem:[%s9156_s1 + $0x5e0] sm:$0xff] }
 0x1db   :  { %v744_v51 = vld [vmem:[%s9155_s0 + $0x7e8] sm:$0xff]  ;;  %v743_v52 = vld [vmem:[%s9155_s0 + $0x7e0] sm:$0xff] }
 0x1dc   :  { %4025 = vst.msk [vmem:[%s9157_s2 + $0x568] sm:$0xff] %vm3851_vm0, %v3544_v55  ;;  %4024 = vst.msk [vmem:[%s9157_s2 + $0x560] sm:$0xff] %vm3851_vm0, %v3543_v56 }
 0x1dd   :  { %v1849_v61 = vpop.permute.xlu1 %1848  ;;  %v1844_v62 = vpop.permute.xlu0 %1843 }
 0x1de   :  { %v3546_v63 = vmul.f32 %v1849_v61, %v186_v57  ;;  %v3545_v0 = vmul.f32 %v1844_v62, %v185_v58  ;;  %2168 = vperm.xlu1 %4338, %v730_v59   ;;  %2163 = vperm.xlu0 %4337, %v729_v60   ;;  %v202_v57 = vld [vmem:[%s9156_s1 + $0x5f8] sm:$0xff]  ;;  %v201_v58 = vld [vmem:[%s9156_s1 + $0x5f0] sm:$0xff] }
 0x1df   :  { %v746_v59 = vld [vmem:[%s9155_s0 + $0x7f8] sm:$0xff]  ;;  %v745_v60 = vld [vmem:[%s9155_s0 + $0x7f0] sm:$0xff] }
 0x1e0   :  { %4027 = vst.msk [vmem:[%s9157_s2 + $0x578] sm:$0xff] %vm3851_vm0, %v3546_v63  ;;  %4026 = vst.msk [vmem:[%s9157_s2 + $0x570] sm:$0xff] %vm3851_vm0, %v3545_v0 }
 0x1e1   :  { %v1859_v5 = vpop.permute.xlu1 %1858  ;;  %v1854_v6 = vpop.permute.xlu0 %1853 }
 0x1e2   :  { %v3548_v7 = vmul.f32 %v1859_v5, %v188_v1  ;;  %v3547_v8 = vmul.f32 %v1854_v6, %v187_v2  ;;  %2178 = vperm.xlu1 %4338, %v732_v3   ;;  %2173 = vperm.xlu0 %4337, %v731_v4   ;;  %v204_v1 = vld [vmem:[%s9156_s1 + $0x608] sm:$0xff]  ;;  %v203_v2 = vld [vmem:[%s9156_s1 + $0x600] sm:$0xff] }
 0x1e3   :  { %v748_v3 = vld [vmem:[%s9155_s0 + $0x808] sm:$0xff]  ;;  %v747_v4 = vld [vmem:[%s9155_s0 + $0x800] sm:$0xff] }
 0x1e4   :  { %4029 = vst.msk [vmem:[%s9157_s2 + $0x588] sm:$0xff] %vm3851_vm0, %v3548_v7  ;;  %4028 = vst.msk [vmem:[%s9157_s2 + $0x580] sm:$0xff] %vm3851_vm0, %v3547_v8 }
 0x1e5   :  { %v1869_v13 = vpop.permute.xlu1 %1868  ;;  %v1864_v14 = vpop.permute.xlu0 %1863 }
 0x1e6   :  { %v3550_v15 = vmul.f32 %v1869_v13, %v190_v9  ;;  %v3549_v16 = vmul.f32 %v1864_v14, %v189_v10  ;;  %2188 = vperm.xlu1 %4338, %v734_v11   ;;  %2183 = vperm.xlu0 %4337, %v733_v12   ;;  %v206_v9 = vld [vmem:[%s9156_s1 + $0x618] sm:$0xff]  ;;  %v205_v10 = vld [vmem:[%s9156_s1 + $0x610] sm:$0xff] }
 0x1e7   :  { %v750_v11 = vld [vmem:[%s9155_s0 + $0x818] sm:$0xff]  ;;  %v749_v12 = vld [vmem:[%s9155_s0 + $0x810] sm:$0xff] }
 0x1e8   :  { %4031 = vst.msk [vmem:[%s9157_s2 + $0x598] sm:$0xff] %vm3851_vm0, %v3550_v15  ;;  %4030 = vst.msk [vmem:[%s9157_s2 + $0x590] sm:$0xff] %vm3851_vm0, %v3549_v16 }
 0x1e9   :  { %v1879_v21 = vpop.permute.xlu1 %1878  ;;  %v1874_v22 = vpop.permute.xlu0 %1873 }
 0x1ea   :  { %v3552_v23 = vmul.f32 %v1879_v21, %v192_v17  ;;  %v3551_v24 = vmul.f32 %v1874_v22, %v191_v18  ;;  %2198 = vperm.xlu1 %4338, %v736_v19   ;;  %2193 = vperm.xlu0 %4337, %v735_v20   ;;  %v208_v17 = vld [vmem:[%s9156_s1 + $0x628] sm:$0xff]  ;;  %v207_v18 = vld [vmem:[%s9156_s1 + $0x620] sm:$0xff] }
 0x1eb   :  { %v752_v19 = vld [vmem:[%s9155_s0 + $0x828] sm:$0xff]  ;;  %v751_v20 = vld [vmem:[%s9155_s0 + $0x820] sm:$0xff] }
 0x1ec   :  { %4033 = vst.msk [vmem:[%s9157_s2 + $0x5a8] sm:$0xff] %vm3851_vm0, %v3552_v23  ;;  %4032 = vst.msk [vmem:[%s9157_s2 + $0x5a0] sm:$0xff] %vm3851_vm0, %v3551_v24 }
 0x1ed   :  { %v1889_v29 = vpop.permute.xlu1 %1888  ;;  %v1884_v30 = vpop.permute.xlu0 %1883 }
 0x1ee   :  { %v3554_v31 = vmul.f32 %v1889_v29, %v194_v25  ;;  %v3553_v32 = vmul.f32 %v1884_v30, %v193_v26  ;;  %2208 = vperm.xlu1 %4338, %v738_v27   ;;  %2203 = vperm.xlu0 %4337, %v737_v28   ;;  %v210_v25 = vld [vmem:[%s9156_s1 + $0x638] sm:$0xff]  ;;  %v209_v26 = vld [vmem:[%s9156_s1 + $0x630] sm:$0xff] }
 0x1ef   :  { %v754_v27 = vld [vmem:[%s9155_s0 + $0x838] sm:$0xff]  ;;  %v753_v28 = vld [vmem:[%s9155_s0 + $0x830] sm:$0xff] }
 0x1f0   :  { %4035 = vst.msk [vmem:[%s9157_s2 + $0x5b8] sm:$0xff] %vm3851_vm0, %v3554_v31  ;;  %4034 = vst.msk [vmem:[%s9157_s2 + $0x5b0] sm:$0xff] %vm3851_vm0, %v3553_v32 }
 0x1f1   :  { %v1899_v37 = vpop.permute.xlu1 %1898  ;;  %v1894_v38 = vpop.permute.xlu0 %1893 }
 0x1f2   :  { %v3556_v39 = vmul.f32 %v1899_v37, %v196_v33  ;;  %v3555_v40 = vmul.f32 %v1894_v38, %v195_v34  ;;  %2218 = vperm.xlu1 %4338, %v740_v35   ;;  %2213 = vperm.xlu0 %4337, %v739_v36   ;;  %v212_v33 = vld [vmem:[%s9156_s1 + $0x648] sm:$0xff]  ;;  %v211_v34 = vld [vmem:[%s9156_s1 + $0x640] sm:$0xff] }
 0x1f3   :  { %v756_v35 = vld [vmem:[%s9155_s0 + $0x848] sm:$0xff]  ;;  %v755_v36 = vld [vmem:[%s9155_s0 + $0x840] sm:$0xff] }
 0x1f4   :  { %4037 = vst.msk [vmem:[%s9157_s2 + $0x5c8] sm:$0xff] %vm3851_vm0, %v3556_v39  ;;  %4036 = vst.msk [vmem:[%s9157_s2 + $0x5c0] sm:$0xff] %vm3851_vm0, %v3555_v40 }
 0x1f5   :  { %v1909_v45 = vpop.permute.xlu1 %1908  ;;  %v1904_v46 = vpop.permute.xlu0 %1903 }
 0x1f6   :  { %v3558_v47 = vmul.f32 %v1909_v45, %v198_v41  ;;  %v3557_v48 = vmul.f32 %v1904_v46, %v197_v42  ;;  %2228 = vperm.xlu1 %4338, %v742_v43   ;;  %2223 = vperm.xlu0 %4337, %v741_v44   ;;  %v214_v41 = vld [vmem:[%s9156_s1 + $0x658] sm:$0xff]  ;;  %v213_v42 = vld [vmem:[%s9156_s1 + $0x650] sm:$0xff] }
 0x1f7   :  { %v758_v43 = vld [vmem:[%s9155_s0 + $0x858] sm:$0xff]  ;;  %v757_v44 = vld [vmem:[%s9155_s0 + $0x850] sm:$0xff] }
 0x1f8   :  { %4039 = vst.msk [vmem:[%s9157_s2 + $0x5d8] sm:$0xff] %vm3851_vm0, %v3558_v47  ;;  %4038 = vst.msk [vmem:[%s9157_s2 + $0x5d0] sm:$0xff] %vm3851_vm0, %v3557_v48 }
 0x1f9   :  { %v1919_v53 = vpop.permute.xlu1 %1918  ;;  %v1914_v54 = vpop.permute.xlu0 %1913 }
 0x1fa   :  { %v3560_v55 = vmul.f32 %v1919_v53, %v200_v49  ;;  %v3559_v56 = vmul.f32 %v1914_v54, %v199_v50  ;;  %2238 = vperm.xlu1 %4338, %v744_v51   ;;  %2233 = vperm.xlu0 %4337, %v743_v52   ;;  %v216_v49 = vld [vmem:[%s9156_s1 + $0x668] sm:$0xff]  ;;  %v215_v50 = vld [vmem:[%s9156_s1 + $0x660] sm:$0xff] }
 0x1fb   :  { %v760_v51 = vld [vmem:[%s9155_s0 + $0x868] sm:$0xff]  ;;  %v759_v52 = vld [vmem:[%s9155_s0 + $0x860] sm:$0xff] }
 0x1fc   :  { %4041 = vst.msk [vmem:[%s9157_s2 + $0x5e8] sm:$0xff] %vm3851_vm0, %v3560_v55  ;;  %4040 = vst.msk [vmem:[%s9157_s2 + $0x5e0] sm:$0xff] %vm3851_vm0, %v3559_v56 }
 0x1fd   :  { %v1929_v61 = vpop.permute.xlu1 %1928  ;;  %v1924_v62 = vpop.permute.xlu0 %1923 }
 0x1fe   :  { %v3562_v63 = vmul.f32 %v1929_v61, %v202_v57  ;;  %v3561_v0 = vmul.f32 %v1924_v62, %v201_v58  ;;  %2248 = vperm.xlu1 %4338, %v746_v59   ;;  %2243 = vperm.xlu0 %4337, %v745_v60   ;;  %v218_v57 = vld [vmem:[%s9156_s1 + $0x678] sm:$0xff]  ;;  %v217_v58 = vld [vmem:[%s9156_s1 + $0x670] sm:$0xff] }
 0x1ff   :  { %v762_v59 = vld [vmem:[%s9155_s0 + $0x878] sm:$0xff]  ;;  %v761_v60 = vld [vmem:[%s9155_s0 + $0x870] sm:$0xff] }
 0x200   :  { %4043 = vst.msk [vmem:[%s9157_s2 + $0x5f8] sm:$0xff] %vm3851_vm0, %v3562_v63  ;;  %4042 = vst.msk [vmem:[%s9157_s2 + $0x5f0] sm:$0xff] %vm3851_vm0, %v3561_v0 }
 0x201   :  { %v1939_v5 = vpop.permute.xlu1 %1938  ;;  %v1934_v6 = vpop.permute.xlu0 %1933 }
 0x202   :  { %v3564_v7 = vmul.f32 %v1939_v5, %v204_v1  ;;  %v3563_v8 = vmul.f32 %v1934_v6, %v203_v2  ;;  %2258 = vperm.xlu1 %4338, %v748_v3   ;;  %2253 = vperm.xlu0 %4337, %v747_v4   ;;  %v220_v1 = vld [vmem:[%s9156_s1 + $0x688] sm:$0xff]  ;;  %v219_v2 = vld [vmem:[%s9156_s1 + $0x680] sm:$0xff] }
 0x203   :  { %v764_v3 = vld [vmem:[%s9155_s0 + $0x888] sm:$0xff]  ;;  %v763_v4 = vld [vmem:[%s9155_s0 + $0x880] sm:$0xff] }
 0x204   :  { %4045 = vst.msk [vmem:[%s9157_s2 + $0x608] sm:$0xff] %vm3851_vm0, %v3564_v7  ;;  %4044 = vst.msk [vmem:[%s9157_s2 + $0x600] sm:$0xff] %vm3851_vm0, %v3563_v8 }
 0x205   :  { %v1949_v13 = vpop.permute.xlu1 %1948  ;;  %v1944_v14 = vpop.permute.xlu0 %1943 }
 0x206   :  { %v3566_v15 = vmul.f32 %v1949_v13, %v206_v9  ;;  %v3565_v16 = vmul.f32 %v1944_v14, %v205_v10  ;;  %2268 = vperm.xlu1 %4338, %v750_v11   ;;  %2263 = vperm.xlu0 %4337, %v749_v12   ;;  %v222_v9 = vld [vmem:[%s9156_s1 + $0x698] sm:$0xff]  ;;  %v221_v10 = vld [vmem:[%s9156_s1 + $0x690] sm:$0xff] }
 0x207   :  { %v766_v11 = vld [vmem:[%s9155_s0 + $0x898] sm:$0xff]  ;;  %v765_v12 = vld [vmem:[%s9155_s0 + $0x890] sm:$0xff] }
 0x208   :  { %4047 = vst.msk [vmem:[%s9157_s2 + $0x618] sm:$0xff] %vm3851_vm0, %v3566_v15  ;;  %4046 = vst.msk [vmem:[%s9157_s2 + $0x610] sm:$0xff] %vm3851_vm0, %v3565_v16 }
 0x209   :  { %v1959_v21 = vpop.permute.xlu1 %1958  ;;  %v1954_v22 = vpop.permute.xlu0 %1953 }
 0x20a   :  { %v3568_v23 = vmul.f32 %v1959_v21, %v208_v17  ;;  %v3567_v24 = vmul.f32 %v1954_v22, %v207_v18  ;;  %2278 = vperm.xlu1 %4338, %v752_v19   ;;  %2273 = vperm.xlu0 %4337, %v751_v20   ;;  %v224_v17 = vld [vmem:[%s9156_s1 + $0x6a8] sm:$0xff]  ;;  %v223_v18 = vld [vmem:[%s9156_s1 + $0x6a0] sm:$0xff] }
 0x20b   :  { %v768_v19 = vld [vmem:[%s9155_s0 + $0x8a8] sm:$0xff]  ;;  %v767_v20 = vld [vmem:[%s9155_s0 + $0x8a0] sm:$0xff] }
 0x20c   :  { %4049 = vst.msk [vmem:[%s9157_s2 + $0x628] sm:$0xff] %vm3851_vm0, %v3568_v23  ;;  %4048 = vst.msk [vmem:[%s9157_s2 + $0x620] sm:$0xff] %vm3851_vm0, %v3567_v24 }
 0x20d   :  { %v1969_v29 = vpop.permute.xlu1 %1968  ;;  %v1964_v30 = vpop.permute.xlu0 %1963 }
 0x20e   :  { %v3570_v31 = vmul.f32 %v1969_v29, %v210_v25  ;;  %v3569_v32 = vmul.f32 %v1964_v30, %v209_v26  ;;  %2288 = vperm.xlu1 %4338, %v754_v27   ;;  %2283 = vperm.xlu0 %4337, %v753_v28   ;;  %v226_v25 = vld [vmem:[%s9156_s1 + $0x6b8] sm:$0xff]  ;;  %v225_v26 = vld [vmem:[%s9156_s1 + $0x6b0] sm:$0xff] }
 0x20f   :  { %v770_v27 = vld [vmem:[%s9155_s0 + $0x8b8] sm:$0xff]  ;;  %v769_v28 = vld [vmem:[%s9155_s0 + $0x8b0] sm:$0xff] }
 0x210   :  { %4051 = vst.msk [vmem:[%s9157_s2 + $0x638] sm:$0xff] %vm3851_vm0, %v3570_v31  ;;  %4050 = vst.msk [vmem:[%s9157_s2 + $0x630] sm:$0xff] %vm3851_vm0, %v3569_v32 }
 0x211   :  { %v1979_v37 = vpop.permute.xlu1 %1978  ;;  %v1974_v38 = vpop.permute.xlu0 %1973 }
 0x212   :  { %v3572_v39 = vmul.f32 %v1979_v37, %v212_v33  ;;  %v3571_v40 = vmul.f32 %v1974_v38, %v211_v34  ;;  %2298 = vperm.xlu1 %4338, %v756_v35   ;;  %2293 = vperm.xlu0 %4337, %v755_v36   ;;  %v228_v33 = vld [vmem:[%s9156_s1 + $0x6c8] sm:$0xff]  ;;  %v227_v34 = vld [vmem:[%s9156_s1 + $0x6c0] sm:$0xff] }
 0x213   :  { %v772_v35 = vld [vmem:[%s9155_s0 + $0x8c8] sm:$0xff]  ;;  %v771_v36 = vld [vmem:[%s9155_s0 + $0x8c0] sm:$0xff] }
 0x214   :  { %4053 = vst.msk [vmem:[%s9157_s2 + $0x648] sm:$0xff] %vm3851_vm0, %v3572_v39  ;;  %4052 = vst.msk [vmem:[%s9157_s2 + $0x640] sm:$0xff] %vm3851_vm0, %v3571_v40 }
 0x215   :  { %v1989_v45 = vpop.permute.xlu1 %1988  ;;  %v1984_v46 = vpop.permute.xlu0 %1983 }
 0x216   :  { %v3574_v47 = vmul.f32 %v1989_v45, %v214_v41  ;;  %v3573_v48 = vmul.f32 %v1984_v46, %v213_v42  ;;  %2308 = vperm.xlu1 %4338, %v758_v43   ;;  %2303 = vperm.xlu0 %4337, %v757_v44   ;;  %v230_v41 = vld [vmem:[%s9156_s1 + $0x6d8] sm:$0xff]  ;;  %v229_v42 = vld [vmem:[%s9156_s1 + $0x6d0] sm:$0xff] }
 0x217   :  { %v774_v43 = vld [vmem:[%s9155_s0 + $0x8d8] sm:$0xff]  ;;  %v773_v44 = vld [vmem:[%s9155_s0 + $0x8d0] sm:$0xff] }
 0x218   :  { %4055 = vst.msk [vmem:[%s9157_s2 + $0x658] sm:$0xff] %vm3851_vm0, %v3574_v47  ;;  %4054 = vst.msk [vmem:[%s9157_s2 + $0x650] sm:$0xff] %vm3851_vm0, %v3573_v48 }
 0x219   :  { %v1999_v53 = vpop.permute.xlu1 %1998  ;;  %v1994_v54 = vpop.permute.xlu0 %1993 }
 0x21a   :  { %v3576_v55 = vmul.f32 %v1999_v53, %v216_v49  ;;  %v3575_v56 = vmul.f32 %v1994_v54, %v215_v50  ;;  %2318 = vperm.xlu1 %4338, %v760_v51   ;;  %2313 = vperm.xlu0 %4337, %v759_v52   ;;  %v232_v49 = vld [vmem:[%s9156_s1 + $0x6e8] sm:$0xff]  ;;  %v231_v50 = vld [vmem:[%s9156_s1 + $0x6e0] sm:$0xff] }
 0x21b   :  { %v776_v51 = vld [vmem:[%s9155_s0 + $0x8e8] sm:$0xff]  ;;  %v775_v52 = vld [vmem:[%s9155_s0 + $0x8e0] sm:$0xff] }
 0x21c   :  { %4057 = vst.msk [vmem:[%s9157_s2 + $0x668] sm:$0xff] %vm3851_vm0, %v3576_v55  ;;  %4056 = vst.msk [vmem:[%s9157_s2 + $0x660] sm:$0xff] %vm3851_vm0, %v3575_v56 }
 0x21d   :  { %v2009_v61 = vpop.permute.xlu1 %2008  ;;  %v2004_v62 = vpop.permute.xlu0 %2003 }
 0x21e   :  { %v3578_v63 = vmul.f32 %v2009_v61, %v218_v57  ;;  %v3577_v0 = vmul.f32 %v2004_v62, %v217_v58  ;;  %2328 = vperm.xlu1 %4338, %v762_v59   ;;  %2323 = vperm.xlu0 %4337, %v761_v60   ;;  %v234_v57 = vld [vmem:[%s9156_s1 + $0x6f8] sm:$0xff]  ;;  %v233_v58 = vld [vmem:[%s9156_s1 + $0x6f0] sm:$0xff] }
 0x21f   :  { %v778_v59 = vld [vmem:[%s9155_s0 + $0x8f8] sm:$0xff]  ;;  %v777_v60 = vld [vmem:[%s9155_s0 + $0x8f0] sm:$0xff] }
 0x220   :  { %4059 = vst.msk [vmem:[%s9157_s2 + $0x678] sm:$0xff] %vm3851_vm0, %v3578_v63  ;;  %4058 = vst.msk [vmem:[%s9157_s2 + $0x670] sm:$0xff] %vm3851_vm0, %v3577_v0 }
 0x221   :  { %v2019_v5 = vpop.permute.xlu1 %2018  ;;  %v2014_v6 = vpop.permute.xlu0 %2013 }
 0x222   :  { %v3580_v7 = vmul.f32 %v2019_v5, %v220_v1  ;;  %v3579_v8 = vmul.f32 %v2014_v6, %v219_v2  ;;  %2338 = vperm.xlu1 %4338, %v764_v3   ;;  %2333 = vperm.xlu0 %4337, %v763_v4   ;;  %v236_v1 = vld [vmem:[%s9156_s1 + $0x708] sm:$0xff]  ;;  %v235_v2 = vld [vmem:[%s9156_s1 + $0x700] sm:$0xff] }
 0x223   :  { %v780_v3 = vld [vmem:[%s9155_s0 + $0x908] sm:$0xff]  ;;  %v779_v4 = vld [vmem:[%s9155_s0 + $0x900] sm:$0xff] }
 0x224   :  { %4061 = vst.msk [vmem:[%s9157_s2 + $0x688] sm:$0xff] %vm3851_vm0, %v3580_v7  ;;  %4060 = vst.msk [vmem:[%s9157_s2 + $0x680] sm:$0xff] %vm3851_vm0, %v3579_v8 }
 0x225   :  { %v2029_v13 = vpop.permute.xlu1 %2028  ;;  %v2024_v14 = vpop.permute.xlu0 %2023 }
 0x226   :  { %v3582_v15 = vmul.f32 %v2029_v13, %v222_v9  ;;  %v3581_v16 = vmul.f32 %v2024_v14, %v221_v10  ;;  %2348 = vperm.xlu1 %4338, %v766_v11   ;;  %2343 = vperm.xlu0 %4337, %v765_v12   ;;  %v238_v9 = vld [vmem:[%s9156_s1 + $0x718] sm:$0xff]  ;;  %v237_v10 = vld [vmem:[%s9156_s1 + $0x710] sm:$0xff] }
 0x227   :  { %v782_v11 = vld [vmem:[%s9155_s0 + $0x918] sm:$0xff]  ;;  %v781_v12 = vld [vmem:[%s9155_s0 + $0x910] sm:$0xff] }
 0x228   :  { %4063 = vst.msk [vmem:[%s9157_s2 + $0x698] sm:$0xff] %vm3851_vm0, %v3582_v15  ;;  %4062 = vst.msk [vmem:[%s9157_s2 + $0x690] sm:$0xff] %vm3851_vm0, %v3581_v16 }
 0x229   :  { %v2039_v21 = vpop.permute.xlu1 %2038  ;;  %v2034_v22 = vpop.permute.xlu0 %2033 }
 0x22a   :  { %v3584_v23 = vmul.f32 %v2039_v21, %v224_v17  ;;  %v3583_v24 = vmul.f32 %v2034_v22, %v223_v18  ;;  %2358 = vperm.xlu1 %4338, %v768_v19   ;;  %2353 = vperm.xlu0 %4337, %v767_v20   ;;  %v240_v17 = vld [vmem:[%s9156_s1 + $0x728] sm:$0xff]  ;;  %v239_v18 = vld [vmem:[%s9156_s1 + $0x720] sm:$0xff] }
 0x22b   :  { %v784_v19 = vld [vmem:[%s9155_s0 + $0x928] sm:$0xff]  ;;  %v783_v20 = vld [vmem:[%s9155_s0 + $0x920] sm:$0xff] }
 0x22c   :  { %4065 = vst.msk [vmem:[%s9157_s2 + $0x6a8] sm:$0xff] %vm3851_vm0, %v3584_v23  ;;  %4064 = vst.msk [vmem:[%s9157_s2 + $0x6a0] sm:$0xff] %vm3851_vm0, %v3583_v24 }
 0x22d   :  { %v2049_v29 = vpop.permute.xlu1 %2048  ;;  %v2044_v30 = vpop.permute.xlu0 %2043 }
 0x22e   :  { %v3586_v31 = vmul.f32 %v2049_v29, %v226_v25  ;;  %v3585_v32 = vmul.f32 %v2044_v30, %v225_v26  ;;  %2368 = vperm.xlu1 %4338, %v770_v27   ;;  %2363 = vperm.xlu0 %4337, %v769_v28   ;;  %v242_v25 = vld [vmem:[%s9156_s1 + $0x738] sm:$0xff]  ;;  %v241_v26 = vld [vmem:[%s9156_s1 + $0x730] sm:$0xff] }
 0x22f   :  { %v786_v27 = vld [vmem:[%s9155_s0 + $0x938] sm:$0xff]  ;;  %v785_v28 = vld [vmem:[%s9155_s0 + $0x930] sm:$0xff] }
 0x230   :  { %4067 = vst.msk [vmem:[%s9157_s2 + $0x6b8] sm:$0xff] %vm3851_vm0, %v3586_v31  ;;  %4066 = vst.msk [vmem:[%s9157_s2 + $0x6b0] sm:$0xff] %vm3851_vm0, %v3585_v32 }
 0x231   :  { %v2059_v37 = vpop.permute.xlu1 %2058  ;;  %v2054_v38 = vpop.permute.xlu0 %2053 }
 0x232   :  { %v3588_v39 = vmul.f32 %v2059_v37, %v228_v33  ;;  %v3587_v40 = vmul.f32 %v2054_v38, %v227_v34  ;;  %2378 = vperm.xlu1 %4338, %v772_v35   ;;  %2373 = vperm.xlu0 %4337, %v771_v36   ;;  %v244_v33 = vld [vmem:[%s9156_s1 + $0x748] sm:$0xff]  ;;  %v243_v34 = vld [vmem:[%s9156_s1 + $0x740] sm:$0xff] }
 0x233   :  { %v788_v35 = vld [vmem:[%s9155_s0 + $0x948] sm:$0xff]  ;;  %v787_v36 = vld [vmem:[%s9155_s0 + $0x940] sm:$0xff] }
 0x234   :  { %4069 = vst.msk [vmem:[%s9157_s2 + $0x6c8] sm:$0xff] %vm3851_vm0, %v3588_v39  ;;  %4068 = vst.msk [vmem:[%s9157_s2 + $0x6c0] sm:$0xff] %vm3851_vm0, %v3587_v40 }
 0x235   :  { %v2069_v45 = vpop.permute.xlu1 %2068  ;;  %v2064_v46 = vpop.permute.xlu0 %2063 }
 0x236   :  { %v3590_v47 = vmul.f32 %v2069_v45, %v230_v41  ;;  %v3589_v48 = vmul.f32 %v2064_v46, %v229_v42  ;;  %2388 = vperm.xlu1 %4338, %v774_v43   ;;  %2383 = vperm.xlu0 %4337, %v773_v44   ;;  %v246_v41 = vld [vmem:[%s9156_s1 + $0x758] sm:$0xff]  ;;  %v245_v42 = vld [vmem:[%s9156_s1 + $0x750] sm:$0xff] }
 0x237   :  { %v790_v43 = vld [vmem:[%s9155_s0 + $0x958] sm:$0xff]  ;;  %v789_v44 = vld [vmem:[%s9155_s0 + $0x950] sm:$0xff] }
 0x238   :  { %4071 = vst.msk [vmem:[%s9157_s2 + $0x6d8] sm:$0xff] %vm3851_vm0, %v3590_v47  ;;  %4070 = vst.msk [vmem:[%s9157_s2 + $0x6d0] sm:$0xff] %vm3851_vm0, %v3589_v48 }
 0x239   :  { %v2079_v53 = vpop.permute.xlu1 %2078  ;;  %v2074_v54 = vpop.permute.xlu0 %2073 }
 0x23a   :  { %v3592_v55 = vmul.f32 %v2079_v53, %v232_v49  ;;  %v3591_v56 = vmul.f32 %v2074_v54, %v231_v50  ;;  %2398 = vperm.xlu1 %4338, %v776_v51   ;;  %2393 = vperm.xlu0 %4337, %v775_v52   ;;  %v248_v49 = vld [vmem:[%s9156_s1 + $0x768] sm:$0xff]  ;;  %v247_v50 = vld [vmem:[%s9156_s1 + $0x760] sm:$0xff] }
 0x23b   :  { %v792_v51 = vld [vmem:[%s9155_s0 + $0x968] sm:$0xff]  ;;  %v791_v52 = vld [vmem:[%s9155_s0 + $0x960] sm:$0xff] }
 0x23c   :  { %4073 = vst.msk [vmem:[%s9157_s2 + $0x6e8] sm:$0xff] %vm3851_vm0, %v3592_v55  ;;  %4072 = vst.msk [vmem:[%s9157_s2 + $0x6e0] sm:$0xff] %vm3851_vm0, %v3591_v56 }
 0x23d   :  { %v2089_v61 = vpop.permute.xlu1 %2088  ;;  %v2084_v62 = vpop.permute.xlu0 %2083 }
 0x23e   :  { %v3594_v63 = vmul.f32 %v2089_v61, %v234_v57  ;;  %v3593_v0 = vmul.f32 %v2084_v62, %v233_v58  ;;  %2408 = vperm.xlu1 %4338, %v778_v59   ;;  %2403 = vperm.xlu0 %4337, %v777_v60   ;;  %v250_v57 = vld [vmem:[%s9156_s1 + $0x778] sm:$0xff]  ;;  %v249_v58 = vld [vmem:[%s9156_s1 + $0x770] sm:$0xff] }
 0x23f   :  { %v794_v59 = vld [vmem:[%s9155_s0 + $0x978] sm:$0xff]  ;;  %v793_v60 = vld [vmem:[%s9155_s0 + $0x970] sm:$0xff] }
 0x240   :  { %4075 = vst.msk [vmem:[%s9157_s2 + $0x6f8] sm:$0xff] %vm3851_vm0, %v3594_v63  ;;  %4074 = vst.msk [vmem:[%s9157_s2 + $0x6f0] sm:$0xff] %vm3851_vm0, %v3593_v0 }
 0x241   :  { %v2099_v5 = vpop.permute.xlu1 %2098  ;;  %v2094_v6 = vpop.permute.xlu0 %2093 }
 0x242   :  { %v3596_v7 = vmul.f32 %v2099_v5, %v236_v1  ;;  %v3595_v8 = vmul.f32 %v2094_v6, %v235_v2  ;;  %2418 = vperm.xlu1 %4338, %v780_v3   ;;  %2413 = vperm.xlu0 %4337, %v779_v4   ;;  %v252_v1 = vld [vmem:[%s9156_s1 + $0x788] sm:$0xff]  ;;  %v251_v2 = vld [vmem:[%s9156_s1 + $0x780] sm:$0xff] }
 0x243   :  { %v796_v3 = vld [vmem:[%s9155_s0 + $0x988] sm:$0xff]  ;;  %v795_v4 = vld [vmem:[%s9155_s0 + $0x980] sm:$0xff] }
 0x244   :  { %4077 = vst.msk [vmem:[%s9157_s2 + $0x708] sm:$0xff] %vm3851_vm0, %v3596_v7  ;;  %4076 = vst.msk [vmem:[%s9157_s2 + $0x700] sm:$0xff] %vm3851_vm0, %v3595_v8 }
 0x245   :  { %v2109_v13 = vpop.permute.xlu1 %2108  ;;  %v2104_v14 = vpop.permute.xlu0 %2103 }
 0x246   :  { %v3598_v15 = vmul.f32 %v2109_v13, %v238_v9  ;;  %v3597_v16 = vmul.f32 %v2104_v14, %v237_v10  ;;  %2428 = vperm.xlu1 %4338, %v782_v11   ;;  %2423 = vperm.xlu0 %4337, %v781_v12   ;;  %v254_v9 = vld [vmem:[%s9156_s1 + $0x798] sm:$0xff]  ;;  %v253_v10 = vld [vmem:[%s9156_s1 + $0x790] sm:$0xff] }
 0x247   :  { %v798_v11 = vld [vmem:[%s9155_s0 + $0x998] sm:$0xff]  ;;  %v797_v12 = vld [vmem:[%s9155_s0 + $0x990] sm:$0xff] }
 0x248   :  { %4079 = vst.msk [vmem:[%s9157_s2 + $0x718] sm:$0xff] %vm3851_vm0, %v3598_v15  ;;  %4078 = vst.msk [vmem:[%s9157_s2 + $0x710] sm:$0xff] %vm3851_vm0, %v3597_v16 }
 0x249   :  { %v2119_v21 = vpop.permute.xlu1 %2118  ;;  %v2114_v22 = vpop.permute.xlu0 %2113 }
 0x24a   :  { %v3600_v23 = vmul.f32 %v2119_v21, %v240_v17  ;;  %v3599_v24 = vmul.f32 %v2114_v22, %v239_v18  ;;  %2438 = vperm.xlu1 %4338, %v784_v19   ;;  %2433 = vperm.xlu0 %4337, %v783_v20   ;;  %v256_v17 = vld [vmem:[%s9156_s1 + $0x7a8] sm:$0xff]  ;;  %v255_v18 = vld [vmem:[%s9156_s1 + $0x7a0] sm:$0xff] }
 0x24b   :  { %v800_v19 = vld [vmem:[%s9155_s0 + $0x9a8] sm:$0xff]  ;;  %v799_v20 = vld [vmem:[%s9155_s0 + $0x9a0] sm:$0xff] }
 0x24c   :  { %4081 = vst.msk [vmem:[%s9157_s2 + $0x728] sm:$0xff] %vm3851_vm0, %v3600_v23  ;;  %4080 = vst.msk [vmem:[%s9157_s2 + $0x720] sm:$0xff] %vm3851_vm0, %v3599_v24 }
 0x24d   :  { %v2129_v29 = vpop.permute.xlu1 %2128  ;;  %v2124_v30 = vpop.permute.xlu0 %2123 }
 0x24e   :  { %v3602_v31 = vmul.f32 %v2129_v29, %v242_v25  ;;  %v3601_v32 = vmul.f32 %v2124_v30, %v241_v26  ;;  %2448 = vperm.xlu1 %4338, %v786_v27   ;;  %2443 = vperm.xlu0 %4337, %v785_v28   ;;  %v258_v25 = vld [vmem:[%s9156_s1 + $0x7b8] sm:$0xff]  ;;  %v257_v26 = vld [vmem:[%s9156_s1 + $0x7b0] sm:$0xff] }
 0x24f   :  { %v802_v27 = vld [vmem:[%s9155_s0 + $0x9b8] sm:$0xff]  ;;  %v801_v28 = vld [vmem:[%s9155_s0 + $0x9b0] sm:$0xff] }
 0x250   :  { %4083 = vst.msk [vmem:[%s9157_s2 + $0x738] sm:$0xff] %vm3851_vm0, %v3602_v31  ;;  %4082 = vst.msk [vmem:[%s9157_s2 + $0x730] sm:$0xff] %vm3851_vm0, %v3601_v32 }
 0x251   :  { %v2139_v37 = vpop.permute.xlu1 %2138  ;;  %v2134_v38 = vpop.permute.xlu0 %2133 }
 0x252   :  { %v3604_v39 = vmul.f32 %v2139_v37, %v244_v33  ;;  %v3603_v40 = vmul.f32 %v2134_v38, %v243_v34  ;;  %2458 = vperm.xlu1 %4338, %v788_v35   ;;  %2453 = vperm.xlu0 %4337, %v787_v36   ;;  %v260_v33 = vld [vmem:[%s9156_s1 + $0x7c8] sm:$0xff]  ;;  %v259_v34 = vld [vmem:[%s9156_s1 + $0x7c0] sm:$0xff] }
 0x253   :  { %v804_v35 = vld [vmem:[%s9155_s0 + $0x9c8] sm:$0xff]  ;;  %v803_v36 = vld [vmem:[%s9155_s0 + $0x9c0] sm:$0xff] }
 0x254   :  { %4085 = vst.msk [vmem:[%s9157_s2 + $0x748] sm:$0xff] %vm3851_vm0, %v3604_v39  ;;  %4084 = vst.msk [vmem:[%s9157_s2 + $0x740] sm:$0xff] %vm3851_vm0, %v3603_v40 }
 0x255   :  { %v2149_v45 = vpop.permute.xlu1 %2148  ;;  %v2144_v46 = vpop.permute.xlu0 %2143 }
 0x256   :  { %v3606_v47 = vmul.f32 %v2149_v45, %v246_v41  ;;  %v3605_v48 = vmul.f32 %v2144_v46, %v245_v42  ;;  %2468 = vperm.xlu1 %4338, %v790_v43   ;;  %2463 = vperm.xlu0 %4337, %v789_v44   ;;  %v262_v41 = vld [vmem:[%s9156_s1 + $0x7d8] sm:$0xff]  ;;  %v261_v42 = vld [vmem:[%s9156_s1 + $0x7d0] sm:$0xff] }
 0x257   :  { %v806_v43 = vld [vmem:[%s9155_s0 + $0x9d8] sm:$0xff]  ;;  %v805_v44 = vld [vmem:[%s9155_s0 + $0x9d0] sm:$0xff] }
 0x258   :  { %4087 = vst.msk [vmem:[%s9157_s2 + $0x758] sm:$0xff] %vm3851_vm0, %v3606_v47  ;;  %4086 = vst.msk [vmem:[%s9157_s2 + $0x750] sm:$0xff] %vm3851_vm0, %v3605_v48 }
 0x259   :  { %v2159_v53 = vpop.permute.xlu1 %2158  ;;  %v2154_v54 = vpop.permute.xlu0 %2153 }
 0x25a   :  { %v3608_v55 = vmul.f32 %v2159_v53, %v248_v49  ;;  %v3607_v56 = vmul.f32 %v2154_v54, %v247_v50  ;;  %2478 = vperm.xlu1 %4338, %v792_v51   ;;  %2473 = vperm.xlu0 %4337, %v791_v52   ;;  %v264_v49 = vld [vmem:[%s9156_s1 + $0x7e8] sm:$0xff]  ;;  %v263_v50 = vld [vmem:[%s9156_s1 + $0x7e0] sm:$0xff] }
 0x25b   :  { %v808_v51 = vld [vmem:[%s9155_s0 + $0x9e8] sm:$0xff]  ;;  %v807_v52 = vld [vmem:[%s9155_s0 + $0x9e0] sm:$0xff] }
 0x25c   :  { %4089 = vst.msk [vmem:[%s9157_s2 + $0x768] sm:$0xff] %vm3851_vm0, %v3608_v55  ;;  %4088 = vst.msk [vmem:[%s9157_s2 + $0x760] sm:$0xff] %vm3851_vm0, %v3607_v56 }
 0x25d   :  { %v2169_v61 = vpop.permute.xlu1 %2168  ;;  %v2164_v62 = vpop.permute.xlu0 %2163 }
 0x25e   :  { %v3610_v63 = vmul.f32 %v2169_v61, %v250_v57  ;;  %v3609_v0 = vmul.f32 %v2164_v62, %v249_v58  ;;  %2488 = vperm.xlu1 %4338, %v794_v59   ;;  %2483 = vperm.xlu0 %4337, %v793_v60   ;;  %v266_v57 = vld [vmem:[%s9156_s1 + $0x7f8] sm:$0xff]  ;;  %v265_v58 = vld [vmem:[%s9156_s1 + $0x7f0] sm:$0xff] }
 0x25f   :  { %v810_v59 = vld [vmem:[%s9155_s0 + $0x9f8] sm:$0xff]  ;;  %v809_v60 = vld [vmem:[%s9155_s0 + $0x9f0] sm:$0xff] }
 0x260   :  { %4091 = vst.msk [vmem:[%s9157_s2 + $0x778] sm:$0xff] %vm3851_vm0, %v3610_v63  ;;  %4090 = vst.msk [vmem:[%s9157_s2 + $0x770] sm:$0xff] %vm3851_vm0, %v3609_v0 }
 0x261   :  { %v2179_v5 = vpop.permute.xlu1 %2178  ;;  %v2174_v6 = vpop.permute.xlu0 %2173 }
 0x262   :  { %v3612_v7 = vmul.f32 %v2179_v5, %v252_v1  ;;  %v3611_v8 = vmul.f32 %v2174_v6, %v251_v2  ;;  %2498 = vperm.xlu1 %4338, %v796_v3   ;;  %2493 = vperm.xlu0 %4337, %v795_v4   ;;  %v268_v1 = vld [vmem:[%s9156_s1 + $0x808] sm:$0xff]  ;;  %v267_v2 = vld [vmem:[%s9156_s1 + $0x800] sm:$0xff] }
 0x263   :  { %v812_v3 = vld [vmem:[%s9155_s0 + $0xa08] sm:$0xff]  ;;  %v811_v4 = vld [vmem:[%s9155_s0 + $0xa00] sm:$0xff] }
 0x264   :  { %4093 = vst.msk [vmem:[%s9157_s2 + $0x788] sm:$0xff] %vm3851_vm0, %v3612_v7  ;;  %4092 = vst.msk [vmem:[%s9157_s2 + $0x780] sm:$0xff] %vm3851_vm0, %v3611_v8 }
 0x265   :  { %v2189_v13 = vpop.permute.xlu1 %2188  ;;  %v2184_v14 = vpop.permute.xlu0 %2183 }
 0x266   :  { %v3614_v15 = vmul.f32 %v2189_v13, %v254_v9  ;;  %v3613_v16 = vmul.f32 %v2184_v14, %v253_v10  ;;  %2508 = vperm.xlu1 %4338, %v798_v11   ;;  %2503 = vperm.xlu0 %4337, %v797_v12   ;;  %v270_v9 = vld [vmem:[%s9156_s1 + $0x818] sm:$0xff]  ;;  %v269_v10 = vld [vmem:[%s9156_s1 + $0x810] sm:$0xff] }
 0x267   :  { %v814_v11 = vld [vmem:[%s9155_s0 + $0xa18] sm:$0xff]  ;;  %v813_v12 = vld [vmem:[%s9155_s0 + $0xa10] sm:$0xff] }
 0x268   :  { %4095 = vst.msk [vmem:[%s9157_s2 + $0x798] sm:$0xff] %vm3851_vm0, %v3614_v15  ;;  %4094 = vst.msk [vmem:[%s9157_s2 + $0x790] sm:$0xff] %vm3851_vm0, %v3613_v16 }
 0x269   :  { %v2199_v21 = vpop.permute.xlu1 %2198  ;;  %v2194_v22 = vpop.permute.xlu0 %2193 }
 0x26a   :  { %v3616_v23 = vmul.f32 %v2199_v21, %v256_v17  ;;  %v3615_v24 = vmul.f32 %v2194_v22, %v255_v18  ;;  %2518 = vperm.xlu1 %4338, %v800_v19   ;;  %2513 = vperm.xlu0 %4337, %v799_v20   ;;  %v272_v17 = vld [vmem:[%s9156_s1 + $0x828] sm:$0xff]  ;;  %v271_v18 = vld [vmem:[%s9156_s1 + $0x820] sm:$0xff] }
 0x26b   :  { %v816_v19 = vld [vmem:[%s9155_s0 + $0xa28] sm:$0xff]  ;;  %v815_v20 = vld [vmem:[%s9155_s0 + $0xa20] sm:$0xff] }
 0x26c   :  { %4097 = vst.msk [vmem:[%s9157_s2 + $0x7a8] sm:$0xff] %vm3851_vm0, %v3616_v23  ;;  %4096 = vst.msk [vmem:[%s9157_s2 + $0x7a0] sm:$0xff] %vm3851_vm0, %v3615_v24 }
 0x26d   :  { %v2209_v29 = vpop.permute.xlu1 %2208  ;;  %v2204_v30 = vpop.permute.xlu0 %2203 }
 0x26e   :  { %v3618_v31 = vmul.f32 %v2209_v29, %v258_v25  ;;  %v3617_v32 = vmul.f32 %v2204_v30, %v257_v26  ;;  %2528 = vperm.xlu1 %4338, %v802_v27   ;;  %2523 = vperm.xlu0 %4337, %v801_v28   ;;  %v274_v25 = vld [vmem:[%s9156_s1 + $0x838] sm:$0xff]  ;;  %v273_v26 = vld [vmem:[%s9156_s1 + $0x830] sm:$0xff] }
 0x26f   :  { %v818_v27 = vld [vmem:[%s9155_s0 + $0xa38] sm:$0xff]  ;;  %v817_v28 = vld [vmem:[%s9155_s0 + $0xa30] sm:$0xff] }
 0x270   :  { %4099 = vst.msk [vmem:[%s9157_s2 + $0x7b8] sm:$0xff] %vm3851_vm0, %v3618_v31  ;;  %4098 = vst.msk [vmem:[%s9157_s2 + $0x7b0] sm:$0xff] %vm3851_vm0, %v3617_v32 }
 0x271   :  { %v2219_v37 = vpop.permute.xlu1 %2218  ;;  %v2214_v38 = vpop.permute.xlu0 %2213 }
 0x272   :  { %v3620_v39 = vmul.f32 %v2219_v37, %v260_v33  ;;  %v3619_v40 = vmul.f32 %v2214_v38, %v259_v34  ;;  %2538 = vperm.xlu1 %4338, %v804_v35   ;;  %2533 = vperm.xlu0 %4337, %v803_v36   ;;  %v276_v33 = vld [vmem:[%s9156_s1 + $0x848] sm:$0xff]  ;;  %v275_v34 = vld [vmem:[%s9156_s1 + $0x840] sm:$0xff] }
 0x273   :  { %v820_v35 = vld [vmem:[%s9155_s0 + $0xa48] sm:$0xff]  ;;  %v819_v36 = vld [vmem:[%s9155_s0 + $0xa40] sm:$0xff] }
 0x274   :  { %4101 = vst.msk [vmem:[%s9157_s2 + $0x7c8] sm:$0xff] %vm3851_vm0, %v3620_v39  ;;  %4100 = vst.msk [vmem:[%s9157_s2 + $0x7c0] sm:$0xff] %vm3851_vm0, %v3619_v40 }
 0x275   :  { %v2229_v45 = vpop.permute.xlu1 %2228  ;;  %v2224_v46 = vpop.permute.xlu0 %2223 }
 0x276   :  { %v3622_v47 = vmul.f32 %v2229_v45, %v262_v41  ;;  %v3621_v48 = vmul.f32 %v2224_v46, %v261_v42  ;;  %2548 = vperm.xlu1 %4338, %v806_v43   ;;  %2543 = vperm.xlu0 %4337, %v805_v44   ;;  %v278_v41 = vld [vmem:[%s9156_s1 + $0x858] sm:$0xff]  ;;  %v277_v42 = vld [vmem:[%s9156_s1 + $0x850] sm:$0xff] }
 0x277   :  { %v822_v43 = vld [vmem:[%s9155_s0 + $0xa58] sm:$0xff]  ;;  %v821_v44 = vld [vmem:[%s9155_s0 + $0xa50] sm:$0xff] }
 0x278   :  { %4103 = vst.msk [vmem:[%s9157_s2 + $0x7d8] sm:$0xff] %vm3851_vm0, %v3622_v47  ;;  %4102 = vst.msk [vmem:[%s9157_s2 + $0x7d0] sm:$0xff] %vm3851_vm0, %v3621_v48 }
 0x279   :  { %v2239_v53 = vpop.permute.xlu1 %2238  ;;  %v2234_v54 = vpop.permute.xlu0 %2233 }
 0x27a   :  { %v3624_v55 = vmul.f32 %v2239_v53, %v264_v49  ;;  %v3623_v56 = vmul.f32 %v2234_v54, %v263_v50  ;;  %2558 = vperm.xlu1 %4338, %v808_v51   ;;  %2553 = vperm.xlu0 %4337, %v807_v52   ;;  %v280_v49 = vld [vmem:[%s9156_s1 + $0x868] sm:$0xff]  ;;  %v279_v50 = vld [vmem:[%s9156_s1 + $0x860] sm:$0xff] }
 0x27b   :  { %v824_v51 = vld [vmem:[%s9155_s0 + $0xa68] sm:$0xff]  ;;  %v823_v52 = vld [vmem:[%s9155_s0 + $0xa60] sm:$0xff] }
 0x27c   :  { %4105 = vst.msk [vmem:[%s9157_s2 + $0x7e8] sm:$0xff] %vm3851_vm0, %v3624_v55  ;;  %4104 = vst.msk [vmem:[%s9157_s2 + $0x7e0] sm:$0xff] %vm3851_vm0, %v3623_v56 }
 0x27d   :  { %v2249_v61 = vpop.permute.xlu1 %2248  ;;  %v2244_v62 = vpop.permute.xlu0 %2243 }
 0x27e   :  { %v3626_v63 = vmul.f32 %v2249_v61, %v266_v57  ;;  %v3625_v0 = vmul.f32 %v2244_v62, %v265_v58  ;;  %2568 = vperm.xlu1 %4338, %v810_v59   ;;  %2563 = vperm.xlu0 %4337, %v809_v60   ;;  %v282_v57 = vld [vmem:[%s9156_s1 + $0x878] sm:$0xff]  ;;  %v281_v58 = vld [vmem:[%s9156_s1 + $0x870] sm:$0xff] }
 0x27f   :  { %v826_v59 = vld [vmem:[%s9155_s0 + $0xa78] sm:$0xff]  ;;  %v825_v60 = vld [vmem:[%s9155_s0 + $0xa70] sm:$0xff] }
 0x280   :  { %4107 = vst.msk [vmem:[%s9157_s2 + $0x7f8] sm:$0xff] %vm3851_vm0, %v3626_v63  ;;  %4106 = vst.msk [vmem:[%s9157_s2 + $0x7f0] sm:$0xff] %vm3851_vm0, %v3625_v0 }
 0x281   :  { %v2259_v5 = vpop.permute.xlu1 %2258  ;;  %v2254_v6 = vpop.permute.xlu0 %2253 }
 0x282   :  { %v3628_v7 = vmul.f32 %v2259_v5, %v268_v1  ;;  %v3627_v8 = vmul.f32 %v2254_v6, %v267_v2  ;;  %2578 = vperm.xlu1 %4338, %v812_v3   ;;  %2573 = vperm.xlu0 %4337, %v811_v4   ;;  %v284_v1 = vld [vmem:[%s9156_s1 + $0x888] sm:$0xff]  ;;  %v283_v2 = vld [vmem:[%s9156_s1 + $0x880] sm:$0xff] }
 0x283   :  { %v828_v3 = vld [vmem:[%s9155_s0 + $0xa88] sm:$0xff]  ;;  %v827_v4 = vld [vmem:[%s9155_s0 + $0xa80] sm:$0xff] }
 0x284   :  { %4109 = vst.msk [vmem:[%s9157_s2 + $0x808] sm:$0xff] %vm3851_vm0, %v3628_v7  ;;  %4108 = vst.msk [vmem:[%s9157_s2 + $0x800] sm:$0xff] %vm3851_vm0, %v3627_v8 }
 0x285   :  { %v2269_v13 = vpop.permute.xlu1 %2268  ;;  %v2264_v14 = vpop.permute.xlu0 %2263 }
 0x286   :  { %v3630_v15 = vmul.f32 %v2269_v13, %v270_v9  ;;  %v3629_v16 = vmul.f32 %v2264_v14, %v269_v10  ;;  %2588 = vperm.xlu1 %4338, %v814_v11   ;;  %2583 = vperm.xlu0 %4337, %v813_v12   ;;  %v286_v9 = vld [vmem:[%s9156_s1 + $0x898] sm:$0xff]  ;;  %v285_v10 = vld [vmem:[%s9156_s1 + $0x890] sm:$0xff] }
 0x287   :  { %v830_v11 = vld [vmem:[%s9155_s0 + $0xa98] sm:$0xff]  ;;  %v829_v12 = vld [vmem:[%s9155_s0 + $0xa90] sm:$0xff] }
 0x288   :  { %4111 = vst.msk [vmem:[%s9157_s2 + $0x818] sm:$0xff] %vm3851_vm0, %v3630_v15  ;;  %4110 = vst.msk [vmem:[%s9157_s2 + $0x810] sm:$0xff] %vm3851_vm0, %v3629_v16 }
 0x289   :  { %v2279_v21 = vpop.permute.xlu1 %2278  ;;  %v2274_v22 = vpop.permute.xlu0 %2273 }
 0x28a   :  { %v3632_v23 = vmul.f32 %v2279_v21, %v272_v17  ;;  %v3631_v24 = vmul.f32 %v2274_v22, %v271_v18  ;;  %2598 = vperm.xlu1 %4338, %v816_v19   ;;  %2593 = vperm.xlu0 %4337, %v815_v20   ;;  %v288_v17 = vld [vmem:[%s9156_s1 + $0x8a8] sm:$0xff]  ;;  %v287_v18 = vld [vmem:[%s9156_s1 + $0x8a0] sm:$0xff] }
 0x28b   :  { %v832_v19 = vld [vmem:[%s9155_s0 + $0xaa8] sm:$0xff]  ;;  %v831_v20 = vld [vmem:[%s9155_s0 + $0xaa0] sm:$0xff] }
 0x28c   :  { %4113 = vst.msk [vmem:[%s9157_s2 + $0x828] sm:$0xff] %vm3851_vm0, %v3632_v23  ;;  %4112 = vst.msk [vmem:[%s9157_s2 + $0x820] sm:$0xff] %vm3851_vm0, %v3631_v24 }
 0x28d   :  { %v2289_v29 = vpop.permute.xlu1 %2288  ;;  %v2284_v30 = vpop.permute.xlu0 %2283 }
 0x28e   :  { %v3634_v31 = vmul.f32 %v2289_v29, %v274_v25  ;;  %v3633_v32 = vmul.f32 %v2284_v30, %v273_v26  ;;  %2608 = vperm.xlu1 %4338, %v818_v27   ;;  %2603 = vperm.xlu0 %4337, %v817_v28   ;;  %v290_v25 = vld [vmem:[%s9156_s1 + $0x8b8] sm:$0xff]  ;;  %v289_v26 = vld [vmem:[%s9156_s1 + $0x8b0] sm:$0xff] }
 0x28f   :  { %v834_v27 = vld [vmem:[%s9155_s0 + $0xab8] sm:$0xff]  ;;  %v833_v28 = vld [vmem:[%s9155_s0 + $0xab0] sm:$0xff] }
 0x290   :  { %4115 = vst.msk [vmem:[%s9157_s2 + $0x838] sm:$0xff] %vm3851_vm0, %v3634_v31  ;;  %4114 = vst.msk [vmem:[%s9157_s2 + $0x830] sm:$0xff] %vm3851_vm0, %v3633_v32 }
 0x291   :  { %v2299_v37 = vpop.permute.xlu1 %2298  ;;  %v2294_v38 = vpop.permute.xlu0 %2293 }
 0x292   :  { %v3636_v39 = vmul.f32 %v2299_v37, %v276_v33  ;;  %v3635_v40 = vmul.f32 %v2294_v38, %v275_v34  ;;  %2618 = vperm.xlu1 %4338, %v820_v35   ;;  %2613 = vperm.xlu0 %4337, %v819_v36   ;;  %v292_v33 = vld [vmem:[%s9156_s1 + $0x8c8] sm:$0xff]  ;;  %v291_v34 = vld [vmem:[%s9156_s1 + $0x8c0] sm:$0xff] }
 0x293   :  { %v836_v35 = vld [vmem:[%s9155_s0 + $0xac8] sm:$0xff]  ;;  %v835_v36 = vld [vmem:[%s9155_s0 + $0xac0] sm:$0xff] }
 0x294   :  { %4117 = vst.msk [vmem:[%s9157_s2 + $0x848] sm:$0xff] %vm3851_vm0, %v3636_v39  ;;  %4116 = vst.msk [vmem:[%s9157_s2 + $0x840] sm:$0xff] %vm3851_vm0, %v3635_v40 }
 0x295   :  { %v2309_v45 = vpop.permute.xlu1 %2308  ;;  %v2304_v46 = vpop.permute.xlu0 %2303 }
 0x296   :  { %v3638_v47 = vmul.f32 %v2309_v45, %v278_v41  ;;  %v3637_v48 = vmul.f32 %v2304_v46, %v277_v42  ;;  %2628 = vperm.xlu1 %4338, %v822_v43   ;;  %2623 = vperm.xlu0 %4337, %v821_v44   ;;  %v294_v41 = vld [vmem:[%s9156_s1 + $0x8d8] sm:$0xff]  ;;  %v293_v42 = vld [vmem:[%s9156_s1 + $0x8d0] sm:$0xff] }
 0x297   :  { %v838_v43 = vld [vmem:[%s9155_s0 + $0xad8] sm:$0xff]  ;;  %v837_v44 = vld [vmem:[%s9155_s0 + $0xad0] sm:$0xff] }
 0x298   :  { %4119 = vst.msk [vmem:[%s9157_s2 + $0x858] sm:$0xff] %vm3851_vm0, %v3638_v47  ;;  %4118 = vst.msk [vmem:[%s9157_s2 + $0x850] sm:$0xff] %vm3851_vm0, %v3637_v48 }
 0x299   :  { %v2319_v53 = vpop.permute.xlu1 %2318  ;;  %v2314_v54 = vpop.permute.xlu0 %2313 }
 0x29a   :  { %v3640_v55 = vmul.f32 %v2319_v53, %v280_v49  ;;  %v3639_v56 = vmul.f32 %v2314_v54, %v279_v50  ;;  %2638 = vperm.xlu1 %4338, %v824_v51   ;;  %2633 = vperm.xlu0 %4337, %v823_v52   ;;  %v296_v49 = vld [vmem:[%s9156_s1 + $0x8e8] sm:$0xff]  ;;  %v295_v50 = vld [vmem:[%s9156_s1 + $0x8e0] sm:$0xff] }
 0x29b   :  { %v840_v51 = vld [vmem:[%s9155_s0 + $0xae8] sm:$0xff]  ;;  %v839_v52 = vld [vmem:[%s9155_s0 + $0xae0] sm:$0xff] }
 0x29c   :  { %4121 = vst.msk [vmem:[%s9157_s2 + $0x868] sm:$0xff] %vm3851_vm0, %v3640_v55  ;;  %4120 = vst.msk [vmem:[%s9157_s2 + $0x860] sm:$0xff] %vm3851_vm0, %v3639_v56 }
 0x29d   :  { %v2329_v61 = vpop.permute.xlu1 %2328  ;;  %v2324_v62 = vpop.permute.xlu0 %2323 }
 0x29e   :  { %v3642_v63 = vmul.f32 %v2329_v61, %v282_v57  ;;  %v3641_v0 = vmul.f32 %v2324_v62, %v281_v58  ;;  %2648 = vperm.xlu1 %4338, %v826_v59   ;;  %2643 = vperm.xlu0 %4337, %v825_v60   ;;  %v298_v57 = vld [vmem:[%s9156_s1 + $0x8f8] sm:$0xff]  ;;  %v297_v58 = vld [vmem:[%s9156_s1 + $0x8f0] sm:$0xff] }
 0x29f   :  { %v842_v59 = vld [vmem:[%s9155_s0 + $0xaf8] sm:$0xff]  ;;  %v841_v60 = vld [vmem:[%s9155_s0 + $0xaf0] sm:$0xff] }
 0x2a0   :  { %4123 = vst.msk [vmem:[%s9157_s2 + $0x878] sm:$0xff] %vm3851_vm0, %v3642_v63  ;;  %4122 = vst.msk [vmem:[%s9157_s2 + $0x870] sm:$0xff] %vm3851_vm0, %v3641_v0 }
 0x2a1   :  { %v2339_v5 = vpop.permute.xlu1 %2338  ;;  %v2334_v6 = vpop.permute.xlu0 %2333 }
 0x2a2   :  { %v3644_v7 = vmul.f32 %v2339_v5, %v284_v1  ;;  %v3643_v8 = vmul.f32 %v2334_v6, %v283_v2  ;;  %2658 = vperm.xlu1 %4338, %v828_v3   ;;  %2653 = vperm.xlu0 %4337, %v827_v4   ;;  %v300_v1 = vld [vmem:[%s9156_s1 + $0x908] sm:$0xff]  ;;  %v299_v2 = vld [vmem:[%s9156_s1 + $0x900] sm:$0xff] }
 0x2a3   :  { %v844_v3 = vld [vmem:[%s9155_s0 + $0xb08] sm:$0xff]  ;;  %v843_v4 = vld [vmem:[%s9155_s0 + $0xb00] sm:$0xff] }
 0x2a4   :  { %4125 = vst.msk [vmem:[%s9157_s2 + $0x888] sm:$0xff] %vm3851_vm0, %v3644_v7  ;;  %4124 = vst.msk [vmem:[%s9157_s2 + $0x880] sm:$0xff] %vm3851_vm0, %v3643_v8 }
 0x2a5   :  { %v2349_v13 = vpop.permute.xlu1 %2348  ;;  %v2344_v14 = vpop.permute.xlu0 %2343 }
 0x2a6   :  { %v3646_v15 = vmul.f32 %v2349_v13, %v286_v9  ;;  %v3645_v16 = vmul.f32 %v2344_v14, %v285_v10  ;;  %2668 = vperm.xlu1 %4338, %v830_v11   ;;  %2663 = vperm.xlu0 %4337, %v829_v12   ;;  %v302_v9 = vld [vmem:[%s9156_s1 + $0x918] sm:$0xff]  ;;  %v301_v10 = vld [vmem:[%s9156_s1 + $0x910] sm:$0xff] }
 0x2a7   :  { %v846_v11 = vld [vmem:[%s9155_s0 + $0xb18] sm:$0xff]  ;;  %v845_v12 = vld [vmem:[%s9155_s0 + $0xb10] sm:$0xff] }
 0x2a8   :  { %4127 = vst.msk [vmem:[%s9157_s2 + $0x898] sm:$0xff] %vm3851_vm0, %v3646_v15  ;;  %4126 = vst.msk [vmem:[%s9157_s2 + $0x890] sm:$0xff] %vm3851_vm0, %v3645_v16 }
 0x2a9   :  { %v2359_v21 = vpop.permute.xlu1 %2358  ;;  %v2354_v22 = vpop.permute.xlu0 %2353 }
 0x2aa   :  { %v3648_v23 = vmul.f32 %v2359_v21, %v288_v17  ;;  %v3647_v24 = vmul.f32 %v2354_v22, %v287_v18  ;;  %2678 = vperm.xlu1 %4338, %v832_v19   ;;  %2673 = vperm.xlu0 %4337, %v831_v20   ;;  %v304_v17 = vld [vmem:[%s9156_s1 + $0x928] sm:$0xff]  ;;  %v303_v18 = vld [vmem:[%s9156_s1 + $0x920] sm:$0xff] }
 0x2ab   :  { %v848_v19 = vld [vmem:[%s9155_s0 + $0xb28] sm:$0xff]  ;;  %v847_v20 = vld [vmem:[%s9155_s0 + $0xb20] sm:$0xff] }
 0x2ac   :  { %4129 = vst.msk [vmem:[%s9157_s2 + $0x8a8] sm:$0xff] %vm3851_vm0, %v3648_v23  ;;  %4128 = vst.msk [vmem:[%s9157_s2 + $0x8a0] sm:$0xff] %vm3851_vm0, %v3647_v24 }
 0x2ad   :  { %v2369_v29 = vpop.permute.xlu1 %2368  ;;  %v2364_v30 = vpop.permute.xlu0 %2363 }
 0x2ae   :  { %v3650_v31 = vmul.f32 %v2369_v29, %v290_v25  ;;  %v3649_v32 = vmul.f32 %v2364_v30, %v289_v26  ;;  %2688 = vperm.xlu1 %4338, %v834_v27   ;;  %2683 = vperm.xlu0 %4337, %v833_v28   ;;  %v306_v25 = vld [vmem:[%s9156_s1 + $0x938] sm:$0xff]  ;;  %v305_v26 = vld [vmem:[%s9156_s1 + $0x930] sm:$0xff] }
 0x2af   :  { %v850_v27 = vld [vmem:[%s9155_s0 + $0xb38] sm:$0xff]  ;;  %v849_v28 = vld [vmem:[%s9155_s0 + $0xb30] sm:$0xff] }
 0x2b0   :  { %4131 = vst.msk [vmem:[%s9157_s2 + $0x8b8] sm:$0xff] %vm3851_vm0, %v3650_v31  ;;  %4130 = vst.msk [vmem:[%s9157_s2 + $0x8b0] sm:$0xff] %vm3851_vm0, %v3649_v32 }
 0x2b1   :  { %v2379_v37 = vpop.permute.xlu1 %2378  ;;  %v2374_v38 = vpop.permute.xlu0 %2373 }
 0x2b2   :  { %v3652_v39 = vmul.f32 %v2379_v37, %v292_v33  ;;  %v3651_v40 = vmul.f32 %v2374_v38, %v291_v34  ;;  %2698 = vperm.xlu1 %4338, %v836_v35   ;;  %2693 = vperm.xlu0 %4337, %v835_v36   ;;  %v308_v33 = vld [vmem:[%s9156_s1 + $0x948] sm:$0xff]  ;;  %v307_v34 = vld [vmem:[%s9156_s1 + $0x940] sm:$0xff] }
 0x2b3   :  { %v852_v35 = vld [vmem:[%s9155_s0 + $0xb48] sm:$0xff]  ;;  %v851_v36 = vld [vmem:[%s9155_s0 + $0xb40] sm:$0xff] }
 0x2b4   :  { %4133 = vst.msk [vmem:[%s9157_s2 + $0x8c8] sm:$0xff] %vm3851_vm0, %v3652_v39  ;;  %4132 = vst.msk [vmem:[%s9157_s2 + $0x8c0] sm:$0xff] %vm3851_vm0, %v3651_v40 }
 0x2b5   :  { %v2389_v45 = vpop.permute.xlu1 %2388  ;;  %v2384_v46 = vpop.permute.xlu0 %2383 }
 0x2b6   :  { %v3654_v47 = vmul.f32 %v2389_v45, %v294_v41  ;;  %v3653_v48 = vmul.f32 %v2384_v46, %v293_v42  ;;  %2708 = vperm.xlu1 %4338, %v838_v43   ;;  %2703 = vperm.xlu0 %4337, %v837_v44   ;;  %v310_v41 = vld [vmem:[%s9156_s1 + $0x958] sm:$0xff]  ;;  %v309_v42 = vld [vmem:[%s9156_s1 + $0x950] sm:$0xff] }
 0x2b7   :  { %v854_v43 = vld [vmem:[%s9155_s0 + $0xb58] sm:$0xff]  ;;  %v853_v44 = vld [vmem:[%s9155_s0 + $0xb50] sm:$0xff] }
 0x2b8   :  { %4135 = vst.msk [vmem:[%s9157_s2 + $0x8d8] sm:$0xff] %vm3851_vm0, %v3654_v47  ;;  %4134 = vst.msk [vmem:[%s9157_s2 + $0x8d0] sm:$0xff] %vm3851_vm0, %v3653_v48 }
 0x2b9   :  { %v2399_v53 = vpop.permute.xlu1 %2398  ;;  %v2394_v54 = vpop.permute.xlu0 %2393 }
 0x2ba   :  { %v3656_v55 = vmul.f32 %v2399_v53, %v296_v49  ;;  %v3655_v56 = vmul.f32 %v2394_v54, %v295_v50  ;;  %2718 = vperm.xlu1 %4338, %v840_v51   ;;  %2713 = vperm.xlu0 %4337, %v839_v52   ;;  %v312_v49 = vld [vmem:[%s9156_s1 + $0x968] sm:$0xff]  ;;  %v311_v50 = vld [vmem:[%s9156_s1 + $0x960] sm:$0xff] }
 0x2bb   :  { %v856_v51 = vld [vmem:[%s9155_s0 + $0xb68] sm:$0xff]  ;;  %v855_v52 = vld [vmem:[%s9155_s0 + $0xb60] sm:$0xff] }
 0x2bc   :  { %4137 = vst.msk [vmem:[%s9157_s2 + $0x8e8] sm:$0xff] %vm3851_vm0, %v3656_v55  ;;  %4136 = vst.msk [vmem:[%s9157_s2 + $0x8e0] sm:$0xff] %vm3851_vm0, %v3655_v56 }
 0x2bd   :  { %v2409_v61 = vpop.permute.xlu1 %2408  ;;  %v2404_v62 = vpop.permute.xlu0 %2403 }
 0x2be   :  { %v3658_v63 = vmul.f32 %v2409_v61, %v298_v57  ;;  %v3657_v0 = vmul.f32 %v2404_v62, %v297_v58  ;;  %2728 = vperm.xlu1 %4338, %v842_v59   ;;  %2723 = vperm.xlu0 %4337, %v841_v60   ;;  %v314_v57 = vld [vmem:[%s9156_s1 + $0x978] sm:$0xff]  ;;  %v313_v58 = vld [vmem:[%s9156_s1 + $0x970] sm:$0xff] }
 0x2bf   :  { %v858_v59 = vld [vmem:[%s9155_s0 + $0xb78] sm:$0xff]  ;;  %v857_v60 = vld [vmem:[%s9155_s0 + $0xb70] sm:$0xff] }
 0x2c0   :  { %4139 = vst.msk [vmem:[%s9157_s2 + $0x8f8] sm:$0xff] %vm3851_vm0, %v3658_v63  ;;  %4138 = vst.msk [vmem:[%s9157_s2 + $0x8f0] sm:$0xff] %vm3851_vm0, %v3657_v0 }
 0x2c1   :  { %v2419_v5 = vpop.permute.xlu1 %2418  ;;  %v2414_v6 = vpop.permute.xlu0 %2413 }
 0x2c2   :  { %v3660_v7 = vmul.f32 %v2419_v5, %v300_v1  ;;  %v3659_v8 = vmul.f32 %v2414_v6, %v299_v2  ;;  %2738 = vperm.xlu1 %4338, %v844_v3   ;;  %2733 = vperm.xlu0 %4337, %v843_v4   ;;  %v316_v1 = vld [vmem:[%s9156_s1 + $0x988] sm:$0xff]  ;;  %v315_v2 = vld [vmem:[%s9156_s1 + $0x980] sm:$0xff] }
 0x2c3   :  { %v860_v3 = vld [vmem:[%s9155_s0 + $0xb88] sm:$0xff]  ;;  %v859_v4 = vld [vmem:[%s9155_s0 + $0xb80] sm:$0xff] }
 0x2c4   :  { %4141 = vst.msk [vmem:[%s9157_s2 + $0x908] sm:$0xff] %vm3851_vm0, %v3660_v7  ;;  %4140 = vst.msk [vmem:[%s9157_s2 + $0x900] sm:$0xff] %vm3851_vm0, %v3659_v8 }
 0x2c5   :  { %v2429_v13 = vpop.permute.xlu1 %2428  ;;  %v2424_v14 = vpop.permute.xlu0 %2423 }
 0x2c6   :  { %v3662_v15 = vmul.f32 %v2429_v13, %v302_v9  ;;  %v3661_v16 = vmul.f32 %v2424_v14, %v301_v10  ;;  %2748 = vperm.xlu1 %4338, %v846_v11   ;;  %2743 = vperm.xlu0 %4337, %v845_v12   ;;  %v318_v9 = vld [vmem:[%s9156_s1 + $0x998] sm:$0xff]  ;;  %v317_v10 = vld [vmem:[%s9156_s1 + $0x990] sm:$0xff] }
 0x2c7   :  { %v862_v11 = vld [vmem:[%s9155_s0 + $0xb98] sm:$0xff]  ;;  %v861_v12 = vld [vmem:[%s9155_s0 + $0xb90] sm:$0xff] }
 0x2c8   :  { %4143 = vst.msk [vmem:[%s9157_s2 + $0x918] sm:$0xff] %vm3851_vm0, %v3662_v15  ;;  %4142 = vst.msk [vmem:[%s9157_s2 + $0x910] sm:$0xff] %vm3851_vm0, %v3661_v16 }
 0x2c9   :  { %v2439_v21 = vpop.permute.xlu1 %2438  ;;  %v2434_v22 = vpop.permute.xlu0 %2433 }
 0x2ca   :  { %v3664_v23 = vmul.f32 %v2439_v21, %v304_v17  ;;  %v3663_v24 = vmul.f32 %v2434_v22, %v303_v18  ;;  %2758 = vperm.xlu1 %4338, %v848_v19   ;;  %2753 = vperm.xlu0 %4337, %v847_v20   ;;  %v320_v17 = vld [vmem:[%s9156_s1 + $0x9a8] sm:$0xff]  ;;  %v319_v18 = vld [vmem:[%s9156_s1 + $0x9a0] sm:$0xff] }
 0x2cb   :  { %v864_v19 = vld [vmem:[%s9155_s0 + $0xba8] sm:$0xff]  ;;  %v863_v20 = vld [vmem:[%s9155_s0 + $0xba0] sm:$0xff] }
 0x2cc   :  { %4145 = vst.msk [vmem:[%s9157_s2 + $0x928] sm:$0xff] %vm3851_vm0, %v3664_v23  ;;  %4144 = vst.msk [vmem:[%s9157_s2 + $0x920] sm:$0xff] %vm3851_vm0, %v3663_v24 }
 0x2cd   :  { %v2449_v29 = vpop.permute.xlu1 %2448  ;;  %v2444_v30 = vpop.permute.xlu0 %2443 }
 0x2ce   :  { %v3666_v31 = vmul.f32 %v2449_v29, %v306_v25  ;;  %v3665_v32 = vmul.f32 %v2444_v30, %v305_v26  ;;  %2768 = vperm.xlu1 %4338, %v850_v27   ;;  %2763 = vperm.xlu0 %4337, %v849_v28   ;;  %v322_v25 = vld [vmem:[%s9156_s1 + $0x9b8] sm:$0xff]  ;;  %v321_v26 = vld [vmem:[%s9156_s1 + $0x9b0] sm:$0xff] }
 0x2cf   :  { %v866_v27 = vld [vmem:[%s9155_s0 + $0xbb8] sm:$0xff]  ;;  %v865_v28 = vld [vmem:[%s9155_s0 + $0xbb0] sm:$0xff] }
 0x2d0   :  { %4147 = vst.msk [vmem:[%s9157_s2 + $0x938] sm:$0xff] %vm3851_vm0, %v3666_v31  ;;  %4146 = vst.msk [vmem:[%s9157_s2 + $0x930] sm:$0xff] %vm3851_vm0, %v3665_v32 }
 0x2d1   :  { %v2459_v37 = vpop.permute.xlu1 %2458  ;;  %v2454_v38 = vpop.permute.xlu0 %2453 }
 0x2d2   :  { %v3668_v39 = vmul.f32 %v2459_v37, %v308_v33  ;;  %v3667_v40 = vmul.f32 %v2454_v38, %v307_v34  ;;  %2778 = vperm.xlu1 %4338, %v852_v35   ;;  %2773 = vperm.xlu0 %4337, %v851_v36   ;;  %v324_v33 = vld [vmem:[%s9156_s1 + $0x9c8] sm:$0xff]  ;;  %v323_v34 = vld [vmem:[%s9156_s1 + $0x9c0] sm:$0xff] }
 0x2d3   :  { %v868_v35 = vld [vmem:[%s9155_s0 + $0xbc8] sm:$0xff]  ;;  %v867_v36 = vld [vmem:[%s9155_s0 + $0xbc0] sm:$0xff] }
 0x2d4   :  { %4149 = vst.msk [vmem:[%s9157_s2 + $0x948] sm:$0xff] %vm3851_vm0, %v3668_v39  ;;  %4148 = vst.msk [vmem:[%s9157_s2 + $0x940] sm:$0xff] %vm3851_vm0, %v3667_v40 }
 0x2d5   :  { %v2469_v45 = vpop.permute.xlu1 %2468  ;;  %v2464_v46 = vpop.permute.xlu0 %2463 }
 0x2d6   :  { %v3670_v47 = vmul.f32 %v2469_v45, %v310_v41  ;;  %v3669_v48 = vmul.f32 %v2464_v46, %v309_v42  ;;  %2788 = vperm.xlu1 %4338, %v854_v43   ;;  %2783 = vperm.xlu0 %4337, %v853_v44   ;;  %v326_v41 = vld [vmem:[%s9156_s1 + $0x9d8] sm:$0xff]  ;;  %v325_v42 = vld [vmem:[%s9156_s1 + $0x9d0] sm:$0xff] }
 0x2d7   :  { %v870_v43 = vld [vmem:[%s9155_s0 + $0xbd8] sm:$0xff]  ;;  %v869_v44 = vld [vmem:[%s9155_s0 + $0xbd0] sm:$0xff] }
 0x2d8   :  { %4151 = vst.msk [vmem:[%s9157_s2 + $0x958] sm:$0xff] %vm3851_vm0, %v3670_v47  ;;  %4150 = vst.msk [vmem:[%s9157_s2 + $0x950] sm:$0xff] %vm3851_vm0, %v3669_v48 }
 0x2d9   :  { %v2479_v53 = vpop.permute.xlu1 %2478  ;;  %v2474_v54 = vpop.permute.xlu0 %2473 }
 0x2da   :  { %v3672_v55 = vmul.f32 %v2479_v53, %v312_v49  ;;  %v3671_v56 = vmul.f32 %v2474_v54, %v311_v50  ;;  %2798 = vperm.xlu1 %4338, %v856_v51   ;;  %2793 = vperm.xlu0 %4337, %v855_v52   ;;  %v328_v49 = vld [vmem:[%s9156_s1 + $0x9e8] sm:$0xff]  ;;  %v327_v50 = vld [vmem:[%s9156_s1 + $0x9e0] sm:$0xff] }
 0x2db   :  { %v872_v51 = vld [vmem:[%s9155_s0 + $0xbe8] sm:$0xff]  ;;  %v871_v52 = vld [vmem:[%s9155_s0 + $0xbe0] sm:$0xff] }
 0x2dc   :  { %4153 = vst.msk [vmem:[%s9157_s2 + $0x968] sm:$0xff] %vm3851_vm0, %v3672_v55  ;;  %4152 = vst.msk [vmem:[%s9157_s2 + $0x960] sm:$0xff] %vm3851_vm0, %v3671_v56 }
 0x2dd   :  { %v2489_v61 = vpop.permute.xlu1 %2488  ;;  %v2484_v62 = vpop.permute.xlu0 %2483 }
 0x2de   :  { %v3674_v63 = vmul.f32 %v2489_v61, %v314_v57  ;;  %v3673_v0 = vmul.f32 %v2484_v62, %v313_v58  ;;  %2808 = vperm.xlu1 %4338, %v858_v59   ;;  %2803 = vperm.xlu0 %4337, %v857_v60   ;;  %v330_v57 = vld [vmem:[%s9156_s1 + $0x9f8] sm:$0xff]  ;;  %v329_v58 = vld [vmem:[%s9156_s1 + $0x9f0] sm:$0xff] }
 0x2df   :  { %v874_v59 = vld [vmem:[%s9155_s0 + $0xbf8] sm:$0xff]  ;;  %v873_v60 = vld [vmem:[%s9155_s0 + $0xbf0] sm:$0xff] }
 0x2e0   :  { %4155 = vst.msk [vmem:[%s9157_s2 + $0x978] sm:$0xff] %vm3851_vm0, %v3674_v63  ;;  %4154 = vst.msk [vmem:[%s9157_s2 + $0x970] sm:$0xff] %vm3851_vm0, %v3673_v0 }
 0x2e1   :  { %v2499_v5 = vpop.permute.xlu1 %2498  ;;  %v2494_v6 = vpop.permute.xlu0 %2493 }
 0x2e2   :  { %v3676_v7 = vmul.f32 %v2499_v5, %v316_v1  ;;  %v3675_v8 = vmul.f32 %v2494_v6, %v315_v2  ;;  %2818 = vperm.xlu1 %4338, %v860_v3   ;;  %2813 = vperm.xlu0 %4337, %v859_v4   ;;  %v332_v1 = vld [vmem:[%s9156_s1 + $0xa08] sm:$0xff]  ;;  %v331_v2 = vld [vmem:[%s9156_s1 + $0xa00] sm:$0xff] }
 0x2e3   :  { %v876_v3 = vld [vmem:[%s9155_s0 + $0xc08] sm:$0xff]  ;;  %v875_v4 = vld [vmem:[%s9155_s0 + $0xc00] sm:$0xff] }
 0x2e4   :  { %4157 = vst.msk [vmem:[%s9157_s2 + $0x988] sm:$0xff] %vm3851_vm0, %v3676_v7  ;;  %4156 = vst.msk [vmem:[%s9157_s2 + $0x980] sm:$0xff] %vm3851_vm0, %v3675_v8 }
 0x2e5   :  { %v2509_v13 = vpop.permute.xlu1 %2508  ;;  %v2504_v14 = vpop.permute.xlu0 %2503 }
 0x2e6   :  { %v3678_v15 = vmul.f32 %v2509_v13, %v318_v9  ;;  %v3677_v16 = vmul.f32 %v2504_v14, %v317_v10  ;;  %2828 = vperm.xlu1 %4338, %v862_v11   ;;  %2823 = vperm.xlu0 %4337, %v861_v12   ;;  %v334_v9 = vld [vmem:[%s9156_s1 + $0xa18] sm:$0xff]  ;;  %v333_v10 = vld [vmem:[%s9156_s1 + $0xa10] sm:$0xff] }
 0x2e7   :  { %v878_v11 = vld [vmem:[%s9155_s0 + $0xc18] sm:$0xff]  ;;  %v877_v12 = vld [vmem:[%s9155_s0 + $0xc10] sm:$0xff] }
 0x2e8   :  { %4159 = vst.msk [vmem:[%s9157_s2 + $0x998] sm:$0xff] %vm3851_vm0, %v3678_v15  ;;  %4158 = vst.msk [vmem:[%s9157_s2 + $0x990] sm:$0xff] %vm3851_vm0, %v3677_v16 }
 0x2e9   :  { %v2519_v21 = vpop.permute.xlu1 %2518  ;;  %v2514_v22 = vpop.permute.xlu0 %2513 }
 0x2ea   :  { %v3680_v23 = vmul.f32 %v2519_v21, %v320_v17  ;;  %v3679_v24 = vmul.f32 %v2514_v22, %v319_v18  ;;  %2838 = vperm.xlu1 %4338, %v864_v19   ;;  %2833 = vperm.xlu0 %4337, %v863_v20   ;;  %v336_v17 = vld [vmem:[%s9156_s1 + $0xa28] sm:$0xff]  ;;  %v335_v18 = vld [vmem:[%s9156_s1 + $0xa20] sm:$0xff] }
 0x2eb   :  { %v880_v19 = vld [vmem:[%s9155_s0 + $0xc28] sm:$0xff]  ;;  %v879_v20 = vld [vmem:[%s9155_s0 + $0xc20] sm:$0xff] }
 0x2ec   :  { %4161 = vst.msk [vmem:[%s9157_s2 + $0x9a8] sm:$0xff] %vm3851_vm0, %v3680_v23  ;;  %4160 = vst.msk [vmem:[%s9157_s2 + $0x9a0] sm:$0xff] %vm3851_vm0, %v3679_v24 }
 0x2ed   :  { %v2529_v29 = vpop.permute.xlu1 %2528  ;;  %v2524_v30 = vpop.permute.xlu0 %2523 }
 0x2ee   :  { %v3682_v31 = vmul.f32 %v2529_v29, %v322_v25  ;;  %v3681_v32 = vmul.f32 %v2524_v30, %v321_v26  ;;  %2848 = vperm.xlu1 %4338, %v866_v27   ;;  %2843 = vperm.xlu0 %4337, %v865_v28   ;;  %v338_v25 = vld [vmem:[%s9156_s1 + $0xa38] sm:$0xff]  ;;  %v337_v26 = vld [vmem:[%s9156_s1 + $0xa30] sm:$0xff] }
 0x2ef   :  { %v882_v27 = vld [vmem:[%s9155_s0 + $0xc38] sm:$0xff]  ;;  %v881_v28 = vld [vmem:[%s9155_s0 + $0xc30] sm:$0xff] }
 0x2f0   :  { %4163 = vst.msk [vmem:[%s9157_s2 + $0x9b8] sm:$0xff] %vm3851_vm0, %v3682_v31  ;;  %4162 = vst.msk [vmem:[%s9157_s2 + $0x9b0] sm:$0xff] %vm3851_vm0, %v3681_v32 }
 0x2f1   :  { %v2539_v37 = vpop.permute.xlu1 %2538  ;;  %v2534_v38 = vpop.permute.xlu0 %2533 }
 0x2f2   :  { %v3684_v39 = vmul.f32 %v2539_v37, %v324_v33  ;;  %v3683_v40 = vmul.f32 %v2534_v38, %v323_v34  ;;  %2858 = vperm.xlu1 %4338, %v868_v35   ;;  %2853 = vperm.xlu0 %4337, %v867_v36   ;;  %v340_v33 = vld [vmem:[%s9156_s1 + $0xa48] sm:$0xff]  ;;  %v339_v34 = vld [vmem:[%s9156_s1 + $0xa40] sm:$0xff] }
 0x2f3   :  { %v884_v35 = vld [vmem:[%s9155_s0 + $0xc48] sm:$0xff]  ;;  %v883_v36 = vld [vmem:[%s9155_s0 + $0xc40] sm:$0xff] }
 0x2f4   :  { %4165 = vst.msk [vmem:[%s9157_s2 + $0x9c8] sm:$0xff] %vm3851_vm0, %v3684_v39  ;;  %4164 = vst.msk [vmem:[%s9157_s2 + $0x9c0] sm:$0xff] %vm3851_vm0, %v3683_v40 }
 0x2f5   :  { %v2549_v45 = vpop.permute.xlu1 %2548  ;;  %v2544_v46 = vpop.permute.xlu0 %2543 }
 0x2f6   :  { %v3686_v47 = vmul.f32 %v2549_v45, %v326_v41  ;;  %v3685_v48 = vmul.f32 %v2544_v46, %v325_v42  ;;  %2868 = vperm.xlu1 %4338, %v870_v43   ;;  %2863 = vperm.xlu0 %4337, %v869_v44   ;;  %v342_v41 = vld [vmem:[%s9156_s1 + $0xa58] sm:$0xff]  ;;  %v341_v42 = vld [vmem:[%s9156_s1 + $0xa50] sm:$0xff] }
 0x2f7   :  { %v886_v43 = vld [vmem:[%s9155_s0 + $0xc58] sm:$0xff]  ;;  %v885_v44 = vld [vmem:[%s9155_s0 + $0xc50] sm:$0xff] }
 0x2f8   :  { %4167 = vst.msk [vmem:[%s9157_s2 + $0x9d8] sm:$0xff] %vm3851_vm0, %v3686_v47  ;;  %4166 = vst.msk [vmem:[%s9157_s2 + $0x9d0] sm:$0xff] %vm3851_vm0, %v3685_v48 }
 0x2f9   :  { %v2559_v53 = vpop.permute.xlu1 %2558  ;;  %v2554_v54 = vpop.permute.xlu0 %2553 }
 0x2fa   :  { %v3688_v55 = vmul.f32 %v2559_v53, %v328_v49  ;;  %v3687_v56 = vmul.f32 %v2554_v54, %v327_v50  ;;  %2878 = vperm.xlu1 %4338, %v872_v51   ;;  %2873 = vperm.xlu0 %4337, %v871_v52   ;;  %v344_v49 = vld [vmem:[%s9156_s1 + $0xa68] sm:$0xff]  ;;  %v343_v50 = vld [vmem:[%s9156_s1 + $0xa60] sm:$0xff] }
 0x2fb   :  { %v888_v51 = vld [vmem:[%s9155_s0 + $0xc68] sm:$0xff]  ;;  %v887_v52 = vld [vmem:[%s9155_s0 + $0xc60] sm:$0xff] }
 0x2fc   :  { %4169 = vst.msk [vmem:[%s9157_s2 + $0x9e8] sm:$0xff] %vm3851_vm0, %v3688_v55  ;;  %4168 = vst.msk [vmem:[%s9157_s2 + $0x9e0] sm:$0xff] %vm3851_vm0, %v3687_v56 }
 0x2fd   :  { %v2569_v61 = vpop.permute.xlu1 %2568  ;;  %v2564_v62 = vpop.permute.xlu0 %2563 }
 0x2fe   :  { %v3690_v63 = vmul.f32 %v2569_v61, %v330_v57  ;;  %v3689_v0 = vmul.f32 %v2564_v62, %v329_v58  ;;  %2888 = vperm.xlu1 %4338, %v874_v59   ;;  %2883 = vperm.xlu0 %4337, %v873_v60   ;;  %v346_v57 = vld [vmem:[%s9156_s1 + $0xa78] sm:$0xff]  ;;  %v345_v58 = vld [vmem:[%s9156_s1 + $0xa70] sm:$0xff] }
 0x2ff   :  { %v890_v59 = vld [vmem:[%s9155_s0 + $0xc78] sm:$0xff]  ;;  %v889_v60 = vld [vmem:[%s9155_s0 + $0xc70] sm:$0xff] }
 0x300   :  { %4171 = vst.msk [vmem:[%s9157_s2 + $0x9f8] sm:$0xff] %vm3851_vm0, %v3690_v63  ;;  %4170 = vst.msk [vmem:[%s9157_s2 + $0x9f0] sm:$0xff] %vm3851_vm0, %v3689_v0 }
 0x301   :  { %v2579_v5 = vpop.permute.xlu1 %2578  ;;  %v2574_v6 = vpop.permute.xlu0 %2573 }
 0x302   :  { %v3692_v7 = vmul.f32 %v2579_v5, %v332_v1  ;;  %v3691_v8 = vmul.f32 %v2574_v6, %v331_v2  ;;  %2898 = vperm.xlu1 %4338, %v876_v3   ;;  %2893 = vperm.xlu0 %4337, %v875_v4   ;;  %v348_v1 = vld [vmem:[%s9156_s1 + $0xa88] sm:$0xff]  ;;  %v347_v2 = vld [vmem:[%s9156_s1 + $0xa80] sm:$0xff] }
 0x303   :  { %v892_v3 = vld [vmem:[%s9155_s0 + $0xc88] sm:$0xff]  ;;  %v891_v4 = vld [vmem:[%s9155_s0 + $0xc80] sm:$0xff] }
 0x304   :  { %4173 = vst.msk [vmem:[%s9157_s2 + $0xa08] sm:$0xff] %vm3851_vm0, %v3692_v7  ;;  %4172 = vst.msk [vmem:[%s9157_s2 + $0xa00] sm:$0xff] %vm3851_vm0, %v3691_v8 }
 0x305   :  { %v2589_v13 = vpop.permute.xlu1 %2588  ;;  %v2584_v14 = vpop.permute.xlu0 %2583 }
 0x306   :  { %v3694_v15 = vmul.f32 %v2589_v13, %v334_v9  ;;  %v3693_v16 = vmul.f32 %v2584_v14, %v333_v10  ;;  %2908 = vperm.xlu1 %4338, %v878_v11   ;;  %2903 = vperm.xlu0 %4337, %v877_v12   ;;  %v350_v9 = vld [vmem:[%s9156_s1 + $0xa98] sm:$0xff]  ;;  %v349_v10 = vld [vmem:[%s9156_s1 + $0xa90] sm:$0xff] }
 0x307   :  { %v894_v11 = vld [vmem:[%s9155_s0 + $0xc98] sm:$0xff]  ;;  %v893_v12 = vld [vmem:[%s9155_s0 + $0xc90] sm:$0xff] }
 0x308   :  { %4175 = vst.msk [vmem:[%s9157_s2 + $0xa18] sm:$0xff] %vm3851_vm0, %v3694_v15  ;;  %4174 = vst.msk [vmem:[%s9157_s2 + $0xa10] sm:$0xff] %vm3851_vm0, %v3693_v16 }
 0x309   :  { %v2599_v21 = vpop.permute.xlu1 %2598  ;;  %v2594_v22 = vpop.permute.xlu0 %2593 }
 0x30a   :  { %v3696_v23 = vmul.f32 %v2599_v21, %v336_v17  ;;  %v3695_v24 = vmul.f32 %v2594_v22, %v335_v18  ;;  %2918 = vperm.xlu1 %4338, %v880_v19   ;;  %2913 = vperm.xlu0 %4337, %v879_v20   ;;  %v352_v17 = vld [vmem:[%s9156_s1 + $0xaa8] sm:$0xff]  ;;  %v351_v18 = vld [vmem:[%s9156_s1 + $0xaa0] sm:$0xff] }
 0x30b   :  { %v896_v19 = vld [vmem:[%s9155_s0 + $0xca8] sm:$0xff]  ;;  %v895_v20 = vld [vmem:[%s9155_s0 + $0xca0] sm:$0xff] }
 0x30c   :  { %4177 = vst.msk [vmem:[%s9157_s2 + $0xa28] sm:$0xff] %vm3851_vm0, %v3696_v23  ;;  %4176 = vst.msk [vmem:[%s9157_s2 + $0xa20] sm:$0xff] %vm3851_vm0, %v3695_v24 }
 0x30d   :  { %v2609_v29 = vpop.permute.xlu1 %2608  ;;  %v2604_v30 = vpop.permute.xlu0 %2603 }
 0x30e   :  { %v3698_v31 = vmul.f32 %v2609_v29, %v338_v25  ;;  %v3697_v32 = vmul.f32 %v2604_v30, %v337_v26  ;;  %2928 = vperm.xlu1 %4338, %v882_v27   ;;  %2923 = vperm.xlu0 %4337, %v881_v28   ;;  %v354_v25 = vld [vmem:[%s9156_s1 + $0xab8] sm:$0xff]  ;;  %v353_v26 = vld [vmem:[%s9156_s1 + $0xab0] sm:$0xff] }
 0x30f   :  { %v898_v27 = vld [vmem:[%s9155_s0 + $0xcb8] sm:$0xff]  ;;  %v897_v28 = vld [vmem:[%s9155_s0 + $0xcb0] sm:$0xff] }
 0x310   :  { %4179 = vst.msk [vmem:[%s9157_s2 + $0xa38] sm:$0xff] %vm3851_vm0, %v3698_v31  ;;  %4178 = vst.msk [vmem:[%s9157_s2 + $0xa30] sm:$0xff] %vm3851_vm0, %v3697_v32 }
 0x311   :  { %v2619_v37 = vpop.permute.xlu1 %2618  ;;  %v2614_v38 = vpop.permute.xlu0 %2613 }
 0x312   :  { %v3700_v39 = vmul.f32 %v2619_v37, %v340_v33  ;;  %v3699_v40 = vmul.f32 %v2614_v38, %v339_v34  ;;  %2938 = vperm.xlu1 %4338, %v884_v35   ;;  %2933 = vperm.xlu0 %4337, %v883_v36   ;;  %v356_v33 = vld [vmem:[%s9156_s1 + $0xac8] sm:$0xff]  ;;  %v355_v34 = vld [vmem:[%s9156_s1 + $0xac0] sm:$0xff] }
 0x313   :  { %v900_v35 = vld [vmem:[%s9155_s0 + $0xcc8] sm:$0xff]  ;;  %v899_v36 = vld [vmem:[%s9155_s0 + $0xcc0] sm:$0xff] }
 0x314   :  { %4181 = vst.msk [vmem:[%s9157_s2 + $0xa48] sm:$0xff] %vm3851_vm0, %v3700_v39  ;;  %4180 = vst.msk [vmem:[%s9157_s2 + $0xa40] sm:$0xff] %vm3851_vm0, %v3699_v40 }
 0x315   :  { %v2629_v45 = vpop.permute.xlu1 %2628  ;;  %v2624_v46 = vpop.permute.xlu0 %2623 }
 0x316   :  { %v3702_v47 = vmul.f32 %v2629_v45, %v342_v41  ;;  %v3701_v48 = vmul.f32 %v2624_v46, %v341_v42  ;;  %2948 = vperm.xlu1 %4338, %v886_v43   ;;  %2943 = vperm.xlu0 %4337, %v885_v44   ;;  %v358_v41 = vld [vmem:[%s9156_s1 + $0xad8] sm:$0xff]  ;;  %v357_v42 = vld [vmem:[%s9156_s1 + $0xad0] sm:$0xff] }
 0x317   :  { %v902_v43 = vld [vmem:[%s9155_s0 + $0xcd8] sm:$0xff]  ;;  %v901_v44 = vld [vmem:[%s9155_s0 + $0xcd0] sm:$0xff] }
 0x318   :  { %4183 = vst.msk [vmem:[%s9157_s2 + $0xa58] sm:$0xff] %vm3851_vm0, %v3702_v47  ;;  %4182 = vst.msk [vmem:[%s9157_s2 + $0xa50] sm:$0xff] %vm3851_vm0, %v3701_v48 }
 0x319   :  { %v2639_v53 = vpop.permute.xlu1 %2638  ;;  %v2634_v54 = vpop.permute.xlu0 %2633 }
 0x31a   :  { %v3704_v55 = vmul.f32 %v2639_v53, %v344_v49  ;;  %v3703_v56 = vmul.f32 %v2634_v54, %v343_v50  ;;  %2958 = vperm.xlu1 %4338, %v888_v51   ;;  %2953 = vperm.xlu0 %4337, %v887_v52   ;;  %v360_v49 = vld [vmem:[%s9156_s1 + $0xae8] sm:$0xff]  ;;  %v359_v50 = vld [vmem:[%s9156_s1 + $0xae0] sm:$0xff] }
 0x31b   :  { %v904_v51 = vld [vmem:[%s9155_s0 + $0xce8] sm:$0xff]  ;;  %v903_v52 = vld [vmem:[%s9155_s0 + $0xce0] sm:$0xff] }
 0x31c   :  { %4185 = vst.msk [vmem:[%s9157_s2 + $0xa68] sm:$0xff] %vm3851_vm0, %v3704_v55  ;;  %4184 = vst.msk [vmem:[%s9157_s2 + $0xa60] sm:$0xff] %vm3851_vm0, %v3703_v56 }
 0x31d   :  { %v2649_v61 = vpop.permute.xlu1 %2648  ;;  %v2644_v62 = vpop.permute.xlu0 %2643 }
 0x31e   :  { %v3706_v63 = vmul.f32 %v2649_v61, %v346_v57  ;;  %v3705_v0 = vmul.f32 %v2644_v62, %v345_v58  ;;  %2968 = vperm.xlu1 %4338, %v890_v59   ;;  %2963 = vperm.xlu0 %4337, %v889_v60   ;;  %v362_v57 = vld [vmem:[%s9156_s1 + $0xaf8] sm:$0xff]  ;;  %v361_v58 = vld [vmem:[%s9156_s1 + $0xaf0] sm:$0xff] }
 0x31f   :  { %v906_v59 = vld [vmem:[%s9155_s0 + $0xcf8] sm:$0xff]  ;;  %v905_v60 = vld [vmem:[%s9155_s0 + $0xcf0] sm:$0xff] }
 0x320   :  { %4187 = vst.msk [vmem:[%s9157_s2 + $0xa78] sm:$0xff] %vm3851_vm0, %v3706_v63  ;;  %4186 = vst.msk [vmem:[%s9157_s2 + $0xa70] sm:$0xff] %vm3851_vm0, %v3705_v0 }
 0x321   :  { %v2659_v5 = vpop.permute.xlu1 %2658  ;;  %v2654_v6 = vpop.permute.xlu0 %2653 }
 0x322   :  { %v3708_v7 = vmul.f32 %v2659_v5, %v348_v1  ;;  %v3707_v8 = vmul.f32 %v2654_v6, %v347_v2  ;;  %2978 = vperm.xlu1 %4338, %v892_v3   ;;  %2973 = vperm.xlu0 %4337, %v891_v4   ;;  %v364_v1 = vld [vmem:[%s9156_s1 + $0xb08] sm:$0xff]  ;;  %v363_v2 = vld [vmem:[%s9156_s1 + $0xb00] sm:$0xff] }
 0x323   :  { %v908_v3 = vld [vmem:[%s9155_s0 + $0xd08] sm:$0xff]  ;;  %v907_v4 = vld [vmem:[%s9155_s0 + $0xd00] sm:$0xff] }
 0x324   :  { %4189 = vst.msk [vmem:[%s9157_s2 + $0xa88] sm:$0xff] %vm3851_vm0, %v3708_v7  ;;  %4188 = vst.msk [vmem:[%s9157_s2 + $0xa80] sm:$0xff] %vm3851_vm0, %v3707_v8 }
 0x325   :  { %v2669_v13 = vpop.permute.xlu1 %2668  ;;  %v2664_v14 = vpop.permute.xlu0 %2663 }
 0x326   :  { %v3710_v15 = vmul.f32 %v2669_v13, %v350_v9  ;;  %v3709_v16 = vmul.f32 %v2664_v14, %v349_v10  ;;  %2988 = vperm.xlu1 %4338, %v894_v11   ;;  %2983 = vperm.xlu0 %4337, %v893_v12   ;;  %v366_v9 = vld [vmem:[%s9156_s1 + $0xb18] sm:$0xff]  ;;  %v365_v10 = vld [vmem:[%s9156_s1 + $0xb10] sm:$0xff] }
 0x327   :  { %v910_v11 = vld [vmem:[%s9155_s0 + $0xd18] sm:$0xff]  ;;  %v909_v12 = vld [vmem:[%s9155_s0 + $0xd10] sm:$0xff] }
 0x328   :  { %4191 = vst.msk [vmem:[%s9157_s2 + $0xa98] sm:$0xff] %vm3851_vm0, %v3710_v15  ;;  %4190 = vst.msk [vmem:[%s9157_s2 + $0xa90] sm:$0xff] %vm3851_vm0, %v3709_v16 }
 0x329   :  { %v2679_v21 = vpop.permute.xlu1 %2678  ;;  %v2674_v22 = vpop.permute.xlu0 %2673 }
 0x32a   :  { %v3712_v23 = vmul.f32 %v2679_v21, %v352_v17  ;;  %v3711_v24 = vmul.f32 %v2674_v22, %v351_v18  ;;  %2998 = vperm.xlu1 %4338, %v896_v19   ;;  %2993 = vperm.xlu0 %4337, %v895_v20   ;;  %v368_v17 = vld [vmem:[%s9156_s1 + $0xb28] sm:$0xff]  ;;  %v367_v18 = vld [vmem:[%s9156_s1 + $0xb20] sm:$0xff] }
 0x32b   :  { %v912_v19 = vld [vmem:[%s9155_s0 + $0xd28] sm:$0xff]  ;;  %v911_v20 = vld [vmem:[%s9155_s0 + $0xd20] sm:$0xff] }
 0x32c   :  { %4193 = vst.msk [vmem:[%s9157_s2 + $0xaa8] sm:$0xff] %vm3851_vm0, %v3712_v23  ;;  %4192 = vst.msk [vmem:[%s9157_s2 + $0xaa0] sm:$0xff] %vm3851_vm0, %v3711_v24 }
 0x32d   :  { %v2689_v29 = vpop.permute.xlu1 %2688  ;;  %v2684_v30 = vpop.permute.xlu0 %2683 }
 0x32e   :  { %v3714_v31 = vmul.f32 %v2689_v29, %v354_v25  ;;  %v3713_v32 = vmul.f32 %v2684_v30, %v353_v26  ;;  %3008 = vperm.xlu1 %4338, %v898_v27   ;;  %3003 = vperm.xlu0 %4337, %v897_v28   ;;  %v370_v25 = vld [vmem:[%s9156_s1 + $0xb38] sm:$0xff]  ;;  %v369_v26 = vld [vmem:[%s9156_s1 + $0xb30] sm:$0xff] }
 0x32f   :  { %v914_v27 = vld [vmem:[%s9155_s0 + $0xd38] sm:$0xff]  ;;  %v913_v28 = vld [vmem:[%s9155_s0 + $0xd30] sm:$0xff] }
 0x330   :  { %4195 = vst.msk [vmem:[%s9157_s2 + $0xab8] sm:$0xff] %vm3851_vm0, %v3714_v31  ;;  %4194 = vst.msk [vmem:[%s9157_s2 + $0xab0] sm:$0xff] %vm3851_vm0, %v3713_v32 }
 0x331   :  { %v2699_v37 = vpop.permute.xlu1 %2698  ;;  %v2694_v38 = vpop.permute.xlu0 %2693 }
 0x332   :  { %v3716_v39 = vmul.f32 %v2699_v37, %v356_v33  ;;  %v3715_v40 = vmul.f32 %v2694_v38, %v355_v34  ;;  %3018 = vperm.xlu1 %4338, %v900_v35   ;;  %3013 = vperm.xlu0 %4337, %v899_v36   ;;  %v372_v33 = vld [vmem:[%s9156_s1 + $0xb48] sm:$0xff]  ;;  %v371_v34 = vld [vmem:[%s9156_s1 + $0xb40] sm:$0xff] }
 0x333   :  { %v916_v35 = vld [vmem:[%s9155_s0 + $0xd48] sm:$0xff]  ;;  %v915_v36 = vld [vmem:[%s9155_s0 + $0xd40] sm:$0xff] }
 0x334   :  { %4197 = vst.msk [vmem:[%s9157_s2 + $0xac8] sm:$0xff] %vm3851_vm0, %v3716_v39  ;;  %4196 = vst.msk [vmem:[%s9157_s2 + $0xac0] sm:$0xff] %vm3851_vm0, %v3715_v40 }
 0x335   :  { %v2709_v45 = vpop.permute.xlu1 %2708  ;;  %v2704_v46 = vpop.permute.xlu0 %2703 }
 0x336   :  { %v3718_v47 = vmul.f32 %v2709_v45, %v358_v41  ;;  %v3717_v48 = vmul.f32 %v2704_v46, %v357_v42  ;;  %3028 = vperm.xlu1 %4338, %v902_v43   ;;  %3023 = vperm.xlu0 %4337, %v901_v44   ;;  %v374_v41 = vld [vmem:[%s9156_s1 + $0xb58] sm:$0xff]  ;;  %v373_v42 = vld [vmem:[%s9156_s1 + $0xb50] sm:$0xff] }
 0x337   :  { %v918_v43 = vld [vmem:[%s9155_s0 + $0xd58] sm:$0xff]  ;;  %v917_v44 = vld [vmem:[%s9155_s0 + $0xd50] sm:$0xff] }
 0x338   :  { %4199 = vst.msk [vmem:[%s9157_s2 + $0xad8] sm:$0xff] %vm3851_vm0, %v3718_v47  ;;  %4198 = vst.msk [vmem:[%s9157_s2 + $0xad0] sm:$0xff] %vm3851_vm0, %v3717_v48 }
 0x339   :  { %v2719_v53 = vpop.permute.xlu1 %2718  ;;  %v2714_v54 = vpop.permute.xlu0 %2713 }
 0x33a   :  { %v3720_v55 = vmul.f32 %v2719_v53, %v360_v49  ;;  %v3719_v56 = vmul.f32 %v2714_v54, %v359_v50  ;;  %3038 = vperm.xlu1 %4338, %v904_v51   ;;  %3033 = vperm.xlu0 %4337, %v903_v52   ;;  %v376_v49 = vld [vmem:[%s9156_s1 + $0xb68] sm:$0xff]  ;;  %v375_v50 = vld [vmem:[%s9156_s1 + $0xb60] sm:$0xff] }
 0x33b   :  { %v920_v51 = vld [vmem:[%s9155_s0 + $0xd68] sm:$0xff]  ;;  %v919_v52 = vld [vmem:[%s9155_s0 + $0xd60] sm:$0xff] }
 0x33c   :  { %4201 = vst.msk [vmem:[%s9157_s2 + $0xae8] sm:$0xff] %vm3851_vm0, %v3720_v55  ;;  %4200 = vst.msk [vmem:[%s9157_s2 + $0xae0] sm:$0xff] %vm3851_vm0, %v3719_v56 }
 0x33d   :  { %v2729_v61 = vpop.permute.xlu1 %2728  ;;  %v2724_v62 = vpop.permute.xlu0 %2723 }
 0x33e   :  { %v3722_v63 = vmul.f32 %v2729_v61, %v362_v57  ;;  %v3721_v0 = vmul.f32 %v2724_v62, %v361_v58  ;;  %3048 = vperm.xlu1 %4338, %v906_v59   ;;  %3043 = vperm.xlu0 %4337, %v905_v60   ;;  %v378_v57 = vld [vmem:[%s9156_s1 + $0xb78] sm:$0xff]  ;;  %v377_v58 = vld [vmem:[%s9156_s1 + $0xb70] sm:$0xff] }
 0x33f   :  { %v922_v59 = vld [vmem:[%s9155_s0 + $0xd78] sm:$0xff]  ;;  %v921_v60 = vld [vmem:[%s9155_s0 + $0xd70] sm:$0xff] }
 0x340   :  { %4203 = vst.msk [vmem:[%s9157_s2 + $0xaf8] sm:$0xff] %vm3851_vm0, %v3722_v63  ;;  %4202 = vst.msk [vmem:[%s9157_s2 + $0xaf0] sm:$0xff] %vm3851_vm0, %v3721_v0 }
 0x341   :  { %v2739_v5 = vpop.permute.xlu1 %2738  ;;  %v2734_v6 = vpop.permute.xlu0 %2733 }
 0x342   :  { %v3724_v7 = vmul.f32 %v2739_v5, %v364_v1  ;;  %v3723_v8 = vmul.f32 %v2734_v6, %v363_v2  ;;  %3058 = vperm.xlu1 %4338, %v908_v3   ;;  %3053 = vperm.xlu0 %4337, %v907_v4   ;;  %v380_v1 = vld [vmem:[%s9156_s1 + $0xb88] sm:$0xff]  ;;  %v379_v2 = vld [vmem:[%s9156_s1 + $0xb80] sm:$0xff] }
 0x343   :  { %v924_v3 = vld [vmem:[%s9155_s0 + $0xd88] sm:$0xff]  ;;  %v923_v4 = vld [vmem:[%s9155_s0 + $0xd80] sm:$0xff] }
 0x344   :  { %4205 = vst.msk [vmem:[%s9157_s2 + $0xb08] sm:$0xff] %vm3851_vm0, %v3724_v7  ;;  %4204 = vst.msk [vmem:[%s9157_s2 + $0xb00] sm:$0xff] %vm3851_vm0, %v3723_v8 }
 0x345   :  { %v2749_v13 = vpop.permute.xlu1 %2748  ;;  %v2744_v14 = vpop.permute.xlu0 %2743 }
 0x346   :  { %v3726_v15 = vmul.f32 %v2749_v13, %v366_v9  ;;  %v3725_v16 = vmul.f32 %v2744_v14, %v365_v10  ;;  %3068 = vperm.xlu1 %4338, %v910_v11   ;;  %3063 = vperm.xlu0 %4337, %v909_v12   ;;  %v382_v9 = vld [vmem:[%s9156_s1 + $0xb98] sm:$0xff]  ;;  %v381_v10 = vld [vmem:[%s9156_s1 + $0xb90] sm:$0xff] }
 0x347   :  { %v926_v11 = vld [vmem:[%s9155_s0 + $0xd98] sm:$0xff]  ;;  %v925_v12 = vld [vmem:[%s9155_s0 + $0xd90] sm:$0xff] }
 0x348   :  { %4207 = vst.msk [vmem:[%s9157_s2 + $0xb18] sm:$0xff] %vm3851_vm0, %v3726_v15  ;;  %4206 = vst.msk [vmem:[%s9157_s2 + $0xb10] sm:$0xff] %vm3851_vm0, %v3725_v16 }
 0x349   :  { %v2759_v21 = vpop.permute.xlu1 %2758  ;;  %v2754_v22 = vpop.permute.xlu0 %2753 }
 0x34a   :  { %v3728_v23 = vmul.f32 %v2759_v21, %v368_v17  ;;  %v3727_v24 = vmul.f32 %v2754_v22, %v367_v18  ;;  %3078 = vperm.xlu1 %4338, %v912_v19   ;;  %3073 = vperm.xlu0 %4337, %v911_v20   ;;  %v384_v17 = vld [vmem:[%s9156_s1 + $0xba8] sm:$0xff]  ;;  %v383_v18 = vld [vmem:[%s9156_s1 + $0xba0] sm:$0xff] }
 0x34b   :  { %v928_v19 = vld [vmem:[%s9155_s0 + $0xda8] sm:$0xff]  ;;  %v927_v20 = vld [vmem:[%s9155_s0 + $0xda0] sm:$0xff] }
 0x34c   :  { %4209 = vst.msk [vmem:[%s9157_s2 + $0xb28] sm:$0xff] %vm3851_vm0, %v3728_v23  ;;  %4208 = vst.msk [vmem:[%s9157_s2 + $0xb20] sm:$0xff] %vm3851_vm0, %v3727_v24 }
 0x34d   :  { %v2769_v29 = vpop.permute.xlu1 %2768  ;;  %v2764_v30 = vpop.permute.xlu0 %2763 }
 0x34e   :  { %v3730_v31 = vmul.f32 %v2769_v29, %v370_v25  ;;  %v3729_v32 = vmul.f32 %v2764_v30, %v369_v26  ;;  %3088 = vperm.xlu1 %4338, %v914_v27   ;;  %3083 = vperm.xlu0 %4337, %v913_v28   ;;  %v386_v25 = vld [vmem:[%s9156_s1 + $0xbb8] sm:$0xff]  ;;  %v385_v26 = vld [vmem:[%s9156_s1 + $0xbb0] sm:$0xff] }
 0x34f   :  { %v930_v27 = vld [vmem:[%s9155_s0 + $0xdb8] sm:$0xff]  ;;  %v929_v28 = vld [vmem:[%s9155_s0 + $0xdb0] sm:$0xff] }
 0x350   :  { %4211 = vst.msk [vmem:[%s9157_s2 + $0xb38] sm:$0xff] %vm3851_vm0, %v3730_v31  ;;  %4210 = vst.msk [vmem:[%s9157_s2 + $0xb30] sm:$0xff] %vm3851_vm0, %v3729_v32 }
 0x351   :  { %v2779_v37 = vpop.permute.xlu1 %2778  ;;  %v2774_v38 = vpop.permute.xlu0 %2773 }
 0x352   :  { %v3732_v39 = vmul.f32 %v2779_v37, %v372_v33  ;;  %v3731_v40 = vmul.f32 %v2774_v38, %v371_v34  ;;  %3098 = vperm.xlu1 %4338, %v916_v35   ;;  %3093 = vperm.xlu0 %4337, %v915_v36   ;;  %v388_v33 = vld [vmem:[%s9156_s1 + $0xbc8] sm:$0xff]  ;;  %v387_v34 = vld [vmem:[%s9156_s1 + $0xbc0] sm:$0xff] }
 0x353   :  { %v932_v35 = vld [vmem:[%s9155_s0 + $0xdc8] sm:$0xff]  ;;  %v931_v36 = vld [vmem:[%s9155_s0 + $0xdc0] sm:$0xff] }
 0x354   :  { %4213 = vst.msk [vmem:[%s9157_s2 + $0xb48] sm:$0xff] %vm3851_vm0, %v3732_v39  ;;  %4212 = vst.msk [vmem:[%s9157_s2 + $0xb40] sm:$0xff] %vm3851_vm0, %v3731_v40 }
 0x355   :  { %v2789_v45 = vpop.permute.xlu1 %2788  ;;  %v2784_v46 = vpop.permute.xlu0 %2783 }
 0x356   :  { %v3734_v47 = vmul.f32 %v2789_v45, %v374_v41  ;;  %v3733_v48 = vmul.f32 %v2784_v46, %v373_v42  ;;  %3108 = vperm.xlu1 %4338, %v918_v43   ;;  %3103 = vperm.xlu0 %4337, %v917_v44   ;;  %v390_v41 = vld [vmem:[%s9156_s1 + $0xbd8] sm:$0xff]  ;;  %v389_v42 = vld [vmem:[%s9156_s1 + $0xbd0] sm:$0xff] }
 0x357   :  { %v934_v43 = vld [vmem:[%s9155_s0 + $0xdd8] sm:$0xff]  ;;  %v933_v44 = vld [vmem:[%s9155_s0 + $0xdd0] sm:$0xff] }
 0x358   :  { %4215 = vst.msk [vmem:[%s9157_s2 + $0xb58] sm:$0xff] %vm3851_vm0, %v3734_v47  ;;  %4214 = vst.msk [vmem:[%s9157_s2 + $0xb50] sm:$0xff] %vm3851_vm0, %v3733_v48 }
 0x359   :  { %v2799_v53 = vpop.permute.xlu1 %2798  ;;  %v2794_v54 = vpop.permute.xlu0 %2793 }
 0x35a   :  { %v3736_v55 = vmul.f32 %v2799_v53, %v376_v49  ;;  %v3735_v56 = vmul.f32 %v2794_v54, %v375_v50  ;;  %3118 = vperm.xlu1 %4338, %v920_v51   ;;  %3113 = vperm.xlu0 %4337, %v919_v52   ;;  %v392_v49 = vld [vmem:[%s9156_s1 + $0xbe8] sm:$0xff]  ;;  %v391_v50 = vld [vmem:[%s9156_s1 + $0xbe0] sm:$0xff] }
 0x35b   :  { %v936_v51 = vld [vmem:[%s9155_s0 + $0xde8] sm:$0xff]  ;;  %v935_v52 = vld [vmem:[%s9155_s0 + $0xde0] sm:$0xff] }
 0x35c   :  { %4217 = vst.msk [vmem:[%s9157_s2 + $0xb68] sm:$0xff] %vm3851_vm0, %v3736_v55  ;;  %4216 = vst.msk [vmem:[%s9157_s2 + $0xb60] sm:$0xff] %vm3851_vm0, %v3735_v56 }
 0x35d   :  { %v2809_v61 = vpop.permute.xlu1 %2808  ;;  %v2804_v62 = vpop.permute.xlu0 %2803 }
 0x35e   :  { %v3738_v63 = vmul.f32 %v2809_v61, %v378_v57  ;;  %v3737_v0 = vmul.f32 %v2804_v62, %v377_v58  ;;  %3128 = vperm.xlu1 %4338, %v922_v59   ;;  %3123 = vperm.xlu0 %4337, %v921_v60   ;;  %v394_v57 = vld [vmem:[%s9156_s1 + $0xbf8] sm:$0xff]  ;;  %v393_v58 = vld [vmem:[%s9156_s1 + $0xbf0] sm:$0xff] }
 0x35f   :  { %v938_v59 = vld [vmem:[%s9155_s0 + $0xdf8] sm:$0xff]  ;;  %v937_v60 = vld [vmem:[%s9155_s0 + $0xdf0] sm:$0xff] }
 0x360   :  { %4219 = vst.msk [vmem:[%s9157_s2 + $0xb78] sm:$0xff] %vm3851_vm0, %v3738_v63  ;;  %4218 = vst.msk [vmem:[%s9157_s2 + $0xb70] sm:$0xff] %vm3851_vm0, %v3737_v0 }
 0x361   :  { %v2819_v5 = vpop.permute.xlu1 %2818  ;;  %v2814_v6 = vpop.permute.xlu0 %2813 }
 0x362   :  { %v3740_v7 = vmul.f32 %v2819_v5, %v380_v1  ;;  %v3739_v8 = vmul.f32 %v2814_v6, %v379_v2  ;;  %3138 = vperm.xlu1 %4338, %v924_v3   ;;  %3133 = vperm.xlu0 %4337, %v923_v4   ;;  %v396_v1 = vld [vmem:[%s9156_s1 + $0xc08] sm:$0xff]  ;;  %v395_v2 = vld [vmem:[%s9156_s1 + $0xc00] sm:$0xff] }
 0x363   :  { %v940_v3 = vld [vmem:[%s9155_s0 + $0xe08] sm:$0xff]  ;;  %v939_v4 = vld [vmem:[%s9155_s0 + $0xe00] sm:$0xff] }
 0x364   :  { %4221 = vst.msk [vmem:[%s9157_s2 + $0xb88] sm:$0xff] %vm3851_vm0, %v3740_v7  ;;  %4220 = vst.msk [vmem:[%s9157_s2 + $0xb80] sm:$0xff] %vm3851_vm0, %v3739_v8 }
 0x365   :  { %v2829_v13 = vpop.permute.xlu1 %2828  ;;  %v2824_v14 = vpop.permute.xlu0 %2823 }
 0x366   :  { %v3742_v15 = vmul.f32 %v2829_v13, %v382_v9  ;;  %v3741_v16 = vmul.f32 %v2824_v14, %v381_v10  ;;  %3148 = vperm.xlu1 %4338, %v926_v11   ;;  %3143 = vperm.xlu0 %4337, %v925_v12   ;;  %v398_v9 = vld [vmem:[%s9156_s1 + $0xc18] sm:$0xff]  ;;  %v397_v10 = vld [vmem:[%s9156_s1 + $0xc10] sm:$0xff] }
 0x367   :  { %v942_v11 = vld [vmem:[%s9155_s0 + $0xe18] sm:$0xff]  ;;  %v941_v12 = vld [vmem:[%s9155_s0 + $0xe10] sm:$0xff] }
 0x368   :  { %4223 = vst.msk [vmem:[%s9157_s2 + $0xb98] sm:$0xff] %vm3851_vm0, %v3742_v15  ;;  %4222 = vst.msk [vmem:[%s9157_s2 + $0xb90] sm:$0xff] %vm3851_vm0, %v3741_v16 }
 0x369   :  { %v2839_v21 = vpop.permute.xlu1 %2838  ;;  %v2834_v22 = vpop.permute.xlu0 %2833 }
 0x36a   :  { %v3744_v23 = vmul.f32 %v2839_v21, %v384_v17  ;;  %v3743_v24 = vmul.f32 %v2834_v22, %v383_v18  ;;  %3158 = vperm.xlu1 %4338, %v928_v19   ;;  %3153 = vperm.xlu0 %4337, %v927_v20   ;;  %v400_v17 = vld [vmem:[%s9156_s1 + $0xc28] sm:$0xff]  ;;  %v399_v18 = vld [vmem:[%s9156_s1 + $0xc20] sm:$0xff] }
 0x36b   :  { %v944_v19 = vld [vmem:[%s9155_s0 + $0xe28] sm:$0xff]  ;;  %v943_v20 = vld [vmem:[%s9155_s0 + $0xe20] sm:$0xff] }
 0x36c   :  { %4225 = vst.msk [vmem:[%s9157_s2 + $0xba8] sm:$0xff] %vm3851_vm0, %v3744_v23  ;;  %4224 = vst.msk [vmem:[%s9157_s2 + $0xba0] sm:$0xff] %vm3851_vm0, %v3743_v24 }
 0x36d   :  { %v2849_v29 = vpop.permute.xlu1 %2848  ;;  %v2844_v30 = vpop.permute.xlu0 %2843 }
 0x36e   :  { %v3746_v31 = vmul.f32 %v2849_v29, %v386_v25  ;;  %v3745_v32 = vmul.f32 %v2844_v30, %v385_v26  ;;  %3168 = vperm.xlu1 %4338, %v930_v27   ;;  %3163 = vperm.xlu0 %4337, %v929_v28   ;;  %v402_v25 = vld [vmem:[%s9156_s1 + $0xc38] sm:$0xff]  ;;  %v401_v26 = vld [vmem:[%s9156_s1 + $0xc30] sm:$0xff] }
 0x36f   :  { %v946_v27 = vld [vmem:[%s9155_s0 + $0xe38] sm:$0xff]  ;;  %v945_v28 = vld [vmem:[%s9155_s0 + $0xe30] sm:$0xff] }
 0x370   :  { %4227 = vst.msk [vmem:[%s9157_s2 + $0xbb8] sm:$0xff] %vm3851_vm0, %v3746_v31  ;;  %4226 = vst.msk [vmem:[%s9157_s2 + $0xbb0] sm:$0xff] %vm3851_vm0, %v3745_v32 }
 0x371   :  { %v2859_v37 = vpop.permute.xlu1 %2858  ;;  %v2854_v38 = vpop.permute.xlu0 %2853 }
 0x372   :  { %v3748_v39 = vmul.f32 %v2859_v37, %v388_v33  ;;  %v3747_v40 = vmul.f32 %v2854_v38, %v387_v34  ;;  %3178 = vperm.xlu1 %4338, %v932_v35   ;;  %3173 = vperm.xlu0 %4337, %v931_v36   ;;  %v404_v33 = vld [vmem:[%s9156_s1 + $0xc48] sm:$0xff]  ;;  %v403_v34 = vld [vmem:[%s9156_s1 + $0xc40] sm:$0xff] }
 0x373   :  { %v948_v35 = vld [vmem:[%s9155_s0 + $0xe48] sm:$0xff]  ;;  %v947_v36 = vld [vmem:[%s9155_s0 + $0xe40] sm:$0xff] }
 0x374   :  { %4229 = vst.msk [vmem:[%s9157_s2 + $0xbc8] sm:$0xff] %vm3851_vm0, %v3748_v39  ;;  %4228 = vst.msk [vmem:[%s9157_s2 + $0xbc0] sm:$0xff] %vm3851_vm0, %v3747_v40 }
 0x375   :  { %v2869_v45 = vpop.permute.xlu1 %2868  ;;  %v2864_v46 = vpop.permute.xlu0 %2863 }
 0x376   :  { %v3750_v47 = vmul.f32 %v2869_v45, %v390_v41  ;;  %v3749_v48 = vmul.f32 %v2864_v46, %v389_v42  ;;  %3188 = vperm.xlu1 %4338, %v934_v43   ;;  %3183 = vperm.xlu0 %4337, %v933_v44   ;;  %v406_v41 = vld [vmem:[%s9156_s1 + $0xc58] sm:$0xff]  ;;  %v405_v42 = vld [vmem:[%s9156_s1 + $0xc50] sm:$0xff] }
 0x377   :  { %v950_v43 = vld [vmem:[%s9155_s0 + $0xe58] sm:$0xff]  ;;  %v949_v44 = vld [vmem:[%s9155_s0 + $0xe50] sm:$0xff] }
 0x378   :  { %4231 = vst.msk [vmem:[%s9157_s2 + $0xbd8] sm:$0xff] %vm3851_vm0, %v3750_v47  ;;  %4230 = vst.msk [vmem:[%s9157_s2 + $0xbd0] sm:$0xff] %vm3851_vm0, %v3749_v48 }
 0x379   :  { %v2879_v53 = vpop.permute.xlu1 %2878  ;;  %v2874_v54 = vpop.permute.xlu0 %2873 }
 0x37a   :  { %v3752_v55 = vmul.f32 %v2879_v53, %v392_v49  ;;  %v3751_v56 = vmul.f32 %v2874_v54, %v391_v50  ;;  %3198 = vperm.xlu1 %4338, %v936_v51   ;;  %3193 = vperm.xlu0 %4337, %v935_v52   ;;  %v408_v49 = vld [vmem:[%s9156_s1 + $0xc68] sm:$0xff]  ;;  %v407_v50 = vld [vmem:[%s9156_s1 + $0xc60] sm:$0xff] }
 0x37b   :  { %v952_v51 = vld [vmem:[%s9155_s0 + $0xe68] sm:$0xff]  ;;  %v951_v52 = vld [vmem:[%s9155_s0 + $0xe60] sm:$0xff] }
 0x37c   :  { %4233 = vst.msk [vmem:[%s9157_s2 + $0xbe8] sm:$0xff] %vm3851_vm0, %v3752_v55  ;;  %4232 = vst.msk [vmem:[%s9157_s2 + $0xbe0] sm:$0xff] %vm3851_vm0, %v3751_v56 }
 0x37d   :  { %v2889_v61 = vpop.permute.xlu1 %2888  ;;  %v2884_v62 = vpop.permute.xlu0 %2883 }
 0x37e   :  { %v3754_v63 = vmul.f32 %v2889_v61, %v394_v57  ;;  %v3753_v0 = vmul.f32 %v2884_v62, %v393_v58  ;;  %3208 = vperm.xlu1 %4338, %v938_v59   ;;  %3203 = vperm.xlu0 %4337, %v937_v60   ;;  %v410_v57 = vld [vmem:[%s9156_s1 + $0xc78] sm:$0xff]  ;;  %v409_v58 = vld [vmem:[%s9156_s1 + $0xc70] sm:$0xff] }
 0x37f   :  { %v954_v59 = vld [vmem:[%s9155_s0 + $0xe78] sm:$0xff]  ;;  %v953_v60 = vld [vmem:[%s9155_s0 + $0xe70] sm:$0xff] }
 0x380   :  { %4235 = vst.msk [vmem:[%s9157_s2 + $0xbf8] sm:$0xff] %vm3851_vm0, %v3754_v63  ;;  %4234 = vst.msk [vmem:[%s9157_s2 + $0xbf0] sm:$0xff] %vm3851_vm0, %v3753_v0 }
 0x381   :  { %v2899_v5 = vpop.permute.xlu1 %2898  ;;  %v2894_v6 = vpop.permute.xlu0 %2893 }
 0x382   :  { %v3756_v7 = vmul.f32 %v2899_v5, %v396_v1  ;;  %v3755_v8 = vmul.f32 %v2894_v6, %v395_v2  ;;  %3218 = vperm.xlu1 %4338, %v940_v3   ;;  %3213 = vperm.xlu0 %4337, %v939_v4   ;;  %v412_v1 = vld [vmem:[%s9156_s1 + $0xc88] sm:$0xff]  ;;  %v411_v2 = vld [vmem:[%s9156_s1 + $0xc80] sm:$0xff] }
 0x383   :  { %v956_v3 = vld [vmem:[%s9155_s0 + $0xe88] sm:$0xff]  ;;  %v955_v4 = vld [vmem:[%s9155_s0 + $0xe80] sm:$0xff] }
 0x384   :  { %4237 = vst.msk [vmem:[%s9157_s2 + $0xc08] sm:$0xff] %vm3851_vm0, %v3756_v7  ;;  %4236 = vst.msk [vmem:[%s9157_s2 + $0xc00] sm:$0xff] %vm3851_vm0, %v3755_v8 }
 0x385   :  { %v2909_v13 = vpop.permute.xlu1 %2908  ;;  %v2904_v14 = vpop.permute.xlu0 %2903 }
 0x386   :  { %v3758_v15 = vmul.f32 %v2909_v13, %v398_v9  ;;  %v3757_v16 = vmul.f32 %v2904_v14, %v397_v10  ;;  %3228 = vperm.xlu1 %4338, %v942_v11   ;;  %3223 = vperm.xlu0 %4337, %v941_v12   ;;  %v414_v9 = vld [vmem:[%s9156_s1 + $0xc98] sm:$0xff]  ;;  %v413_v10 = vld [vmem:[%s9156_s1 + $0xc90] sm:$0xff] }
 0x387   :  { %v958_v11 = vld [vmem:[%s9155_s0 + $0xe98] sm:$0xff]  ;;  %v957_v12 = vld [vmem:[%s9155_s0 + $0xe90] sm:$0xff] }
 0x388   :  { %4239 = vst.msk [vmem:[%s9157_s2 + $0xc18] sm:$0xff] %vm3851_vm0, %v3758_v15  ;;  %4238 = vst.msk [vmem:[%s9157_s2 + $0xc10] sm:$0xff] %vm3851_vm0, %v3757_v16 }
 0x389   :  { %v2919_v21 = vpop.permute.xlu1 %2918  ;;  %v2914_v22 = vpop.permute.xlu0 %2913 }
 0x38a   :  { %v3760_v23 = vmul.f32 %v2919_v21, %v400_v17  ;;  %v3759_v24 = vmul.f32 %v2914_v22, %v399_v18  ;;  %3238 = vperm.xlu1 %4338, %v944_v19   ;;  %3233 = vperm.xlu0 %4337, %v943_v20   ;;  %v416_v17 = vld [vmem:[%s9156_s1 + $0xca8] sm:$0xff]  ;;  %v415_v18 = vld [vmem:[%s9156_s1 + $0xca0] sm:$0xff] }
 0x38b   :  { %v960_v19 = vld [vmem:[%s9155_s0 + $0xea8] sm:$0xff]  ;;  %v959_v20 = vld [vmem:[%s9155_s0 + $0xea0] sm:$0xff] }
 0x38c   :  { %4241 = vst.msk [vmem:[%s9157_s2 + $0xc28] sm:$0xff] %vm3851_vm0, %v3760_v23  ;;  %4240 = vst.msk [vmem:[%s9157_s2 + $0xc20] sm:$0xff] %vm3851_vm0, %v3759_v24 }
 0x38d   :  { %v2929_v29 = vpop.permute.xlu1 %2928  ;;  %v2924_v30 = vpop.permute.xlu0 %2923 }
 0x38e   :  { %v3762_v31 = vmul.f32 %v2929_v29, %v402_v25  ;;  %v3761_v32 = vmul.f32 %v2924_v30, %v401_v26  ;;  %3248 = vperm.xlu1 %4338, %v946_v27   ;;  %3243 = vperm.xlu0 %4337, %v945_v28   ;;  %v418_v25 = vld [vmem:[%s9156_s1 + $0xcb8] sm:$0xff]  ;;  %v417_v26 = vld [vmem:[%s9156_s1 + $0xcb0] sm:$0xff] }
 0x38f   :  { %v962_v27 = vld [vmem:[%s9155_s0 + $0xeb8] sm:$0xff]  ;;  %v961_v28 = vld [vmem:[%s9155_s0 + $0xeb0] sm:$0xff] }
 0x390   :  { %4243 = vst.msk [vmem:[%s9157_s2 + $0xc38] sm:$0xff] %vm3851_vm0, %v3762_v31  ;;  %4242 = vst.msk [vmem:[%s9157_s2 + $0xc30] sm:$0xff] %vm3851_vm0, %v3761_v32 }
 0x391   :  { %v2939_v37 = vpop.permute.xlu1 %2938  ;;  %v2934_v38 = vpop.permute.xlu0 %2933 }
 0x392   :  { %v3764_v39 = vmul.f32 %v2939_v37, %v404_v33  ;;  %v3763_v40 = vmul.f32 %v2934_v38, %v403_v34  ;;  %3258 = vperm.xlu1 %4338, %v948_v35   ;;  %3253 = vperm.xlu0 %4337, %v947_v36   ;;  %v420_v33 = vld [vmem:[%s9156_s1 + $0xcc8] sm:$0xff]  ;;  %v419_v34 = vld [vmem:[%s9156_s1 + $0xcc0] sm:$0xff] }
 0x393   :  { %v964_v35 = vld [vmem:[%s9155_s0 + $0xec8] sm:$0xff]  ;;  %v963_v36 = vld [vmem:[%s9155_s0 + $0xec0] sm:$0xff] }
 0x394   :  { %4245 = vst.msk [vmem:[%s9157_s2 + $0xc48] sm:$0xff] %vm3851_vm0, %v3764_v39  ;;  %4244 = vst.msk [vmem:[%s9157_s2 + $0xc40] sm:$0xff] %vm3851_vm0, %v3763_v40 }
 0x395   :  { %v2949_v45 = vpop.permute.xlu1 %2948  ;;  %v2944_v46 = vpop.permute.xlu0 %2943 }
 0x396   :  { %v3766_v47 = vmul.f32 %v2949_v45, %v406_v41  ;;  %v3765_v48 = vmul.f32 %v2944_v46, %v405_v42  ;;  %3268 = vperm.xlu1 %4338, %v950_v43   ;;  %3263 = vperm.xlu0 %4337, %v949_v44   ;;  %v422_v41 = vld [vmem:[%s9156_s1 + $0xcd8] sm:$0xff]  ;;  %v421_v42 = vld [vmem:[%s9156_s1 + $0xcd0] sm:$0xff] }
 0x397   :  { %v966_v43 = vld [vmem:[%s9155_s0 + $0xed8] sm:$0xff]  ;;  %v965_v44 = vld [vmem:[%s9155_s0 + $0xed0] sm:$0xff] }
 0x398   :  { %4247 = vst.msk [vmem:[%s9157_s2 + $0xc58] sm:$0xff] %vm3851_vm0, %v3766_v47  ;;  %4246 = vst.msk [vmem:[%s9157_s2 + $0xc50] sm:$0xff] %vm3851_vm0, %v3765_v48 }
 0x399   :  { %v2959_v53 = vpop.permute.xlu1 %2958  ;;  %v2954_v54 = vpop.permute.xlu0 %2953 }
 0x39a   :  { %v3768_v55 = vmul.f32 %v2959_v53, %v408_v49  ;;  %v3767_v56 = vmul.f32 %v2954_v54, %v407_v50  ;;  %3278 = vperm.xlu1 %4338, %v952_v51   ;;  %3273 = vperm.xlu0 %4337, %v951_v52   ;;  %v424_v49 = vld [vmem:[%s9156_s1 + $0xce8] sm:$0xff]  ;;  %v423_v50 = vld [vmem:[%s9156_s1 + $0xce0] sm:$0xff] }
 0x39b   :  { %v968_v51 = vld [vmem:[%s9155_s0 + $0xee8] sm:$0xff]  ;;  %v967_v52 = vld [vmem:[%s9155_s0 + $0xee0] sm:$0xff] }
 0x39c   :  { %4249 = vst.msk [vmem:[%s9157_s2 + $0xc68] sm:$0xff] %vm3851_vm0, %v3768_v55  ;;  %4248 = vst.msk [vmem:[%s9157_s2 + $0xc60] sm:$0xff] %vm3851_vm0, %v3767_v56 }
 0x39d   :  { %v2969_v61 = vpop.permute.xlu1 %2968  ;;  %v2964_v62 = vpop.permute.xlu0 %2963 }
 0x39e   :  { %v3770_v63 = vmul.f32 %v2969_v61, %v410_v57  ;;  %v3769_v0 = vmul.f32 %v2964_v62, %v409_v58  ;;  %3288 = vperm.xlu1 %4338, %v954_v59   ;;  %3283 = vperm.xlu0 %4337, %v953_v60   ;;  %v426_v57 = vld [vmem:[%s9156_s1 + $0xcf8] sm:$0xff]  ;;  %v425_v58 = vld [vmem:[%s9156_s1 + $0xcf0] sm:$0xff] }
 0x39f   :  { %v970_v59 = vld [vmem:[%s9155_s0 + $0xef8] sm:$0xff]  ;;  %v969_v60 = vld [vmem:[%s9155_s0 + $0xef0] sm:$0xff] }
 0x3a0   :  { %4251 = vst.msk [vmem:[%s9157_s2 + $0xc78] sm:$0xff] %vm3851_vm0, %v3770_v63  ;;  %4250 = vst.msk [vmem:[%s9157_s2 + $0xc70] sm:$0xff] %vm3851_vm0, %v3769_v0 }
 0x3a1   :  { %v2979_v5 = vpop.permute.xlu1 %2978  ;;  %v2974_v6 = vpop.permute.xlu0 %2973 }
 0x3a2   :  { %v3772_v7 = vmul.f32 %v2979_v5, %v412_v1  ;;  %v3771_v8 = vmul.f32 %v2974_v6, %v411_v2  ;;  %3298 = vperm.xlu1 %4338, %v956_v3   ;;  %3293 = vperm.xlu0 %4337, %v955_v4   ;;  %v428_v1 = vld [vmem:[%s9156_s1 + $0xd08] sm:$0xff]  ;;  %v427_v2 = vld [vmem:[%s9156_s1 + $0xd00] sm:$0xff] }
 0x3a4   :  { %4253 = vst.msk [vmem:[%s9157_s2 + $0xc88] sm:$0xff] %vm3851_vm0, %v3772_v7  ;;  %4252 = vst.msk [vmem:[%s9157_s2 + $0xc80] sm:$0xff] %vm3851_vm0, %v3771_v8  ;;  %v430_v7 = vld [vmem:[%s9156_s1 + $0xd18] sm:$0xff]  ;;  %v429_v8 = vld [vmem:[%s9156_s1 + $0xd10] sm:$0xff] }
 0x3a5   :  { %v2989_v13 = vpop.permute.xlu1 %2988  ;;  %v2984_v14 = vpop.permute.xlu0 %2983 }
 0x3a6   :  { %v3774_v15 = vmul.f32 %v2989_v13, %v414_v9  ;;  %v3773_v16 = vmul.f32 %v2984_v14, %v413_v10  ;;  %3308 = vperm.xlu1 %4338, %v958_v11   ;;  %3303 = vperm.xlu0 %4337, %v957_v12   ;;  %v432_v13 = vld [vmem:[%s9156_s1 + $0xd28] sm:$0xff]  ;;  %v431_v14 = vld [vmem:[%s9156_s1 + $0xd20] sm:$0xff] }
 0x3a8   :  { %4255 = vst.msk [vmem:[%s9157_s2 + $0xc98] sm:$0xff] %vm3851_vm0, %v3774_v15  ;;  %4254 = vst.msk [vmem:[%s9157_s2 + $0xc90] sm:$0xff] %vm3851_vm0, %v3773_v16 }
 0x3a9   :  { %v2999_v21 = vpop.permute.xlu1 %2998  ;;  %v2994_v22 = vpop.permute.xlu0 %2993 }
 0x3aa   :  { %v3776_v23 = vmul.f32 %v2999_v21, %v416_v17  ;;  %v3775_v24 = vmul.f32 %v2994_v22, %v415_v18  ;;  %3318 = vperm.xlu1 %4338, %v960_v19   ;;  %3313 = vperm.xlu0 %4337, %v959_v20   ;;  %v434_v19 = vld [vmem:[%s9156_s1 + $0xd38] sm:$0xff]  ;;  %v433_v20 = vld [vmem:[%s9156_s1 + $0xd30] sm:$0xff] }
 0x3ac   :  { %4257 = vst.msk [vmem:[%s9157_s2 + $0xca8] sm:$0xff] %vm3851_vm0, %v3776_v23  ;;  %4256 = vst.msk [vmem:[%s9157_s2 + $0xca0] sm:$0xff] %vm3851_vm0, %v3775_v24 }
 0x3ad   :  { %v3009_v29 = vpop.permute.xlu1 %3008  ;;  %v3004_v30 = vpop.permute.xlu0 %3003 }
 0x3ae   :  { %v3778_v31 = vmul.f32 %v3009_v29, %v418_v25  ;;  %v3777_v32 = vmul.f32 %v3004_v30, %v417_v26  ;;  %3328 = vperm.xlu1 %4338, %v962_v27   ;;  %3323 = vperm.xlu0 %4337, %v961_v28   ;;  %v436_v25 = vld [vmem:[%s9156_s1 + $0xd48] sm:$0xff]  ;;  %v435_v26 = vld [vmem:[%s9156_s1 + $0xd40] sm:$0xff] }
 0x3b0   :  { %4259 = vst.msk [vmem:[%s9157_s2 + $0xcb8] sm:$0xff] %vm3851_vm0, %v3778_v31  ;;  %4258 = vst.msk [vmem:[%s9157_s2 + $0xcb0] sm:$0xff] %vm3851_vm0, %v3777_v32  ;;  %v438_v31 = vld [vmem:[%s9156_s1 + $0xd58] sm:$0xff]  ;;  %v437_v32 = vld [vmem:[%s9156_s1 + $0xd50] sm:$0xff] }
 0x3b1   :  { %v3019_v37 = vpop.permute.xlu1 %3018  ;;  %v3014_v38 = vpop.permute.xlu0 %3013 }
 0x3b2   :  { %v3780_v39 = vmul.f32 %v3019_v37, %v420_v33  ;;  %v3779_v40 = vmul.f32 %v3014_v38, %v419_v34  ;;  %3338 = vperm.xlu1 %4338, %v964_v35   ;;  %3333 = vperm.xlu0 %4337, %v963_v36   ;;  %v440_v37 = vld [vmem:[%s9156_s1 + $0xd68] sm:$0xff]  ;;  %v439_v38 = vld [vmem:[%s9156_s1 + $0xd60] sm:$0xff] }
 0x3b4   :  { %4261 = vst.msk [vmem:[%s9157_s2 + $0xcc8] sm:$0xff] %vm3851_vm0, %v3780_v39  ;;  %4260 = vst.msk [vmem:[%s9157_s2 + $0xcc0] sm:$0xff] %vm3851_vm0, %v3779_v40 }
 0x3b5   :  { %v3029_v45 = vpop.permute.xlu1 %3028  ;;  %v3024_v46 = vpop.permute.xlu0 %3023 }
 0x3b6   :  { %v3782_v47 = vmul.f32 %v3029_v45, %v422_v41  ;;  %v3781_v48 = vmul.f32 %v3024_v46, %v421_v42  ;;  %3348 = vperm.xlu1 %4338, %v966_v43   ;;  %3343 = vperm.xlu0 %4337, %v965_v44   ;;  %v442_v43 = vld [vmem:[%s9156_s1 + $0xd78] sm:$0xff]  ;;  %v441_v44 = vld [vmem:[%s9156_s1 + $0xd70] sm:$0xff] }
 0x3b8   :  { %4263 = vst.msk [vmem:[%s9157_s2 + $0xcd8] sm:$0xff] %vm3851_vm0, %v3782_v47  ;;  %4262 = vst.msk [vmem:[%s9157_s2 + $0xcd0] sm:$0xff] %vm3851_vm0, %v3781_v48 }
 0x3b9   :  { %v3039_v53 = vpop.permute.xlu1 %3038  ;;  %v3034_v54 = vpop.permute.xlu0 %3033 }
 0x3ba   :  { %v3784_v55 = vmul.f32 %v3039_v53, %v424_v49  ;;  %v3783_v56 = vmul.f32 %v3034_v54, %v423_v50  ;;  %3358 = vperm.xlu1 %4338, %v968_v51   ;;  %3353 = vperm.xlu0 %4337, %v967_v52   ;;  %v444_v49 = vld [vmem:[%s9156_s1 + $0xd88] sm:$0xff]  ;;  %v443_v50 = vld [vmem:[%s9156_s1 + $0xd80] sm:$0xff] }
 0x3bc   :  { %4265 = vst.msk [vmem:[%s9157_s2 + $0xce8] sm:$0xff] %vm3851_vm0, %v3784_v55  ;;  %4264 = vst.msk [vmem:[%s9157_s2 + $0xce0] sm:$0xff] %vm3851_vm0, %v3783_v56  ;;  %v446_v55 = vld [vmem:[%s9156_s1 + $0xd98] sm:$0xff]  ;;  %v445_v56 = vld [vmem:[%s9156_s1 + $0xd90] sm:$0xff] }
 0x3bd   :  { %v3049_v61 = vpop.permute.xlu1 %3048  ;;  %v3044_v62 = vpop.permute.xlu0 %3043 }
 0x3be   :  { %v3786_v63 = vmul.f32 %v3049_v61, %v426_v57  ;;  %v3785_v0 = vmul.f32 %v3044_v62, %v425_v58  ;;  %3368 = vperm.xlu1 %4338, %v970_v59   ;;  %3363 = vperm.xlu0 %4337, %v969_v60   ;;  %v448_v61 = vld [vmem:[%s9156_s1 + $0xda8] sm:$0xff]  ;;  %v447_v62 = vld [vmem:[%s9156_s1 + $0xda0] sm:$0xff] }
 0x3c0   :  { %4267 = vst.msk [vmem:[%s9157_s2 + $0xcf8] sm:$0xff] %vm3851_vm0, %v3786_v63  ;;  %4266 = vst.msk [vmem:[%s9157_s2 + $0xcf0] sm:$0xff] %vm3851_vm0, %v3785_v0 }
 0x3c1   :  { %v3059_v3 = vpop.permute.xlu1 %3058  ;;  %v3054_v4 = vpop.permute.xlu0 %3053 }
 0x3c2   :  { %v3788_v5 = vmul.f32 %v3059_v3, %v428_v1  ;;  %v3787_v6 = vmul.f32 %v3054_v4, %v427_v2  ;;  %v450_v3 = vld [vmem:[%s9156_s1 + $0xdb8] sm:$0xff]  ;;  %v449_v4 = vld [vmem:[%s9156_s1 + $0xdb0] sm:$0xff] }
 0x3c4   :  { %4269 = vst.msk [vmem:[%s9157_s2 + $0xd08] sm:$0xff] %vm3851_vm0, %v3788_v5  ;;  %4268 = vst.msk [vmem:[%s9157_s2 + $0xd00] sm:$0xff] %vm3851_vm0, %v3787_v6 }
 0x3c5   :  { %v3069_v9 = vpop.permute.xlu1 %3068  ;;  %v3064_v10 = vpop.permute.xlu0 %3063 }
 0x3c6   :  { %v3790_v11 = vmul.f32 %v3069_v9, %v430_v7  ;;  %v3789_v12 = vmul.f32 %v3064_v10, %v429_v8  ;;  %v452_v9 = vld [vmem:[%s9156_s1 + $0xdc8] sm:$0xff]  ;;  %v451_v10 = vld [vmem:[%s9156_s1 + $0xdc0] sm:$0xff] }
 0x3c8   :  { %4271 = vst.msk [vmem:[%s9157_s2 + $0xd18] sm:$0xff] %vm3851_vm0, %v3790_v11  ;;  %4270 = vst.msk [vmem:[%s9157_s2 + $0xd10] sm:$0xff] %vm3851_vm0, %v3789_v12 }
 0x3c9   :  { %v3079_v15 = vpop.permute.xlu1 %3078  ;;  %v3074_v16 = vpop.permute.xlu0 %3073 }
 0x3ca   :  { %v3792_v17 = vmul.f32 %v3079_v15, %v432_v13  ;;  %v3791_v18 = vmul.f32 %v3074_v16, %v431_v14  ;;  %v454_v15 = vld [vmem:[%s9156_s1 + $0xdd8] sm:$0xff]  ;;  %v453_v16 = vld [vmem:[%s9156_s1 + $0xdd0] sm:$0xff] }
 0x3cc   :  { %4273 = vst.msk [vmem:[%s9157_s2 + $0xd28] sm:$0xff] %vm3851_vm0, %v3792_v17  ;;  %4272 = vst.msk [vmem:[%s9157_s2 + $0xd20] sm:$0xff] %vm3851_vm0, %v3791_v18 }
 0x3cd   :  { %v3089_v21 = vpop.permute.xlu1 %3088  ;;  %v3084_v22 = vpop.permute.xlu0 %3083 }
 0x3ce   :  { %v3794_v23 = vmul.f32 %v3089_v21, %v434_v19  ;;  %v3793_v24 = vmul.f32 %v3084_v22, %v433_v20  ;;  %v456_v21 = vld [vmem:[%s9156_s1 + $0xde8] sm:$0xff]  ;;  %v455_v22 = vld [vmem:[%s9156_s1 + $0xde0] sm:$0xff] }
 0x3d0   :  { %4275 = vst.msk [vmem:[%s9157_s2 + $0xd38] sm:$0xff] %vm3851_vm0, %v3794_v23  ;;  %4274 = vst.msk [vmem:[%s9157_s2 + $0xd30] sm:$0xff] %vm3851_vm0, %v3793_v24 }
 0x3d1   :  { %v3099_v27 = vpop.permute.xlu1 %3098  ;;  %v3094_v28 = vpop.permute.xlu0 %3093 }
 0x3d2   :  { %v3796_v29 = vmul.f32 %v3099_v27, %v436_v25  ;;  %v3795_v30 = vmul.f32 %v3094_v28, %v435_v26  ;;  %v458_v27 = vld [vmem:[%s9156_s1 + $0xdf8] sm:$0xff]  ;;  %v457_v28 = vld [vmem:[%s9156_s1 + $0xdf0] sm:$0xff] }
 0x3d4   :  { %4277 = vst.msk [vmem:[%s9157_s2 + $0xd48] sm:$0xff] %vm3851_vm0, %v3796_v29  ;;  %4276 = vst.msk [vmem:[%s9157_s2 + $0xd40] sm:$0xff] %vm3851_vm0, %v3795_v30 }
 0x3d5   :  { %v3109_v33 = vpop.permute.xlu1 %3108  ;;  %v3104_v34 = vpop.permute.xlu0 %3103 }
 0x3d6   :  { %v3798_v35 = vmul.f32 %v3109_v33, %v438_v31  ;;  %v3797_v36 = vmul.f32 %v3104_v34, %v437_v32  ;;  %v460_v33 = vld [vmem:[%s9156_s1 + $0xe08] sm:$0xff]  ;;  %v459_v34 = vld [vmem:[%s9156_s1 + $0xe00] sm:$0xff] }
 0x3d8   :  { %4279 = vst.msk [vmem:[%s9157_s2 + $0xd58] sm:$0xff] %vm3851_vm0, %v3798_v35  ;;  %4278 = vst.msk [vmem:[%s9157_s2 + $0xd50] sm:$0xff] %vm3851_vm0, %v3797_v36 }
 0x3d9   :  { %v3119_v39 = vpop.permute.xlu1 %3118  ;;  %v3114_v40 = vpop.permute.xlu0 %3113 }
 0x3da   :  { %v3800_v41 = vmul.f32 %v3119_v39, %v440_v37  ;;  %v3799_v42 = vmul.f32 %v3114_v40, %v439_v38  ;;  %v462_v39 = vld [vmem:[%s9156_s1 + $0xe18] sm:$0xff]  ;;  %v461_v40 = vld [vmem:[%s9156_s1 + $0xe10] sm:$0xff] }
 0x3dc   :  { %4281 = vst.msk [vmem:[%s9157_s2 + $0xd68] sm:$0xff] %vm3851_vm0, %v3800_v41  ;;  %4280 = vst.msk [vmem:[%s9157_s2 + $0xd60] sm:$0xff] %vm3851_vm0, %v3799_v42 }
 0x3dd   :  { %v3129_v45 = vpop.permute.xlu1 %3128  ;;  %v3124_v46 = vpop.permute.xlu0 %3123 }
 0x3de   :  { %v3802_v47 = vmul.f32 %v3129_v45, %v442_v43  ;;  %v3801_v48 = vmul.f32 %v3124_v46, %v441_v44  ;;  %v464_v45 = vld [vmem:[%s9156_s1 + $0xe28] sm:$0xff]  ;;  %v463_v46 = vld [vmem:[%s9156_s1 + $0xe20] sm:$0xff] }
 0x3e0   :  { %4283 = vst.msk [vmem:[%s9157_s2 + $0xd78] sm:$0xff] %vm3851_vm0, %v3802_v47  ;;  %4282 = vst.msk [vmem:[%s9157_s2 + $0xd70] sm:$0xff] %vm3851_vm0, %v3801_v48 }
 0x3e1   :  { %v3139_v51 = vpop.permute.xlu1 %3138  ;;  %v3134_v52 = vpop.permute.xlu0 %3133 }
 0x3e2   :  { %v3804_v53 = vmul.f32 %v3139_v51, %v444_v49  ;;  %v3803_v54 = vmul.f32 %v3134_v52, %v443_v50  ;;  %v466_v51 = vld [vmem:[%s9156_s1 + $0xe38] sm:$0xff]  ;;  %v465_v52 = vld [vmem:[%s9156_s1 + $0xe30] sm:$0xff] }
 0x3e4   :  { %4285 = vst.msk [vmem:[%s9157_s2 + $0xd88] sm:$0xff] %vm3851_vm0, %v3804_v53  ;;  %4284 = vst.msk [vmem:[%s9157_s2 + $0xd80] sm:$0xff] %vm3851_vm0, %v3803_v54 }
 0x3e5   :  { %v3149_v57 = vpop.permute.xlu1 %3148  ;;  %v3144_v58 = vpop.permute.xlu0 %3143 }
 0x3e6   :  { %v3806_v59 = vmul.f32 %v3149_v57, %v446_v55  ;;  %v3805_v60 = vmul.f32 %v3144_v58, %v445_v56  ;;  %v468_v57 = vld [vmem:[%s9156_s1 + $0xe48] sm:$0xff]  ;;  %v467_v58 = vld [vmem:[%s9156_s1 + $0xe40] sm:$0xff] }
 0x3e8   :  { %4287 = vst.msk [vmem:[%s9157_s2 + $0xd98] sm:$0xff] %vm3851_vm0, %v3806_v59  ;;  %4286 = vst.msk [vmem:[%s9157_s2 + $0xd90] sm:$0xff] %vm3851_vm0, %v3805_v60 }
 0x3e9   :  { %v3159_v63 = vpop.permute.xlu1 %3158  ;;  %v3154_v0 = vpop.permute.xlu0 %3153 }
 0x3ea   :  { %v3808_v1 = vmul.f32 %v3159_v63, %v448_v61  ;;  %v3807_v2 = vmul.f32 %v3154_v0, %v447_v62  ;;  %v470_v63 = vld [vmem:[%s9156_s1 + $0xe58] sm:$0xff]  ;;  %v469_v0 = vld [vmem:[%s9156_s1 + $0xe50] sm:$0xff] }
 0x3ec   :  { %4289 = vst.msk [vmem:[%s9157_s2 + $0xda8] sm:$0xff] %vm3851_vm0, %v3808_v1  ;;  %4288 = vst.msk [vmem:[%s9157_s2 + $0xda0] sm:$0xff] %vm3851_vm0, %v3807_v2 }
 0x3ed   :  { %v3169_v5 = vpop.permute.xlu1 %3168  ;;  %v3164_v6 = vpop.permute.xlu0 %3163 }
 0x3ee   :  { %v3810_v7 = vmul.f32 %v3169_v5, %v450_v3  ;;  %v3809_v8 = vmul.f32 %v3164_v6, %v449_v4  ;;  %v472_v5 = vld [vmem:[%s9156_s1 + $0xe68] sm:$0xff]  ;;  %v471_v6 = vld [vmem:[%s9156_s1 + $0xe60] sm:$0xff] }
 0x3f0   :  { %4291 = vst.msk [vmem:[%s9157_s2 + $0xdb8] sm:$0xff] %vm3851_vm0, %v3810_v7  ;;  %4290 = vst.msk [vmem:[%s9157_s2 + $0xdb0] sm:$0xff] %vm3851_vm0, %v3809_v8 }
 0x3f1   :  { %v3179_v11 = vpop.permute.xlu1 %3178  ;;  %v3174_v12 = vpop.permute.xlu0 %3173 }
 0x3f2   :  { %v3812_v13 = vmul.f32 %v3179_v11, %v452_v9  ;;  %v3811_v14 = vmul.f32 %v3174_v12, %v451_v10  ;;  %v474_v11 = vld [vmem:[%s9156_s1 + $0xe78] sm:$0xff]  ;;  %v473_v12 = vld [vmem:[%s9156_s1 + $0xe70] sm:$0xff] }
 0x3f4   :  { %4293 = vst.msk [vmem:[%s9157_s2 + $0xdc8] sm:$0xff] %vm3851_vm0, %v3812_v13  ;;  %4292 = vst.msk [vmem:[%s9157_s2 + $0xdc0] sm:$0xff] %vm3851_vm0, %v3811_v14 }
 0x3f5   :  { %v3189_v17 = vpop.permute.xlu1 %3188  ;;  %v3184_v18 = vpop.permute.xlu0 %3183 }
 0x3f6   :  { %v3814_v19 = vmul.f32 %v3189_v17, %v454_v15  ;;  %v3813_v20 = vmul.f32 %v3184_v18, %v453_v16  ;;  %v476_v17 = vld [vmem:[%s9156_s1 + $0xe88] sm:$0xff]  ;;  %v475_v18 = vld [vmem:[%s9156_s1 + $0xe80] sm:$0xff] }
 0x3f8   :  { %4295 = vst.msk [vmem:[%s9157_s2 + $0xdd8] sm:$0xff] %vm3851_vm0, %v3814_v19  ;;  %4294 = vst.msk [vmem:[%s9157_s2 + $0xdd0] sm:$0xff] %vm3851_vm0, %v3813_v20 }
 0x3f9   :  { %v3199_v23 = vpop.permute.xlu1 %3198  ;;  %v3194_v24 = vpop.permute.xlu0 %3193 }
 0x3fa   :  { %v3816_v25 = vmul.f32 %v3199_v23, %v456_v21  ;;  %v3815_v26 = vmul.f32 %v3194_v24, %v455_v22  ;;  %v478_v23 = vld [vmem:[%s9156_s1 + $0xe98] sm:$0xff]  ;;  %v477_v24 = vld [vmem:[%s9156_s1 + $0xe90] sm:$0xff] }
 0x3fc   :  { %4297 = vst.msk [vmem:[%s9157_s2 + $0xde8] sm:$0xff] %vm3851_vm0, %v3816_v25  ;;  %4296 = vst.msk [vmem:[%s9157_s2 + $0xde0] sm:$0xff] %vm3851_vm0, %v3815_v26 }
 0x3fd   :  { %v3209_v29 = vpop.permute.xlu1 %3208  ;;  %v3204_v30 = vpop.permute.xlu0 %3203 }
 0x3fe   :  { %v3818_v31 = vmul.f32 %v3209_v29, %v458_v27  ;;  %v3817_v32 = vmul.f32 %v3204_v30, %v457_v28  ;;  %v480_v29 = vld [vmem:[%s9156_s1 + $0xea8] sm:$0xff]  ;;  %v479_v30 = vld [vmem:[%s9156_s1 + $0xea0] sm:$0xff] }
 0x400   :  { %4299 = vst.msk [vmem:[%s9157_s2 + $0xdf8] sm:$0xff] %vm3851_vm0, %v3818_v31  ;;  %4298 = vst.msk [vmem:[%s9157_s2 + $0xdf0] sm:$0xff] %vm3851_vm0, %v3817_v32 }
 0x401   :  { %v3219_v35 = vpop.permute.xlu1 %3218  ;;  %v3214_v36 = vpop.permute.xlu0 %3213 }
 0x402   :  { %v3820_v37 = vmul.f32 %v3219_v35, %v460_v33  ;;  %v3819_v38 = vmul.f32 %v3214_v36, %v459_v34  ;;  %v482_v35 = vld [vmem:[%s9156_s1 + $0xeb8] sm:$0xff]  ;;  %v481_v36 = vld [vmem:[%s9156_s1 + $0xeb0] sm:$0xff] }
 0x404   :  { %4301 = vst.msk [vmem:[%s9157_s2 + $0xe08] sm:$0xff] %vm3851_vm0, %v3820_v37  ;;  %4300 = vst.msk [vmem:[%s9157_s2 + $0xe00] sm:$0xff] %vm3851_vm0, %v3819_v38 }
 0x405   :  { %v3229_v41 = vpop.permute.xlu1 %3228  ;;  %v3224_v42 = vpop.permute.xlu0 %3223 }
 0x406   :  { %v3822_v43 = vmul.f32 %v3229_v41, %v462_v39  ;;  %v3821_v44 = vmul.f32 %v3224_v42, %v461_v40  ;;  %v484_v41 = vld [vmem:[%s9156_s1 + $0xec8] sm:$0xff]  ;;  %v483_v42 = vld [vmem:[%s9156_s1 + $0xec0] sm:$0xff] }
 0x408   :  { %4303 = vst.msk [vmem:[%s9157_s2 + $0xe18] sm:$0xff] %vm3851_vm0, %v3822_v43  ;;  %4302 = vst.msk [vmem:[%s9157_s2 + $0xe10] sm:$0xff] %vm3851_vm0, %v3821_v44 }
 0x409   :  { %v3239_v47 = vpop.permute.xlu1 %3238  ;;  %v3234_v48 = vpop.permute.xlu0 %3233 }
 0x40a   :  { %v3824_v49 = vmul.f32 %v3239_v47, %v464_v45  ;;  %v3823_v50 = vmul.f32 %v3234_v48, %v463_v46  ;;  %v486_v47 = vld [vmem:[%s9156_s1 + $0xed8] sm:$0xff]  ;;  %v485_v48 = vld [vmem:[%s9156_s1 + $0xed0] sm:$0xff] }
 0x40c   :  { %4305 = vst.msk [vmem:[%s9157_s2 + $0xe28] sm:$0xff] %vm3851_vm0, %v3824_v49  ;;  %4304 = vst.msk [vmem:[%s9157_s2 + $0xe20] sm:$0xff] %vm3851_vm0, %v3823_v50 }
 0x40d   :  { %v3249_v53 = vpop.permute.xlu1 %3248  ;;  %v3244_v54 = vpop.permute.xlu0 %3243 }
 0x40e   :  { %v3826_v55 = vmul.f32 %v3249_v53, %v466_v51  ;;  %v3825_v56 = vmul.f32 %v3244_v54, %v465_v52  ;;  %v488_v53 = vld [vmem:[%s9156_s1 + $0xee8] sm:$0xff]  ;;  %v487_v54 = vld [vmem:[%s9156_s1 + $0xee0] sm:$0xff] }
 0x410   :  { %4307 = vst.msk [vmem:[%s9157_s2 + $0xe38] sm:$0xff] %vm3851_vm0, %v3826_v55  ;;  %4306 = vst.msk [vmem:[%s9157_s2 + $0xe30] sm:$0xff] %vm3851_vm0, %v3825_v56 }
 0x411   :  { %v3259_v59 = vpop.permute.xlu1 %3258  ;;  %v3254_v60 = vpop.permute.xlu0 %3253 }
 0x412   :  { %v3828_v61 = vmul.f32 %v3259_v59, %v468_v57  ;;  %v3827_v62 = vmul.f32 %v3254_v60, %v467_v58  ;;  %v490_v59 = vld [vmem:[%s9156_s1 + $0xef8] sm:$0xff]  ;;  %v489_v60 = vld [vmem:[%s9156_s1 + $0xef0] sm:$0xff] }
 0x414   :  { %4309 = vst.msk [vmem:[%s9157_s2 + $0xe48] sm:$0xff] %vm3851_vm0, %v3828_v61  ;;  %4308 = vst.msk [vmem:[%s9157_s2 + $0xe40] sm:$0xff] %vm3851_vm0, %v3827_v62 }
 0x415   :  { %v3269_v1 = vpop.permute.xlu1 %3268  ;;  %v3264_v2 = vpop.permute.xlu0 %3263 }
 0x416   :  { %v3830_v3 = vmul.f32 %v3269_v1, %v470_v63  ;;  %v3829_v4 = vmul.f32 %v3264_v2, %v469_v0 }
 0x418   :  { %4311 = vst.msk [vmem:[%s9157_s2 + $0xe58] sm:$0xff] %vm3851_vm0, %v3830_v3  ;;  %4310 = vst.msk [vmem:[%s9157_s2 + $0xe50] sm:$0xff] %vm3851_vm0, %v3829_v4 }
 0x419   :  { %v3279_v7 = vpop.permute.xlu1 %3278  ;;  %v3274_v8 = vpop.permute.xlu0 %3273 }
 0x41a   :  { %v3832_v9 = vmul.f32 %v3279_v7, %v472_v5  ;;  %v3831_v10 = vmul.f32 %v3274_v8, %v471_v6 }
 0x41c   :  { %4313 = vst.msk [vmem:[%s9157_s2 + $0xe68] sm:$0xff] %vm3851_vm0, %v3832_v9  ;;  %4312 = vst.msk [vmem:[%s9157_s2 + $0xe60] sm:$0xff] %vm3851_vm0, %v3831_v10 }
 0x41d   :  { %v3289_v13 = vpop.permute.xlu1 %3288  ;;  %v3284_v14 = vpop.permute.xlu0 %3283 }
 0x41e   :  { %v3834_v15 = vmul.f32 %v3289_v13, %v474_v11  ;;  %v3833_v16 = vmul.f32 %v3284_v14, %v473_v12 }
 0x420   :  { %4315 = vst.msk [vmem:[%s9157_s2 + $0xe78] sm:$0xff] %vm3851_vm0, %v3834_v15  ;;  %4314 = vst.msk [vmem:[%s9157_s2 + $0xe70] sm:$0xff] %vm3851_vm0, %v3833_v16 }
 0x421   :  { %v3299_v19 = vpop.permute.xlu1 %3298  ;;  %v3294_v20 = vpop.permute.xlu0 %3293 }
 0x422   :  { %v3836_v21 = vmul.f32 %v3299_v19, %v476_v17  ;;  %v3835_v22 = vmul.f32 %v3294_v20, %v475_v18 }
 0x424   :  { %4317 = vst.msk [vmem:[%s9157_s2 + $0xe88] sm:$0xff] %vm3851_vm0, %v3836_v21  ;;  %4316 = vst.msk [vmem:[%s9157_s2 + $0xe80] sm:$0xff] %vm3851_vm0, %v3835_v22 }
 0x425   :  { %v3309_v25 = vpop.permute.xlu1 %3308  ;;  %v3304_v26 = vpop.permute.xlu0 %3303 }
 0x426   :  { %v3838_v27 = vmul.f32 %v3309_v25, %v478_v23  ;;  %v3837_v28 = vmul.f32 %v3304_v26, %v477_v24 }
 0x428   :  { %4319 = vst.msk [vmem:[%s9157_s2 + $0xe98] sm:$0xff] %vm3851_vm0, %v3838_v27  ;;  %4318 = vst.msk [vmem:[%s9157_s2 + $0xe90] sm:$0xff] %vm3851_vm0, %v3837_v28 }
 0x429   :  { %v3319_v31 = vpop.permute.xlu1 %3318  ;;  %v3314_v32 = vpop.permute.xlu0 %3313 }
 0x42a   :  { %v3840_v33 = vmul.f32 %v3319_v31, %v480_v29  ;;  %v3839_v34 = vmul.f32 %v3314_v32, %v479_v30 }
 0x42c   :  { %4321 = vst.msk [vmem:[%s9157_s2 + $0xea8] sm:$0xff] %vm3851_vm0, %v3840_v33  ;;  %4320 = vst.msk [vmem:[%s9157_s2 + $0xea0] sm:$0xff] %vm3851_vm0, %v3839_v34 }
 0x42d   :  { %v3329_v37 = vpop.permute.xlu1 %3328  ;;  %v3324_v38 = vpop.permute.xlu0 %3323 }
 0x42e   :  { %v3842_v39 = vmul.f32 %v3329_v37, %v482_v35  ;;  %v3841_v40 = vmul.f32 %v3324_v38, %v481_v36 }
 0x430   :  { %4323 = vst.msk [vmem:[%s9157_s2 + $0xeb8] sm:$0xff] %vm3851_vm0, %v3842_v39  ;;  %4322 = vst.msk [vmem:[%s9157_s2 + $0xeb0] sm:$0xff] %vm3851_vm0, %v3841_v40 }
 0x431   :  { %v3339_v43 = vpop.permute.xlu1 %3338  ;;  %v3334_v44 = vpop.permute.xlu0 %3333 }
 0x432   :  { %v3844_v45 = vmul.f32 %v3339_v43, %v484_v41  ;;  %v3843_v46 = vmul.f32 %v3334_v44, %v483_v42 }
 0x434   :  { %4325 = vst.msk [vmem:[%s9157_s2 + $0xec8] sm:$0xff] %vm3851_vm0, %v3844_v45  ;;  %4324 = vst.msk [vmem:[%s9157_s2 + $0xec0] sm:$0xff] %vm3851_vm0, %v3843_v46 }
 0x435   :  { %v3349_v49 = vpop.permute.xlu1 %3348  ;;  %v3344_v50 = vpop.permute.xlu0 %3343 }
 0x436   :  { %v3846_v51 = vmul.f32 %v3349_v49, %v486_v47  ;;  %v3845_v52 = vmul.f32 %v3344_v50, %v485_v48 }
 0x438   :  { %4327 = vst.msk [vmem:[%s9157_s2 + $0xed8] sm:$0xff] %vm3851_vm0, %v3846_v51  ;;  %4326 = vst.msk [vmem:[%s9157_s2 + $0xed0] sm:$0xff] %vm3851_vm0, %v3845_v52 }
 0x439   :  { %v3359_v55 = vpop.permute.xlu1 %3358  ;;  %v3354_v56 = vpop.permute.xlu0 %3353 }
 0x43a   :  { %v3848_v57 = vmul.f32 %v3359_v55, %v488_v53  ;;  %v3847_v58 = vmul.f32 %v3354_v56, %v487_v54 }
 0x43c   :  { %4329 = vst.msk [vmem:[%s9157_s2 + $0xee8] sm:$0xff] %vm3851_vm0, %v3848_v57  ;;  %4328 = vst.msk [vmem:[%s9157_s2 + $0xee0] sm:$0xff] %vm3851_vm0, %v3847_v58 }
 0x43d   :  { %v3369_v61 = vpop.permute.xlu1 %3368  ;;  %v3364_v62 = vpop.permute.xlu0 %3363 }
 0x43e   :  { %v3850_v63 = vmul.f32 %v3369_v61, %v490_v59  ;;  %v3849_v0 = vmul.f32 %v3364_v62, %v489_v60 }
 0x440   :  { %4331 = vst.msk [vmem:[%s9157_s2 + $0xef8] sm:$0xff] %vm3851_vm0, %v3850_v63  ;;  %4330 = vst.msk [vmem:[%s9157_s2 + $0xef0] sm:$0xff] %vm3851_vm0, %v3849_v0 }

</bundles_post_ra>
